<compile_context>
chip_gen: v7x
topology: tpu7x:2x2x1
jax: 0.10.0
libtpu: 0.0.40
codegen_flags: <defaults>
</compile_context>

<pallas_src>
import functools
import math
from typing import NamedTuple

import jax
import jax.numpy as jnp
import numpy as np
from jax import lax
from jax.experimental import pallas as pl
from jax.experimental.pallas import tpu as pltpu


def _round_up(x, m):
    return -(-x // m) * m


# ----------------------------------------------------------------------------
# GCN hop tiling plan (static decisions, derived once per model config)
# ----------------------------------------------------------------------------
class GCNPlan(NamedTuple):
    n_pad: int        # node dim padded so tm and tk both divide it
    tm: int           # row tile ("parallel" grid axis)
    tk: int           # contraction tile ("arbitrary" grid axis)
    x_resident: bool  # keep the whole previous layer resident in VMEM
    vmem_limit: int   # scoped VMEM limit for the hop pallas_call


def make_gcn_plan(n_nodes, d, tm=512, tk=1024, vmem_budget=40 << 20):
    """Pick GCN-hop tiles.  vmem_budget is conservative for v7x (64 MiB/TC)."""
    n_pad0 = _round_up(max(n_nodes, 128), 128)
    tm = _round_up(min(max(tm, 128), n_pad0), 128)
    tk = _round_up(min(max(tk, 128), n_pad0), 128)
    n_pad = _round_up(n_nodes, math.lcm(tm, tk))

    def vmem_cost(tm_, tk_, resident):
        x_b = (n_pad * d * 2) if resident else (tk_ * d * 2)
        return (2 * tm_ * tk_ * 2        # bf16 graph tile (double buffered)
                + 2 * x_b                # bf16 x
                + 2 * tm_ * d * 4        # prev layer-sum blocks
                + 2 * tm_ * d * (2 + 4)  # y (bf16) + acc (f32) output blocks
                + tm_ * d * 4)           # f32 accumulator scratch

    x_resident = vmem_cost(tm, tk, True) <= vmem_budget
    if not x_resident:
        # x must be re-streamed once per row tile -> taller row tile amortizes it.
        while (tm < 1024 and tm * 2 <= n_pad0
               and vmem_cost(tm * 2, tk, False) <= vmem_budget):
            tm *= 2
        n_pad = _round_up(n_nodes, math.lcm(tm, tk))

    # Even number of row tiles so the "parallel" axis balances v7x's 2 TensorCores.
    n_row_tiles = n_pad // tm
    if n_row_tiles > 1 and n_row_tiles % 2 == 1 and tm % 2 == 0 and tm > 128:
        tm //= 2

    vmem_limit = min(56 << 20,
                     max(32 << 20, int(vmem_cost(tm, tk, x_resident) * 1.25) + (8 << 20)))
    return GCNPlan(n_pad=n_pad, tm=tm, tk=tk, x_resident=x_resident,
                   vmem_limit=vmem_limit)


def prepare_graph(graph, n_nodes, n_pad):
    """Pad + bf16-cast the (static) adjacency once, outside the jitted step."""
    pad = n_pad - n_nodes
    return jnp.pad(graph.astype(jnp.bfloat16), ((0, pad), (0, pad)))


# ----------------------------------------------------------------------------
# Kernel 1: one GCN hop (tiled graph @ x) fused with the running layer-sum
# ----------------------------------------------------------------------------
def _gcn_hop_kernel(g_ref, x_ref, prev_ref, y_ref, acc_out_ref, acc_ref,
                    *, tk, x_resident):
    k = pl.program_id(1)

    @pl.when(k == 0)
    def _():
        acc_ref[...] = jnp.zeros_like(acc_ref)

    if x_resident:
        # x holds the whole previous layer; slice the k-th contraction tile.
        off = pl.multiple_of(k * tk, tk)
        x_tile = x_ref[pl.ds(off, tk), :]
    else:
        x_tile = x_ref[...]

    # bf16 x bf16 -> f32 accumulation on the MXU
    acc_ref[...] += jnp.dot(g_ref[...], x_tile,
                            preferred_element_type=jnp.float32)

    @pl.when(k == pl.num_programs(1) - 1)
    def _():
        y = acc_ref[...]
        y_ref[...] = y.astype(y_ref.dtype)        # next-hop operand (bf16)
        acc_out_ref[...] = prev_ref[...] + y      # running layer sum (f32)


def _gcn_hop(graph_bf16, x_bf16, prev_f32, plan):
    n_pad, d = prev_f32.shape
    tm, tk = plan.tm, plan.tk
    assert n_pad % tm == 0 and n_pad % tk == 0
    grid = (n_pad // tm, n_pad // tk)

    if plan.x_resident:
        # Constant index map -> fetched exactly once for the whole grid.
        # TODO(synk): pipeline_mode=pl.Buffered(1) would drop the second x buffer.
        x_spec = pl.BlockSpec((n_pad, d), lambda i, k: (0, 0))
        x_read_bytes = n_pad * d * 2
    else:
        x_spec = pl.BlockSpec((tk, d), lambda i, k: (k, 0))
        x_read_bytes = (n_pad // tm) * n_pad * d * 2   # re-streamed per row tile

    cost = pl.CostEstimate(
        flops=2 * n_pad * n_pad * d,
        transcendentals=0,
        bytes_accessed=n_pad * n_pad * 2 + x_read_bytes + n_pad * d * (4 + 2 + 4),
    )

    kernel = functools.partial(_gcn_hop_kernel, tk=tk, x_resident=plan.x_resident)

    y, acc = pl.pallas_call(
        kernel,
        out_shape=(jax.ShapeDtypeStruct((n_pad, d), jnp.bfloat16),
                   jax.ShapeDtypeStruct((n_pad, d), jnp.float32)),
        grid_spec=pltpu.PrefetchScalarGridSpec(
            num_scalar_prefetch=0,
            grid=grid,
            in_specs=[
                pl.BlockSpec((tm, tk), lambda i, k: (i, k)),   # graph tile
                x_spec,                                        # x (resident or streamed)
                pl.BlockSpec((tm, d), lambda i, k: (i, 0)),    # prev layer-sum
            ],
            out_specs=[
                pl.BlockSpec((tm, d), lambda i, k: (i, 0)),    # hop result (bf16)
                pl.BlockSpec((tm, d), lambda i, k: (i, 0)),    # new layer-sum (f32)
            ],
            scratch_shapes=[pltpu.VMEM((tm, d), jnp.float32)],
        ),
        compiler_params=pltpu.CompilerParams(
            dimension_semantics=("parallel", "arbitrary"),
            vmem_limit_bytes=plan.vmem_limit,
        ),
        cost_estimate=cost,
        # Reuse the previous layer-sum HBM buffer for the new layer-sum.
        input_output_aliases={2: 1},
    )(graph_bf16, x_bf16, prev_f32)
    return y, acc


def gcn_propagate(graph_bf16, all_embed_f32, n_hops, plan):
    """sum_{l=0..n_hops} graph^l @ all_embed  (eval-mode GraphConv)."""
    acc = all_embed_f32                       # layer-0 term, f32
    x = all_embed_f32.astype(jnp.bfloat16)    # MXU operand for hop 1
    for _ in range(n_hops):
        x, acc = _gcn_hop(graph_bf16, x, acc, plan)
    return acc


# ----------------------------------------------------------------------------
# Kernel 2: batch-tiled fused row-gather (async-DMA ring) + BPR loss + L2 reg
# ----------------------------------------------------------------------------
def _loss_kernel(uid_ref, pid_ref, nid_ref, agg_ref, base_ref,
                 mf_ref, emb_ref,
                 u_buf, pos_buf, neg_buf, u0_buf, pos0_buf, neg0_buf, sem,
                 *, n_users, n_negs, decay, batch, tb):
    d = u_buf.shape[1]
    t = pl.program_id(0)
    nt = pl.num_programs(0)

    @pl.when(t == 0)
    def _():
        mf_ref[...] = jnp.zeros_like(mf_ref)
        emb_ref[...] = jnp.zeros_like(emb_ref)

    # ---- overlapped gather: double-buffered ring of per-row DMA bursts ------
    def _row_ids(r):
        g = jnp.minimum(t * tb + r, batch - 1)        # clamp padded rows
        uid = uid_ref[g]
        pid = n_users + pid_ref[g]
        return g, uid, pid

    def _start_row(r, slot):
        g, uid, pid = _row_ids(r)
        pltpu.make_async_copy(agg_ref.at[uid], u_buf.at[r], sem.at[slot, 0]).start()
        pltpu.make_async_copy(agg_ref.at[pid], pos_buf.at[r], sem.at[slot, 1]).start()
        pltpu.make_async_copy(base_ref.at[uid], u0_buf.at[r], sem.at[slot, 2]).start()
        pltpu.make_async_copy(base_ref.at[pid], pos0_buf.at[r], sem.at[slot, 3]).start()
        for n in range(n_negs):                       # static unroll, n_negs small
            nid = n_users + nid_ref[g * n_negs + n]
            off = n * d
            pltpu.make_async_copy(agg_ref.at[nid], neg_buf.at[r, pl.ds(off, d)],
                                  sem.at[slot, 4 + 2 * n]).start()
            pltpu.make_async_copy(base_ref.at[nid], neg0_buf.at[r, pl.ds(off, d)],
                                  sem.at[slot, 5 + 2 * n]).start()

    def _wait_row(r, slot):
        pltpu.make_async_copy(agg_ref.at[0], u_buf.at[r], sem.at[slot, 0]).wait()
        pltpu.make_async_copy(agg_ref.at[0], pos_buf.at[r], sem.at[slot, 1]).wait()
        pltpu.make_async_copy(base_ref.at[0], u0_buf.at[r], sem.at[slot, 2]).wait()
        pltpu.make_async_copy(base_ref.at[0], pos0_buf.at[r], sem.at[slot, 3]).wait()
        for n in range(n_negs):
            off = n * d
            pltpu.make_async_copy(agg_ref.at[0], neg_buf.at[r, pl.ds(off, d)],
                                  sem.at[slot, 4 + 2 * n]).wait()
            pltpu.make_async_copy(base_ref.at[0], neg0_buf.at[r, pl.ds(off, d)],
                                  sem.at[slot, 5 + 2 * n]).wait()

    _start_row(0, 0)

    @pl.loop(0, tb)
    def _(r):
        slot = r % 2

        @pl.when(r + 1 < tb)
        def _():
            _start_row(r + 1, 1 - slot)     # next row's copies in flight early
        _wait_row(r, slot)

    # ---- BPR loss + L2 regularizer over this batch tile ---------------------
    u, pos, neg = u_buf[...], pos_buf[...], neg_buf[...]
    u0, pos0, neg0 = u0_buf[...], pos0_buf[...], neg0_buf[...]

    rows = t * tb + lax.broadcasted_iota(jnp.int32, (tb, 1), 0)
    valid = (rows < batch).astype(jnp.float32)                      # (tb, 1)

    pos_scores = jnp.sum(u * pos, axis=1, keepdims=True)            # (tb, 1)

    # mean_n <u, neg_n> == <u, mean_n neg_n>   (no jnp.tile of u)
    neg_sum = jnp.zeros_like(u)
    for n in range(n_negs):
        neg_sum = neg_sum + neg[:, n * d:(n + 1) * d]
    neg_scores = jnp.sum(u * neg_sum, axis=1, keepdims=True) * (1.0 / n_negs)

    diff = pos_scores - neg_scores
    # numerically stable log_sigmoid(diff)
    log_sig = jnp.minimum(diff, 0.0) - jnp.log(1.0 + jnp.exp(-jnp.abs(diff)))
    mf_ref[...] += -jnp.sum(log_sig * valid, axis=0, keepdims=True)

    reg_rows = (jnp.sum(u0 * u0, axis=1, keepdims=True)
                + jnp.sum(pos0 * pos0, axis=1, keepdims=True)
                + jnp.sum(neg0 * neg0, axis=1, keepdims=True))      # (tb, 1)
    emb_ref[...] += jnp.sum(reg_rows * valid, axis=0, keepdims=True)

    @pl.when(t == nt - 1)
    def _():
        mf_ref[...] = mf_ref[...] * (1.0 / batch)
        emb_ref[...] = emb_ref[...] * (decay * 0.5 / batch)


def bpr_loss_call(user_ids, pos_ids, neg_ids_flat, agg, base_embed, *,
                  n_users, n_negs, decay, batch_tile=128):
    batch = user_ids.shape[0]
    d = agg.shape[1]
    tb = max(8, min(batch_tile, _round_up(batch, 8)))
    nt = -(-batch // tb)
    n_dma = 4 + 2 * n_negs

    kernel = functools.partial(_loss_kernel, n_users=n_users, n_negs=n_negs,
                               decay=decay, batch=batch, tb=tb)
    scalar = jax.ShapeDtypeStruct((1, 1), jnp.float32)
    mf, emb = pl.pallas_call(
        kernel,
        out_shape=(scalar, scalar),
        grid_spec=pltpu.PrefetchScalarGridSpec(
            num_scalar_prefetch=3,                       # uid / pid / nid in SMEM
            grid=(nt,),
            in_specs=[pl.BlockSpec(memory_space=pl.ANY),    # agg (HBM)
                      pl.BlockSpec(memory_space=pl.ANY)],   # base embed (HBM)
            out_specs=[pl.BlockSpec((1, 1), lambda t, uid, pid, nid: (0, 0)),
                       pl.BlockSpec((1, 1), lambda t, uid, pid, nid: (0, 0))],
            scratch_shapes=[
                pltpu.VMEM((tb, d), jnp.float32),             # u_gcn
                pltpu.VMEM((tb, d), jnp.float32),             # pos_gcn
                pltpu.VMEM((tb, n_negs * d), jnp.float32),    # neg_gcn (lane-dense)
                pltpu.VMEM((tb, d), jnp.float32),             # u0
                pltpu.VMEM((tb, d), jnp.float32),             # pos0
                pltpu.VMEM((tb, n_negs * d), jnp.float32),    # neg0 (lane-dense)
                pltpu.SemaphoreType.DMA((2, n_dma)),          # per-row DMA ring
            ],
        ),
        compiler_params=pltpu.CompilerParams(
            dimension_semantics=("arbitrary",)),
    )(user_ids, pos_ids, neg_ids_flat, agg, base_embed)
    return mf[0, 0], emb[0, 0]


# ----------------------------------------------------------------------------
# Recommender.forward glue
# ----------------------------------------------------------------------------
def recommender_forward(all_embed, graph_p, user, pos_item, neg_item, *,
                        n_users, n_hops, decay, plan, batch_tile=128):
    n_nodes, d = all_embed.shape
    batch, n_negs = neg_item.shape
    n_pad = plan.n_pad

    # Pad the (trainable) embeddings; the static graph was padded/cast once
    # outside the step in prepare_graph().
    embed_p = jnp.pad(all_embed, ((0, n_pad - n_nodes), (0, 0))).astype(jnp.float32)

    # GraphConv.forward (eval mode): layer-summed propagated embeddings.
    agg = gcn_propagate(graph_p, embed_p, n_hops, plan)              # (n_pad, D)

    mf_loss, emb_loss = bpr_loss_call(
        user.astype(jnp.int32),
        pos_item.astype(jnp.int32),
        neg_item.reshape(-1).astype(jnp.int32),
        agg, embed_p,
        n_users=n_users, n_negs=n_negs, decay=decay, batch_tile=batch_tile)
    return mf_loss + emb_loss, mf_loss, emb_loss


# ----------------------------------------------------------------------------
# Pure-JAX reference (for a sanity check)
# ----------------------------------------------------------------------------
def reference_forward(all_embed, graph, user, pos_item, neg_item, *,
                      n_users, n_hops, decay):
    batch, n_negs = neg_item.shape
    d = all_embed.shape[1]
    x = all_embed
    acc = x
    for _ in range(n_hops):
        x = jnp.dot(graph, x, preferred_element_type=jnp.float32)
        acc = acc + x
    user_gcn, entity_gcn = acc[:n_users], acc[n_users:]
    user_emb, entity_emb = all_embed[:n_users], all_embed[n_users:]
    neg_flat = neg_item.reshape(-1)
    u_e = user_gcn[user]
    pos_e = entity_gcn[pos_item]
    neg_e = entity_gcn[neg_flat].reshape(batch, n_negs, d)
    pos_scores = jnp.sum(u_e * pos_e, axis=1)
    neg_scores = jnp.sum(u_e[:, None, :] * neg_e, axis=2)
    mf = -jnp.mean(jax.nn.log_sigmoid(pos_scores - neg_scores.mean(axis=1)))
    reg = (jnp.sum(user_emb[user] ** 2) + jnp.sum(entity_emb[pos_item] ** 2)
           + jnp.sum(entity_emb[neg_flat] ** 2)) / 2.0
    emb = decay * reg / batch
    return mf + emb, mf, emb


# ----------------------------------------------------------------------------
if __name__ == "__main__":
    # synthetic "data_stat" / args
    n_users, n_items, n_tags = 100, 120, 30
    n_entities = n_items + n_tags          # 150
    n_nodes = n_users + n_entities         # 250 -> pads to 256
    emb_size = 128                         # args.dim
    context_hops = 2                       # args.context_hops
    decay = 1e-4                           # args.l2
    batch, n_negs = 12, 4

    key = jax.random.PRNGKey(0)
    k_emb, k_adj, k_u, k_p, k_n = jax.random.split(key, 5)

    # xavier_uniform_ init of all_embed (n_nodes, emb_size)
    bound = float(np.sqrt(6.0 / (n_nodes + emb_size)))
    all_embed = jax.random.uniform(k_emb, (n_nodes, emb_size),
                                   minval=-bound, maxval=bound,
                                   dtype=jnp.float32)

    # deterministic dense row-normalized adjacency (stands in for the sparse graph)
    mask = (jax.random.uniform(k_adj, (n_nodes, n_nodes)) < 0.05).astype(jnp.float32)
    deg = jnp.maximum(mask.sum(axis=1, keepdims=True), 1.0)
    graph = (mask / deg).astype(jnp.float32)

    user = jax.random.randint(k_u, (batch,), 0, n_users, dtype=jnp.int32)
    pos_item = jax.random.randint(k_p, (batch,), 0, n_entities, dtype=jnp.int32)
    neg_item = jax.random.randint(k_n, (batch, n_negs), 0, n_entities, dtype=jnp.int32)

    ref_total, ref_mf, ref_emb = reference_forward(
        all_embed, graph, user, pos_item, neg_item,
        n_users=n_users, n_hops=context_hops, decay=decay)

    # Toy tiles (128) so the (row, k) grid has >1 step per axis at n_pad=256; the
    # production defaults (tm=512, tk=1024, resident x) live in make_gcn_plan.
    # batch_tile=8 with batch=12 gives 2 batch tiles (exercises accumulation and
    # the padded-row masking of the loss kernel).  Both the resident-x and the
    # streamed-x (large-graph fallback) GCN paths are exercised.
    plans = [
        ("resident-x", make_gcn_plan(n_nodes, emb_size, tm=128, tk=128)),
        ("streamed-x", make_gcn_plan(n_nodes, emb_size, tm=128, tk=128,
                                     vmem_budget=0)),
    ]
    for tag, plan in plans:
        graph_p = prepare_graph(graph, n_nodes, plan.n_pad)   # hoisted out of the step
        fwd = jax.jit(functools.partial(
            recommender_forward, n_users=n_users, n_hops=context_hops,
            decay=decay, plan=plan, batch_tile=8))
        total, mf, emb = fwd(all_embed, graph_p, user, pos_item, neg_item)
        total = jax.block_until_ready(total)

        # sanity check against the pure-JAX f32 reference (bf16 graph -> loose tol)
        np.testing.assert_allclose(np.array(total), np.array(ref_total),
                                   rtol=5e-2, atol=2e-3, err_msg=tag)
        np.testing.assert_allclose(np.array(mf), np.array(ref_mf),
                                   rtol=5e-2, atol=2e-3, err_msg=tag)
        np.testing.assert_allclose(np.array(emb), np.array(ref_emb),
                                   rtol=5e-2, atol=1e-5, err_msg=tag)

    print("KERNEL_OK")
</pallas_src>

<mosaic_0001>
module attributes {stable_mosaic.version = 11 : i64} {
  func.func @_gcn_hop_kernel(%arg0: i32, %arg1: i32, %arg2: memref<128x128xbf16, #tpu.memory_space<vmem>>, %arg3: memref<256x128xbf16, #tpu.memory_space<vmem>>, %arg4: memref<128x128xf32, #tpu.memory_space<vmem>>, %arg5: memref<128x128xbf16, #tpu.memory_space<vmem>>, %arg6: memref<128x128xf32, #tpu.memory_space<vmem>>, %arg7: memref<128x128xf32, #tpu.memory_space<vmem>>) attributes {dimension_semantics = [#tpu.dimension_semantics<parallel>, #tpu.dimension_semantics<arbitrary>], iteration_bounds = array<i64: 2, 2>, scalar_prefetch = 0 : i64, scratch_operands = 1 : i64, tpu.core_type = #tpu.core_type<tc>, window_params = [{transform_indices = @transform_0, window_bounds = array<i64: 128, 128>}, {pipeline_mode = #tpu.pipeline_mode<synchronous>, transform_indices = @transform_1, window_bounds = array<i64: 256, 128>}, {transform_indices = @transform_2, window_bounds = array<i64: 128, 128>}, {transform_indices = @transform_3, window_bounds = array<i64: 128, 128>}, {transform_indices = @transform_4, window_bounds = array<i64: 128, 128>}]} {
    %c0_i32 = arith.constant 0 : i32
    %0 = arith.cmpi eq, %arg1, %c0_i32 : i32
    %1 = arith.extui %0 : i1 to i32
    %c0_i32_0 = arith.constant 0 : i32
    %2 = arith.cmpi ne, %1, %c0_i32_0 : i32
    scf.if %2 {
      %cst_8 = arith.constant 0.000000e+00 : f32
      %15 = vector.broadcast %cst_8 : f32 to vector<128x128xf32>
      %c0_9 = arith.constant 0 : index
      %c0_10 = arith.constant 0 : index
      %16 = vector.load %arg7[%c0_9, %c0_10] : memref<128x128xf32, #tpu.memory_space<vmem>>, vector<128x128xf32>
      tpu.vector_store %arg7[%c0_9, %c0_10], %15 {strides = array<i32>} : memref<128x128xf32, #tpu.memory_space<vmem>>, vector<128x128xf32>,
    } else {
    }
    %c128_i32 = arith.constant 128 : i32
    %3 = arith.muli %arg1, %c128_i32 : i32
    %4 = tpu.assume_multiple %3, 128 : i32
    %5 = arith.index_cast %4 : i32 to index
    %c0 = arith.constant 0 : index
    %6 = vector.load %arg3[%5, %c0] : memref<256x128xbf16, #tpu.memory_space<vmem>>, vector<128x128xbf16>
    %c0_1 = arith.constant 0 : index
    %c0_2 = arith.constant 0 : index
    %7 = vector.load %arg7[%c0_1, %c0_2] : memref<128x128xf32, #tpu.memory_space<vmem>>, vector<128x128xf32>
    %c0_3 = arith.constant 0 : index
    %c0_4 = arith.constant 0 : index
    %8 = vector.load %arg2[%c0_3, %c0_4] : memref<128x128xbf16, #tpu.memory_space<vmem>>, vector<128x128xbf16>
    %cst = arith.constant dense<0.000000e+00> : vector<128x128xf32>
    %9 = tpu.matmul %8, %6, %cst {dimension_numbers = #tpu.dot_dimension_numbers<[1], [0], [0], [1], [0, 0, 1, 1], [], []>} : vector<128x128xbf16>, vector<128x128xbf16>, vector<128x128xf32> -> vector<128x128xf32>
    %10 = arith.addf %7, %9 : vector<128x128xf32>
    %c0_5 = arith.constant 0 : index
    %c0_6 = arith.constant 0 : index
    %11 = vector.load %arg7[%c0_5, %c0_6] : memref<128x128xf32, #tpu.memory_space<vmem>>, vector<128x128xf32>
    tpu.vector_store %arg7[%c0_5, %c0_6], %10 {strides = array<i32>} : memref<128x128xf32, #tpu.memory_space<vmem>>, vector<128x128xf32>,
    %c1_i32 = arith.constant 1 : i32
    %12 = arith.cmpi eq, %arg1, %c1_i32 : i32
    %13 = arith.extui %12 : i1 to i32
    %c0_i32_7 = arith.constant 0 : i32
    %14 = arith.cmpi ne, %13, %c0_i32_7 : i32
    scf.if %14 {
      %c0_8 = arith.constant 0 : index
      %c0_9 = arith.constant 0 : index
      %15 = vector.load %arg7[%c0_8, %c0_9] : memref<128x128xf32, #tpu.memory_space<vmem>>, vector<128x128xf32>
      %16 = arith.truncf %15 : vector<128x128xf32> to vector<128x128xbf16>
      %c0_10 = arith.constant 0 : index
      %c0_11 = arith.constant 0 : index
      %17 = vector.load %arg5[%c0_10, %c0_11] : memref<128x128xbf16, #tpu.memory_space<vmem>>, vector<128x128xbf16>
      tpu.vector_store %arg5[%c0_10, %c0_11], %16 {strides = array<i32>} : memref<128x128xbf16, #tpu.memory_space<vmem>>, vector<128x128xbf16>,
      %c0_12 = arith.constant 0 : index
      %c0_13 = arith.constant 0 : index
      %18 = vector.load %arg4[%c0_12, %c0_13] : memref<128x128xf32, #tpu.memory_space<vmem>>, vector<128x128xf32>
      %19 = arith.addf %18, %15 : vector<128x128xf32>
      %c0_14 = arith.constant 0 : index
      %c0_15 = arith.constant 0 : index
      %20 = vector.load %arg6[%c0_14, %c0_15] : memref<128x128xf32, #tpu.memory_space<vmem>>, vector<128x128xf32>
      tpu.vector_store %arg6[%c0_14, %c0_15], %19 {strides = array<i32>} : memref<128x128xf32, #tpu.memory_space<vmem>>, vector<128x128xf32>,
    } else {
    }
    return
  }
  func.func @transform_0(%arg0: i32, %arg1: i32) -> (i32, i32) {
    %c0_i32 = arith.constant 0 : i32
    return %arg0, %arg1 : i32, i32
  }
  func.func @transform_1(%arg0: i32, %arg1: i32) -> (i32, i32) {
    %c0_i32 = arith.constant 0 : i32
    %c0_i32_0 = arith.constant 0 : i32
    %c0_i32_1 = arith.constant 0 : i32
    return %c0_i32, %c0_i32_0 : i32, i32
  }
  func.func @transform_2(%arg0: i32, %arg1: i32) -> (i32, i32) {
    %c0_i32 = arith.constant 0 : i32
    %c0_i32_0 = arith.constant 0 : i32
    return %arg0, %c0_i32 : i32, i32
  }
  func.func @transform_3(%arg0: i32, %arg1: i32) -> (i32, i32) {
    %c0_i32 = arith.constant 0 : i32
    %c0_i32_0 = arith.constant 0 : i32
    return %arg0, %c0_i32 : i32, i32
  }
  func.func @transform_4(%arg0: i32, %arg1: i32) -> (i32, i32) {
    %c0_i32 = arith.constant 0 : i32
    %c0_i32_0 = arith.constant 0 : i32
    return %arg0, %c0_i32 : i32, i32
  }
}

module attributes {stable_mosaic.version = 11 : i64} {
  func.func @_gcn_hop_kernel(%arg0: i32, %arg1: i32, %arg2: memref<128x128xbf16, #tpu.memory_space<vmem>>, %arg3: memref<256x128xbf16, #tpu.memory_space<vmem>>, %arg4: memref<128x128xf32, #tpu.memory_space<vmem>>, %arg5: memref<128x128xbf16, #tpu.memory_space<vmem>>, %arg6: memref<128x128xf32, #tpu.memory_space<vmem>>, %arg7: memref<128x128xf32, #tpu.memory_space<vmem>>) attributes {dimension_semantics = [#tpu.dimension_semantics<parallel>, #tpu.dimension_semantics<arbitrary>], iteration_bounds = array<i64: 2, 2>, scalar_prefetch = 0 : i64, scratch_operands = 1 : i64, tpu.core_type = #tpu.core_type<tc>, window_params = [{transform_indices = @transform_0, window_bounds = array<i64: 128, 128>}, {pipeline_mode = #tpu.pipeline_mode<synchronous>, transform_indices = @transform_1, window_bounds = array<i64: 256, 128>}, {transform_indices = @transform_2, window_bounds = array<i64: 128, 128>}, {transform_indices = @transform_3, window_bounds = array<i64: 128, 128>}, {transform_indices = @transform_4, window_bounds = array<i64: 128, 128>}]} {
    %c0_i32 = arith.constant 0 : i32
    %0 = arith.cmpi eq, %arg1, %c0_i32 : i32
    %1 = arith.extui %0 : i1 to i32
    %c0_i32_0 = arith.constant 0 : i32
    %2 = arith.cmpi ne, %1, %c0_i32_0 : i32
    scf.if %2 {
      %cst_8 = arith.constant 0.000000e+00 : f32
      %15 = vector.broadcast %cst_8 : f32 to vector<128x128xf32>
      %c0_9 = arith.constant 0 : index
      %c0_10 = arith.constant 0 : index
      %16 = vector.load %arg7[%c0_9, %c0_10] : memref<128x128xf32, #tpu.memory_space<vmem>>, vector<128x128xf32>
      tpu.vector_store %arg7[%c0_9, %c0_10], %15 {strides = array<i32>} : memref<128x128xf32, #tpu.memory_space<vmem>>, vector<128x128xf32>,
    } else {
    }
    %c128_i32 = arith.constant 128 : i32
    %3 = arith.muli %arg1, %c128_i32 : i32
    %4 = tpu.assume_multiple %3, 128 : i32
    %5 = arith.index_cast %4 : i32 to index
    %c0 = arith.constant 0 : index
    %6 = vector.load %arg3[%5, %c0] : memref<256x128xbf16, #tpu.memory_space<vmem>>, vector<128x128xbf16>
    %c0_1 = arith.constant 0 : index
    %c0_2 = arith.constant 0 : index
    %7 = vector.load %arg7[%c0_1, %c0_2] : memref<128x128xf32, #tpu.memory_space<vmem>>, vector<128x128xf32>
    %c0_3 = arith.constant 0 : index
    %c0_4 = arith.constant 0 : index
    %8 = vector.load %arg2[%c0_3, %c0_4] : memref<128x128xbf16, #tpu.memory_space<vmem>>, vector<128x128xbf16>
    %cst = arith.constant dense<0.000000e+00> : vector<128x128xf32>
    %9 = tpu.matmul %8, %6, %cst {dimension_numbers = #tpu.dot_dimension_numbers<[1], [0], [0], [1], [0, 0, 1, 1], [], []>} : vector<128x128xbf16>, vector<128x128xbf16>, vector<128x128xf32> -> vector<128x128xf32>
    %10 = arith.addf %7, %9 : vector<128x128xf32>
    %c0_5 = arith.constant 0 : index
    %c0_6 = arith.constant 0 : index
    %11 = vector.load %arg7[%c0_5, %c0_6] : memref<128x128xf32, #tpu.memory_space<vmem>>, vector<128x128xf32>
    tpu.vector_store %arg7[%c0_5, %c0_6], %10 {strides = array<i32>} : memref<128x128xf32, #tpu.memory_space<vmem>>, vector<128x128xf32>,
    %c1_i32 = arith.constant 1 : i32
    %12 = arith.cmpi eq, %arg1, %c1_i32 : i32
    %13 = arith.extui %12 : i1 to i32
    %c0_i32_7 = arith.constant 0 : i32
    %14 = arith.cmpi ne, %13, %c0_i32_7 : i32
    scf.if %14 {
      %c0_8 = arith.constant 0 : index
      %c0_9 = arith.constant 0 : index
      %15 = vector.load %arg7[%c0_8, %c0_9] : memref<128x128xf32, #tpu.memory_space<vmem>>, vector<128x128xf32>
      %16 = arith.truncf %15 : vector<128x128xf32> to vector<128x128xbf16>
      %c0_10 = arith.constant 0 : index
      %c0_11 = arith.constant 0 : index
      %17 = vector.load %arg5[%c0_10, %c0_11] : memref<128x128xbf16, #tpu.memory_space<vmem>>, vector<128x128xbf16>
      tpu.vector_store %arg5[%c0_10, %c0_11], %16 {strides = array<i32>} : memref<128x128xbf16, #tpu.memory_space<vmem>>, vector<128x128xbf16>,
      %c0_12 = arith.constant 0 : index
      %c0_13 = arith.constant 0 : index
      %18 = vector.load %arg4[%c0_12, %c0_13] : memref<128x128xf32, #tpu.memory_space<vmem>>, vector<128x128xf32>
      %19 = arith.addf %18, %15 : vector<128x128xf32>
      %c0_14 = arith.constant 0 : index
      %c0_15 = arith.constant 0 : index
      %20 = vector.load %arg6[%c0_14, %c0_15] : memref<128x128xf32, #tpu.memory_space<vmem>>, vector<128x128xf32>
      tpu.vector_store %arg6[%c0_14, %c0_15], %19 {strides = array<i32>} : memref<128x128xf32, #tpu.memory_space<vmem>>, vector<128x128xf32>,
    } else {
    }
    return
  }
  func.func @transform_0(%arg0: i32, %arg1: i32) -> (i32, i32) {
    %c0_i32 = arith.constant 0 : i32
    return %arg0, %arg1 : i32, i32
  }
  func.func @transform_1(%arg0: i32, %arg1: i32) -> (i32, i32) {
    %c0_i32 = arith.constant 0 : i32
    %c0_i32_0 = arith.constant 0 : i32
    %c0_i32_1 = arith.constant 0 : i32
    return %c0_i32, %c0_i32_0 : i32, i32
  }
  func.func @transform_2(%arg0: i32, %arg1: i32) -> (i32, i32) {
    %c0_i32 = arith.constant 0 : i32
    %c0_i32_0 = arith.constant 0 : i32
    return %arg0, %c0_i32 : i32, i32
  }
  func.func @transform_3(%arg0: i32, %arg1: i32) -> (i32, i32) {
    %c0_i32 = arith.constant 0 : i32
    %c0_i32_0 = arith.constant 0 : i32
    return %arg0, %c0_i32 : i32, i32
  }
  func.func @transform_4(%arg0: i32, %arg1: i32) -> (i32, i32) {
    %c0_i32 = arith.constant 0 : i32
    %c0_i32_0 = arith.constant 0 : i32
    return %arg0, %c0_i32 : i32, i32
  }
}

module attributes {stable_mosaic.version = 11 : i64} {
  func.func @_loss_kernel(%arg0: i32, %arg1: memref<12xi32, #tpu.memory_space<smem>>, %arg2: memref<12xi32, #tpu.memory_space<smem>>, %arg3: memref<48xi32, #tpu.memory_space<smem>>, %arg4: memref<256x128xf32, #tpu.memory_space<any>>, %arg5: memref<256x128xf32, #tpu.memory_space<any>>, %arg6: memref<1x1xf32, #tpu.memory_space<vmem>>, %arg7: memref<1x1xf32, #tpu.memory_space<vmem>>, %arg8: memref<8x128xf32, #tpu.memory_space<vmem>>, %arg9: memref<8x128xf32, #tpu.memory_space<vmem>>, %arg10: memref<8x512xf32, #tpu.memory_space<vmem>>, %arg11: memref<8x128xf32, #tpu.memory_space<vmem>>, %arg12: memref<8x128xf32, #tpu.memory_space<vmem>>, %arg13: memref<8x512xf32, #tpu.memory_space<vmem>>, %arg14: memref<2x12x!tpu.dma_semaphore, #tpu.memory_space<semaphore_mem>>) attributes {dimension_semantics = [#tpu.dimension_semantics<arbitrary>], iteration_bounds = array<i64: 2>, scalar_prefetch = 3 : i64, scratch_operands = 7 : i64, tpu.core_type = #tpu.core_type<tc>, window_params = [{}, {}, {pipeline_mode = #tpu.pipeline_mode<synchronous>, transform_indices = @transform_2, window_bounds = array<i64: 1, 1>}, {pipeline_mode = #tpu.pipeline_mode<synchronous>, transform_indices = @transform_3, window_bounds = array<i64: 1, 1>}]} {
    %c0_i32 = arith.constant 0 : i32
    %0 = arith.cmpi eq, %arg0, %c0_i32 : i32
    %1 = arith.extui %0 : i1 to i32
    %c0_i32_0 = arith.constant 0 : i32
    %2 = arith.cmpi ne, %1, %c0_i32_0 : i32
    scf.if %2 {
      %cst_100 = arith.constant 0.000000e+00 : f32
      %174 = vector.broadcast %cst_100 : f32 to vector<1x1xf32>
      %c0_101 = arith.constant 0 : index
      %c0_102 = arith.constant 0 : index
      %175 = vector.load %arg6[%c0_101, %c0_102] : memref<1x1xf32, #tpu.memory_space<vmem>>, vector<1x1xf32>
      tpu.vector_store %arg6[%c0_101, %c0_102], %174 {strides = array<i32>} : memref<1x1xf32, #tpu.memory_space<vmem>>, vector<1x1xf32>,
      %cst_103 = arith.constant 0.000000e+00 : f32
      %176 = vector.broadcast %cst_103 : f32 to vector<1x1xf32>
      %c0_104 = arith.constant 0 : index
      %c0_105 = arith.constant 0 : index
      %177 = vector.load %arg7[%c0_104, %c0_105] : memref<1x1xf32, #tpu.memory_space<vmem>>, vector<1x1xf32>
      tpu.vector_store %arg7[%c0_104, %c0_105], %176 {strides = array<i32>} : memref<1x1xf32, #tpu.memory_space<vmem>>, vector<1x1xf32>,
    } else {
    }
    %c8_i32 = arith.constant 8 : i32
    %3 = arith.muli %arg0, %c8_i32 : i32
    %c0_i32_1 = arith.constant 0 : i32
    %4 = arith.addi %3, %c0_i32_1 : i32
    %c11_i32 = arith.constant 11 : i32
    %5 = arith.minsi %4, %c11_i32 : i32
    %6 = arith.index_cast %5 : i32 to index
    %7 = memref.load %arg1[%6] : memref<12xi32, #tpu.memory_space<smem>>
    %8 = arith.index_cast %5 : i32 to index
    %9 = memref.load %arg2[%8] : memref<12xi32, #tpu.memory_space<smem>>
    %c100_i32 = arith.constant 100 : i32
    %10 = arith.addi %c100_i32, %9 : i32
    %c0_i32_2 = arith.constant 0 : i32
    %c0_i32_3 = arith.constant 0 : i32
    %c0_i32_4 = arith.constant 0 : i32
    %c0_i32_5 = arith.constant 0 : i32
    %11 = tpu.memref_slice %arg4[%7, %c0_i32_5] : memref<256x128xf32, #tpu.memory_space<any>> -> memref<1x128xf32, #tpu.memory_space<any>>
    %12 = tpu.memref_squeeze %11 : memref<1x128xf32, #tpu.memory_space<any>> -> memref<128xf32, #tpu.memory_space<any>>
    %c0_i32_6 = arith.constant 0 : i32
    %13 = tpu.memref_slice %arg8[%c0_i32_2, %c0_i32_6] : memref<8x128xf32, #tpu.memory_space<vmem>> -> memref<1x128xf32, #tpu.memory_space<vmem>>
    %14 = tpu.memref_squeeze %13 : memref<1x128xf32, #tpu.memory_space<vmem>> -> memref<128xf32, #tpu.memory_space<vmem>>
    %15 = tpu.memref_slice %arg14[%c0_i32_3, %c0_i32_4] : memref<2x12x!tpu.dma_semaphore, #tpu.memory_space<semaphore_mem>> -> memref<1x1x!tpu.dma_semaphore, #tpu.memory_space<semaphore_mem>>
    %16 = tpu.memref_squeeze %15 : memref<1x1x!tpu.dma_semaphore, #tpu.memory_space<semaphore_mem>> -> memref<!tpu.dma_semaphore, #tpu.memory_space<semaphore_mem>>
    tpu.enqueue_dma source(%12 : memref<128xf32, #tpu.memory_space<any>>) target(%14 : memref<128xf32, #tpu.memory_space<vmem>>) target_semaphore(%16 : memref<!tpu.dma_semaphore, #tpu.memory_space<semaphore_mem>>)
    %c0_i32_7 = arith.constant 0 : i32
    %c0_i32_8 = arith.constant 0 : i32
    %c1_i32 = arith.constant 1 : i32
    %c0_i32_9 = arith.constant 0 : i32
    %17 = tpu.memref_slice %arg4[%10, %c0_i32_9] : memref<256x128xf32, #tpu.memory_space<any>> -> memref<1x128xf32, #tpu.memory_space<any>>
    %18 = tpu.memref_squeeze %17 : memref<1x128xf32, #tpu.memory_space<any>> -> memref<128xf32, #tpu.memory_space<any>>
    %c0_i32_10 = arith.constant 0 : i32
    %19 = tpu.memref_slice %arg9[%c0_i32_7, %c0_i32_10] : memref<8x128xf32, #tpu.memory_space<vmem>> -> memref<1x128xf32, #tpu.memory_space<vmem>>
    %20 = tpu.memref_squeeze %19 : memref<1x128xf32, #tpu.memory_space<vmem>> -> memref<128xf32, #tpu.memory_space<vmem>>
    %21 = tpu.memref_slice %arg14[%c0_i32_8, %c1_i32] : memref<2x12x!tpu.dma_semaphore, #tpu.memory_space<semaphore_mem>> -> memref<1x1x!tpu.dma_semaphore, #tpu.memory_space<semaphore_mem>>
    %22 = tpu.memref_squeeze %21 : memref<1x1x!tpu.dma_semaphore, #tpu.memory_space<semaphore_mem>> -> memref<!tpu.dma_semaphore, #tpu.memory_space<semaphore_mem>>
    tpu.enqueue_dma source(%18 : memref<128xf32, #tpu.memory_space<any>>) target(%20 : memref<128xf32, #tpu.memory_space<vmem>>) target_semaphore(%22 : memref<!tpu.dma_semaphore, #tpu.memory_space<semaphore_mem>>)
    %c0_i32_11 = arith.constant 0 : i32
    %c0_i32_12 = arith.constant 0 : i32
    %c2_i32 = arith.constant 2 : i32
    %c0_i32_13 = arith.constant 0 : i32
    %23 = tpu.memref_slice %arg5[%7, %c0_i32_13] : memref<256x128xf32, #tpu.memory_space<any>> -> memref<1x128xf32, #tpu.memory_space<any>>
    %24 = tpu.memref_squeeze %23 : memref<1x128xf32, #tpu.memory_space<any>> -> memref<128xf32, #tpu.memory_space<any>>
    %c0_i32_14 = arith.constant 0 : i32
    %25 = tpu.memref_slice %arg11[%c0_i32_11, %c0_i32_14] : memref<8x128xf32, #tpu.memory_space<vmem>> -> memref<1x128xf32, #tpu.memory_space<vmem>>
    %26 = tpu.memref_squeeze %25 : memref<1x128xf32, #tpu.memory_space<vmem>> -> memref<128xf32, #tpu.memory_space<vmem>>
    %27 = tpu.memref_slice %arg14[%c0_i32_12, %c2_i32] : memref<2x12x!tpu.dma_semaphore, #tpu.memory_space<semaphore_mem>> -> memref<1x1x!tpu.dma_semaphore, #tpu.memory_space<semaphore_mem>>
    %28 = tpu.memref_squeeze %27 : memref<1x1x!tpu.dma_semaphore, #tpu.memory_space<semaphore_mem>> -> memref<!tpu.dma_semaphore, #tpu.memory_space<semaphore_mem>>
    tpu.enqueue_dma source(%24 : memref<128xf32, #tpu.memory_space<any>>) target(%26 : memref<128xf32, #tpu.memory_space<vmem>>) target_semaphore(%28 : memref<!tpu.dma_semaphore, #tpu.memory_space<semaphore_mem>>)
    %c0_i32_15 = arith.constant 0 : i32
    %c0_i32_16 = arith.constant 0 : i32
    %c3_i32 = arith.constant 3 : i32
    %c0_i32_17 = arith.constant 0 : i32
    %29 = tpu.memref_slice %arg5[%10, %c0_i32_17] : memref<256x128xf32, #tpu.memory_space<any>> -> memref<1x128xf32, #tpu.memory_space<any>>
    %30 = tpu.memref_squeeze %29 : memref<1x128xf32, #tpu.memory_space<any>> -> memref<128xf32, #tpu.memory_space<any>>
    %c0_i32_18 = arith.constant 0 : i32
    %31 = tpu.memref_slice %arg12[%c0_i32_15, %c0_i32_18] : memref<8x128xf32, #tpu.memory_space<vmem>> -> memref<1x128xf32, #tpu.memory_space<vmem>>
    %32 = tpu.memref_squeeze %31 : memref<1x128xf32, #tpu.memory_space<vmem>> -> memref<128xf32, #tpu.memory_space<vmem>>
    %33 = tpu.memref_slice %arg14[%c0_i32_16, %c3_i32] : memref<2x12x!tpu.dma_semaphore, #tpu.memory_space<semaphore_mem>> -> memref<1x1x!tpu.dma_semaphore, #tpu.memory_space<semaphore_mem>>
    %34 = tpu.memref_squeeze %33 : memref<1x1x!tpu.dma_semaphore, #tpu.memory_space<semaphore_mem>> -> memref<!tpu.dma_semaphore, #tpu.memory_space<semaphore_mem>>
    tpu.enqueue_dma source(%30 : memref<128xf32, #tpu.memory_space<any>>) target(%32 : memref<128xf32, #tpu.memory_space<vmem>>) target_semaphore(%34 : memref<!tpu.dma_semaphore, #tpu.memory_space<semaphore_mem>>)
    %c4_i32 = arith.constant 4 : i32
    %35 = arith.muli %5, %c4_i32 : i32
    %c0_i32_19 = arith.constant 0 : i32
    %36 = arith.addi %35, %c0_i32_19 : i32
    %37 = arith.index_cast %36 : i32 to index
    %38 = memref.load %arg3[%37] : memref<48xi32, #tpu.memory_space<smem>>
    %c100_i32_20 = arith.constant 100 : i32
    %39 = arith.addi %c100_i32_20, %38 : i32
    %c0_i32_21 = arith.constant 0 : i32
    %c0_i32_22 = arith.constant 0 : i32
    %c4_i32_23 = arith.constant 4 : i32
    %c0_i32_24 = arith.constant 0 : i32
    %40 = tpu.memref_slice %arg4[%39, %c0_i32_24] : memref<256x128xf32, #tpu.memory_space<any>> -> memref<1x128xf32, #tpu.memory_space<any>>
    %41 = tpu.memref_squeeze %40 : memref<1x128xf32, #tpu.memory_space<any>> -> memref<128xf32, #tpu.memory_space<any>>
    %c0_i32_25 = arith.constant 0 : i32
    %42 = tpu.memref_slice %arg10[%c0_i32_21, %c0_i32_25] : memref<8x512xf32, #tpu.memory_space<vmem>> -> memref<1x128xf32, #tpu.memory_space<vmem>>
    %43 = tpu.memref_squeeze %42 : memref<1x128xf32, #tpu.memory_space<vmem>> -> memref<128xf32, #tpu.memory_space<vmem>>
    %44 = tpu.memref_slice %arg14[%c0_i32_22, %c4_i32_23] : memref<2x12x!tpu.dma_semaphore, #tpu.memory_space<semaphore_mem>> -> memref<1x1x!tpu.dma_semaphore, #tpu.memory_space<semaphore_mem>>
    %45 = tpu.memref_squeeze %44 : memref<1x1x!tpu.dma_semaphore, #tpu.memory_space<semaphore_mem>> -> memref<!tpu.dma_semaphore, #tpu.memory_space<semaphore_mem>>
    tpu.enqueue_dma source(%41 : memref<128xf32, #tpu.memory_space<any>>) target(%43 : memref<128xf32, #tpu.memory_space<vmem>>) target_semaphore(%45 : memref<!tpu.dma_semaphore, #tpu.memory_space<semaphore_mem>>)
    %c0_i32_26 = arith.constant 0 : i32
    %c0_i32_27 = arith.constant 0 : i32
    %c5_i32 = arith.constant 5 : i32
    %c0_i32_28 = arith.constant 0 : i32
    %46 = tpu.memref_slice %arg5[%39, %c0_i32_28] : memref<256x128xf32, #tpu.memory_space<any>> -> memref<1x128xf32, #tpu.memory_space<any>>
    %47 = tpu.memref_squeeze %46 : memref<1x128xf32, #tpu.memory_space<any>> -> memref<128xf32, #tpu.memory_space<any>>
    %c0_i32_29 = arith.constant 0 : i32
    %48 = tpu.memref_slice %arg13[%c0_i32_26, %c0_i32_29] : memref<8x512xf32, #tpu.memory_space<vmem>> -> memref<1x128xf32, #tpu.memory_space<vmem>>
    %49 = tpu.memref_squeeze %48 : memref<1x128xf32, #tpu.memory_space<vmem>> -> memref<128xf32, #tpu.memory_space<vmem>>
    %50 = tpu.memref_slice %arg14[%c0_i32_27, %c5_i32] : memref<2x12x!tpu.dma_semaphore, #tpu.memory_space<semaphore_mem>> -> memref<1x1x!tpu.dma_semaphore, #tpu.memory_space<semaphore_mem>>
    %51 = tpu.memref_squeeze %50 : memref<1x1x!tpu.dma_semaphore, #tpu.memory_space<semaphore_mem>> -> memref<!tpu.dma_semaphore, #tpu.memory_space<semaphore_mem>>
    tpu.enqueue_dma source(%47 : memref<128xf32, #tpu.memory_space<any>>) target(%49 : memref<128xf32, #tpu.memory_space<vmem>>) target_semaphore(%51 : memref<!tpu.dma_semaphore, #tpu.memory_space<semaphore_mem>>)
    %c4_i32_30 = arith.constant 4 : i32
    %52 = arith.muli %5, %c4_i32_30 : i32
    %c1_i32_31 = arith.constant 1 : i32
    %53 = arith.addi %52, %c1_i32_31 : i32
    %54 = arith.index_cast %53 : i32 to index
    %55 = memref.load %arg3[%54] : memref<48xi32, #tpu.memory_space<smem>>
    %c100_i32_32 = arith.constant 100 : i32
    %56 = arith.addi %c100_i32_32, %55 : i32
    %c0_i32_33 = arith.constant 0 : i32
    %c0_i32_34 = arith.constant 0 : i32
    %c6_i32 = arith.constant 6 : i32
    %c0_i32_35 = arith.constant 0 : i32
    %57 = tpu.memref_slice %arg4[%56, %c0_i32_35] : memref<256x128xf32, #tpu.memory_space<any>> -> memref<1x128xf32, #tpu.memory_space<any>>
    %58 = tpu.memref_squeeze %57 : memref<1x128xf32, #tpu.memory_space<any>> -> memref<128xf32, #tpu.memory_space<any>>
    %c128_i32 = arith.constant 128 : i32
    %59 = tpu.memref_slice %arg10[%c0_i32_33, %c128_i32] : memref<8x512xf32, #tpu.memory_space<vmem>> -> memref<1x128xf32, #tpu.memory_space<vmem>>
    %60 = tpu.memref_squeeze %59 : memref<1x128xf32, #tpu.memory_space<vmem>> -> memref<128xf32, #tpu.memory_space<vmem>>
    %61 = tpu.memref_slice %arg14[%c0_i32_34, %c6_i32] : memref<2x12x!tpu.dma_semaphore, #tpu.memory_space<semaphore_mem>> -> memref<1x1x!tpu.dma_semaphore, #tpu.memory_space<semaphore_mem>>
    %62 = tpu.memref_squeeze %61 : memref<1x1x!tpu.dma_semaphore, #tpu.memory_space<semaphore_mem>> -> memref<!tpu.dma_semaphore, #tpu.memory_space<semaphore_mem>>
    tpu.enqueue_dma source(%58 : memref<128xf32, #tpu.memory_space<any>>) target(%60 : memref<128xf32, #tpu.memory_space<vmem>>) target_semaphore(%62 : memref<!tpu.dma_semaphore, #tpu.memory_space<semaphore_mem>>)
    %c0_i32_36 = arith.constant 0 : i32
    %c0_i32_37 = arith.constant 0 : i32
    %c7_i32 = arith.constant 7 : i32
    %c0_i32_38 = arith.constant 0 : i32
    %63 = tpu.memref_slice %arg5[%56, %c0_i32_38] : memref<256x128xf32, #tpu.memory_space<any>> -> memref<1x128xf32, #tpu.memory_space<any>>
    %64 = tpu.memref_squeeze %63 : memref<1x128xf32, #tpu.memory_space<any>> -> memref<128xf32, #tpu.memory_space<any>>
    %c128_i32_39 = arith.constant 128 : i32
    %65 = tpu.memref_slice %arg13[%c0_i32_36, %c128_i32_39] : memref<8x512xf32, #tpu.memory_space<vmem>> -> memref<1x128xf32, #tpu.memory_space<vmem>>
    %66 = tpu.memref_squeeze %65 : memref<1x128xf32, #tpu.memory_space<vmem>> -> memref<128xf32, #tpu.memory_space<vmem>>
    %67 = tpu.memref_slice %arg14[%c0_i32_37, %c7_i32] : memref<2x12x!tpu.dma_semaphore, #tpu.memory_space<semaphore_mem>> -> memref<1x1x!tpu.dma_semaphore, #tpu.memory_space<semaphore_mem>>
    %68 = tpu.memref_squeeze %67 : memref<1x1x!tpu.dma_semaphore, #tpu.memory_space<semaphore_mem>> -> memref<!tpu.dma_semaphore, #tpu.memory_space<semaphore_mem>>
    tpu.enqueue_dma source(%64 : memref<128xf32, #tpu.memory_space<any>>) target(%66 : memref<128xf32, #tpu.memory_space<vmem>>) target_semaphore(%68 : memref<!tpu.dma_semaphore, #tpu.memory_space<semaphore_mem>>)
    %c4_i32_40 = arith.constant 4 : i32
    %69 = arith.muli %5, %c4_i32_40 : i32
    %c2_i32_41 = arith.constant 2 : i32
    %70 = arith.addi %69, %c2_i32_41 : i32
    %71 = arith.index_cast %70 : i32 to index
    %72 = memref.load %arg3[%71] : memref<48xi32, #tpu.memory_space<smem>>
    %c100_i32_42 = arith.constant 100 : i32
    %73 = arith.addi %c100_i32_42, %72 : i32
    %c0_i32_43 = arith.constant 0 : i32
    %c0_i32_44 = arith.constant 0 : i32
    %c8_i32_45 = arith.constant 8 : i32
    %c0_i32_46 = arith.constant 0 : i32
    %74 = tpu.memref_slice %arg4[%73, %c0_i32_46] : memref<256x128xf32, #tpu.memory_space<any>> -> memref<1x128xf32, #tpu.memory_space<any>>
    %75 = tpu.memref_squeeze %74 : memref<1x128xf32, #tpu.memory_space<any>> -> memref<128xf32, #tpu.memory_space<any>>
    %c256_i32 = arith.constant 256 : i32
    %76 = tpu.memref_slice %arg10[%c0_i32_43, %c256_i32] : memref<8x512xf32, #tpu.memory_space<vmem>> -> memref<1x128xf32, #tpu.memory_space<vmem>>
    %77 = tpu.memref_squeeze %76 : memref<1x128xf32, #tpu.memory_space<vmem>> -> memref<128xf32, #tpu.memory_space<vmem>>
    %78 = tpu.memref_slice %arg14[%c0_i32_44, %c8_i32_45] : memref<2x12x!tpu.dma_semaphore, #tpu.memory_space<semaphore_mem>> -> memref<1x1x!tpu.dma_semaphore, #tpu.memory_space<semaphore_mem>>
    %79 = tpu.memref_squeeze %78 : memref<1x1x!tpu.dma_semaphore, #tpu.memory_space<semaphore_mem>> -> memref<!tpu.dma_semaphore, #tpu.memory_space<semaphore_mem>>
    tpu.enqueue_dma source(%75 : memref<128xf32, #tpu.memory_space<any>>) target(%77 : memref<128xf32, #tpu.memory_space<vmem>>) target_semaphore(%79 : memref<!tpu.dma_semaphore, #tpu.memory_space<semaphore_mem>>)
    %c0_i32_47 = arith.constant 0 : i32
    %c0_i32_48 = arith.constant 0 : i32
    %c9_i32 = arith.constant 9 : i32
    %c0_i32_49 = arith.constant 0 : i32
    %80 = tpu.memref_slice %arg5[%73, %c0_i32_49] : memref<256x128xf32, #tpu.memory_space<any>> -> memref<1x128xf32, #tpu.memory_space<any>>
    %81 = tpu.memref_squeeze %80 : memref<1x128xf32, #tpu.memory_space<any>> -> memref<128xf32, #tpu.memory_space<any>>
    %c256_i32_50 = arith.constant 256 : i32
    %82 = tpu.memref_slice %arg13[%c0_i32_47, %c256_i32_50] : memref<8x512xf32, #tpu.memory_space<vmem>> -> memref<1x128xf32, #tpu.memory_space<vmem>>
    %83 = tpu.memref_squeeze %82 : memref<1x128xf32, #tpu.memory_space<vmem>> -> memref<128xf32, #tpu.memory_space<vmem>>
    %84 = tpu.memref_slice %arg14[%c0_i32_48, %c9_i32] : memref<2x12x!tpu.dma_semaphore, #tpu.memory_space<semaphore_mem>> -> memref<1x1x!tpu.dma_semaphore, #tpu.memory_space<semaphore_mem>>
    %85 = tpu.memref_squeeze %84 : memref<1x1x!tpu.dma_semaphore, #tpu.memory_space<semaphore_mem>> -> memref<!tpu.dma_semaphore, #tpu.memory_space<semaphore_mem>>
    tpu.enqueue_dma source(%81 : memref<128xf32, #tpu.memory_space<any>>) target(%83 : memref<128xf32, #tpu.memory_space<vmem>>) target_semaphore(%85 : memref<!tpu.dma_semaphore, #tpu.memory_space<semaphore_mem>>)
    %c4_i32_51 = arith.constant 4 : i32
    %86 = arith.muli %5, %c4_i32_51 : i32
    %c3_i32_52 = arith.constant 3 : i32
    %87 = arith.addi %86, %c3_i32_52 : i32
    %88 = arith.index_cast %87 : i32 to index
    %89 = memref.load %arg3[%88] : memref<48xi32, #tpu.memory_space<smem>>
    %c100_i32_53 = arith.constant 100 : i32
    %90 = arith.addi %c100_i32_53, %89 : i32
    %c0_i32_54 = arith.constant 0 : i32
    %c0_i32_55 = arith.constant 0 : i32
    %c10_i32 = arith.constant 10 : i32
    %c0_i32_56 = arith.constant 0 : i32
    %91 = tpu.memref_slice %arg4[%90, %c0_i32_56] : memref<256x128xf32, #tpu.memory_space<any>> -> memref<1x128xf32, #tpu.memory_space<any>>
    %92 = tpu.memref_squeeze %91 : memref<1x128xf32, #tpu.memory_space<any>> -> memref<128xf32, #tpu.memory_space<any>>
    %c384_i32 = arith.constant 384 : i32
    %93 = tpu.memref_slice %arg10[%c0_i32_54, %c384_i32] : memref<8x512xf32, #tpu.memory_space<vmem>> -> memref<1x128xf32, #tpu.memory_space<vmem>>
    %94 = tpu.memref_squeeze %93 : memref<1x128xf32, #tpu.memory_space<vmem>> -> memref<128xf32, #tpu.memory_space<vmem>>
    %95 = tpu.memref_slice %arg14[%c0_i32_55, %c10_i32] : memref<2x12x!tpu.dma_semaphore, #tpu.memory_space<semaphore_mem>> -> memref<1x1x!tpu.dma_semaphore, #tpu.memory_space<semaphore_mem>>
    %96 = tpu.memref_squeeze %95 : memref<1x1x!tpu.dma_semaphore, #tpu.memory_space<semaphore_mem>> -> memref<!tpu.dma_semaphore, #tpu.memory_space<semaphore_mem>>
    tpu.enqueue_dma source(%92 : memref<128xf32, #tpu.memory_space<any>>) target(%94 : memref<128xf32, #tpu.memory_space<vmem>>) target_semaphore(%96 : memref<!tpu.dma_semaphore, #tpu.memory_space<semaphore_mem>>)
    %c0_i32_57 = arith.constant 0 : i32
    %c0_i32_58 = arith.constant 0 : i32
    %c11_i32_59 = arith.constant 11 : i32
    %c0_i32_60 = arith.constant 0 : i32
    %97 = tpu.memref_slice %arg5[%90, %c0_i32_60] : memref<256x128xf32, #tpu.memory_space<any>> -> memref<1x128xf32, #tpu.memory_space<any>>
    %98 = tpu.memref_squeeze %97 : memref<1x128xf32, #tpu.memory_space<any>> -> memref<128xf32, #tpu.memory_space<any>>
    %c384_i32_61 = arith.constant 384 : i32
    %99 = tpu.memref_slice %arg13[%c0_i32_57, %c384_i32_61] : memref<8x512xf32, #tpu.memory_space<vmem>> -> memref<1x128xf32, #tpu.memory_space<vmem>>
    %100 = tpu.memref_squeeze %99 : memref<1x128xf32, #tpu.memory_space<vmem>> -> memref<128xf32, #tpu.memory_space<vmem>>
    %101 = tpu.memref_slice %arg14[%c0_i32_58, %c11_i32_59] : memref<2x12x!tpu.dma_semaphore, #tpu.memory_space<semaphore_mem>> -> memref<1x1x!tpu.dma_semaphore, #tpu.memory_space<semaphore_mem>>
    %102 = tpu.memref_squeeze %101 : memref<1x1x!tpu.dma_semaphore, #tpu.memory_space<semaphore_mem>> -> memref<!tpu.dma_semaphore, #tpu.memory_space<semaphore_mem>>
    tpu.enqueue_dma source(%98 : memref<128xf32, #tpu.memory_space<any>>) target(%100 : memref<128xf32, #tpu.memory_space<vmem>>) target_semaphore(%102 : memref<!tpu.dma_semaphore, #tpu.memory_space<semaphore_mem>>)
    %c0_i32_62 = arith.constant 0 : i32
    %c8_i32_63 = arith.constant 8 : i32
    %103 = arith.addi %c0_i32_62, %c8_i32_63 : i32
    %c1_i32_64 = arith.constant 1 : i32
    scf.for %arg15 = %c0_i32_62 to %103 step %c1_i32_64  : i32 {
      %c1_i32_100 = arith.constant 1 : i32
      %174 = arith.muli %arg15, %c1_i32_100 : i32
      %c0_i32_101 = arith.constant 0 : i32
      %175 = arith.addi %c0_i32_101, %174 : i32
      %c2_i32_102 = arith.constant 2 : i32
      %c0_i32_103 = arith.constant 0 : i32
      %176 = arith.cmpi eq, %c2_i32_102, %c0_i32_103 : i32
      %c1_i32_104 = arith.constant 1 : i32
      %177 = arith.select %176, %c1_i32_104, %c2_i32_102 : i32
      %178 = arith.remsi %175, %177 : i32
      %c0_i32_105 = arith.constant 0 : i32
      %179 = arith.cmpi ne, %178, %c0_i32_105 : i32
      %c0_i32_106 = arith.constant 0 : i32
      %180 = arith.cmpi slt, %178, %c0_i32_106 : i32
      %c0_i32_107 = arith.constant 0 : i32
      %181 = arith.cmpi slt, %177, %c0_i32_107 : i32
      %182 = arith.xori %180, %181 : i1
      %183 = arith.andi %182, %179 : i1
      %184 = arith.addi %178, %177 : i32
      %185 = arith.select %183, %184, %178 : i32
      %c1_i32_108 = arith.constant 1 : i32
      %186 = arith.addi %175, %c1_i32_108 : i32
      %c8_i32_109 = arith.constant 8 : i32
      %187 = arith.cmpi slt, %186, %c8_i32_109 : i32
      %188 = arith.extui %187 : i1 to i32
      %c0_i32_110 = arith.constant 0 : i32
      %189 = arith.cmpi ne, %188, %c0_i32_110 : i32
      scf.if %189 {
        %c1_i32_159 = arith.constant 1 : i32
        %262 = arith.addi %175, %c1_i32_159 : i32
        %c1_i32_160 = arith.constant 1 : i32
        %263 = arith.subi %c1_i32_160, %185 : i32
        %c8_i32_161 = arith.constant 8 : i32
        %264 = arith.muli %arg0, %c8_i32_161 : i32
        %265 = arith.addi %264, %262 : i32
        %c11_i32_162 = arith.constant 11 : i32
        %266 = arith.minsi %265, %c11_i32_162 : i32
        %267 = arith.index_cast %266 : i32 to index
        %268 = memref.load %arg1[%267] : memref<12xi32, #tpu.memory_space<smem>>
        %269 = arith.index_cast %266 : i32 to index
        %270 = memref.load %arg2[%269] : memref<12xi32, #tpu.memory_space<smem>>
        %c100_i32_163 = arith.constant 100 : i32
        %271 = arith.addi %c100_i32_163, %270 : i32
        %c0_i32_164 = arith.constant 0 : i32
        %c0_i32_165 = arith.constant 0 : i32
        %272 = tpu.memref_slice %arg4[%268, %c0_i32_165] : memref<256x128xf32, #tpu.memory_space<any>> -> memref<1x128xf32, #tpu.memory_space<any>>
        %273 = tpu.memref_squeeze %272 : memref<1x128xf32, #tpu.memory_space<any>> -> memref<128xf32, #tpu.memory_space<any>>
        %c0_i32_166 = arith.constant 0 : i32
        %274 = tpu.memref_slice %arg8[%262, %c0_i32_166] : memref<8x128xf32, #tpu.memory_space<vmem>> -> memref<1x128xf32, #tpu.memory_space<vmem>>
        %275 = tpu.memref_squeeze %274 : memref<1x128xf32, #tpu.memory_space<vmem>> -> memref<128xf32, #tpu.memory_space<vmem>>
        %276 = tpu.memref_slice %arg14[%263, %c0_i32_164] : memref<2x12x!tpu.dma_semaphore, #tpu.memory_space<semaphore_mem>> -> memref<1x1x!tpu.dma_semaphore, #tpu.memory_space<semaphore_mem>>
        %277 = tpu.memref_squeeze %276 : memref<1x1x!tpu.dma_semaphore, #tpu.memory_space<semaphore_mem>> -> memref<!tpu.dma_semaphore, #tpu.memory_space<semaphore_mem>>
        tpu.enqueue_dma source(%273 : memref<128xf32, #tpu.memory_space<any>>) target(%275 : memref<128xf32, #tpu.memory_space<vmem>>) target_semaphore(%277 : memref<!tpu.dma_semaphore, #tpu.memory_space<semaphore_mem>>)
        %c1_i32_167 = arith.constant 1 : i32
        %c0_i32_168 = arith.constant 0 : i32
        %278 = tpu.memref_slice %arg4[%271, %c0_i32_168] : memref<256x128xf32, #tpu.memory_space<any>> -> memref<1x128xf32, #tpu.memory_space<any>>
        %279 = tpu.memref_squeeze %278 : memref<1x128xf32, #tpu.memory_space<any>> -> memref<128xf32, #tpu.memory_space<any>>
        %c0_i32_169 = arith.constant 0 : i32
        %280 = tpu.memref_slice %arg9[%262, %c0_i32_169] : memref<8x128xf32, #tpu.memory_space<vmem>> -> memref<1x128xf32, #tpu.memory_space<vmem>>
        %281 = tpu.memref_squeeze %280 : memref<1x128xf32, #tpu.memory_space<vmem>> -> memref<128xf32, #tpu.memory_space<vmem>>
        %282 = tpu.memref_slice %arg14[%263, %c1_i32_167] : memref<2x12x!tpu.dma_semaphore, #tpu.memory_space<semaphore_mem>> -> memref<1x1x!tpu.dma_semaphore, #tpu.memory_space<semaphore_mem>>
        %283 = tpu.memref_squeeze %282 : memref<1x1x!tpu.dma_semaphore, #tpu.memory_space<semaphore_mem>> -> memref<!tpu.dma_semaphore, #tpu.memory_space<semaphore_mem>>
        tpu.enqueue_dma source(%279 : memref<128xf32, #tpu.memory_space<any>>) target(%281 : memref<128xf32, #tpu.memory_space<vmem>>) target_semaphore(%283 : memref<!tpu.dma_semaphore, #tpu.memory_space<semaphore_mem>>)
        %c2_i32_170 = arith.constant 2 : i32
        %c0_i32_171 = arith.constant 0 : i32
        %284 = tpu.memref_slice %arg5[%268, %c0_i32_171] : memref<256x128xf32, #tpu.memory_space<any>> -> memref<1x128xf32, #tpu.memory_space<any>>
        %285 = tpu.memref_squeeze %284 : memref<1x128xf32, #tpu.memory_space<any>> -> memref<128xf32, #tpu.memory_space<any>>
        %c0_i32_172 = arith.constant 0 : i32
        %286 = tpu.memref_slice %arg11[%262, %c0_i32_172] : memref<8x128xf32, #tpu.memory_space<vmem>> -> memref<1x128xf32, #tpu.memory_space<vmem>>
        %287 = tpu.memref_squeeze %286 : memref<1x128xf32, #tpu.memory_space<vmem>> -> memref<128xf32, #tpu.memory_space<vmem>>
        %288 = tpu.memref_slice %arg14[%263, %c2_i32_170] : memref<2x12x!tpu.dma_semaphore, #tpu.memory_space<semaphore_mem>> -> memref<1x1x!tpu.dma_semaphore, #tpu.memory_space<semaphore_mem>>
        %289 = tpu.memref_squeeze %288 : memref<1x1x!tpu.dma_semaphore, #tpu.memory_space<semaphore_mem>> -> memref<!tpu.dma_semaphore, #tpu.memory_space<semaphore_mem>>
        tpu.enqueue_dma source(%285 : memref<128xf32, #tpu.memory_space<any>>) target(%287 : memref<128xf32, #tpu.memory_space<vmem>>) target_semaphore(%289 : memref<!tpu.dma_semaphore, #tpu.memory_space<semaphore_mem>>)
        %c3_i32_173 = arith.constant 3 : i32
        %c0_i32_174 = arith.constant 0 : i32
        %290 = tpu.memref_slice %arg5[%271, %c0_i32_174] : memref<256x128xf32, #tpu.memory_space<any>> -> memref<1x128xf32, #tpu.memory_space<any>>
        %291 = tpu.memref_squeeze %290 : memref<1x128xf32, #tpu.memory_space<any>> -> memref<128xf32, #tpu.memory_space<any>>
        %c0_i32_175 = arith.constant 0 : i32
        %292 = tpu.memref_slice %arg12[%262, %c0_i32_175] : memref<8x128xf32, #tpu.memory_space<vmem>> -> memref<1x128xf32, #tpu.memory_space<vmem>>
        %293 = tpu.memref_squeeze %292 : memref<1x128xf32, #tpu.memory_space<vmem>> -> memref<128xf32, #tpu.memory_space<vmem>>
        %294 = tpu.memref_slice %arg14[%263, %c3_i32_173] : memref<2x12x!tpu.dma_semaphore, #tpu.memory_space<semaphore_mem>> -> memref<1x1x!tpu.dma_semaphore, #tpu.memory_space<semaphore_mem>>
        %295 = tpu.memref_squeeze %294 : memref<1x1x!tpu.dma_semaphore, #tpu.memory_space<semaphore_mem>> -> memref<!tpu.dma_semaphore, #tpu.memory_space<semaphore_mem>>
        tpu.enqueue_dma source(%291 : memref<128xf32, #tpu.memory_space<any>>) target(%293 : memref<128xf32, #tpu.memory_space<vmem>>) target_semaphore(%295 : memref<!tpu.dma_semaphore, #tpu.memory_space<semaphore_mem>>)
        %c4_i32_176 = arith.constant 4 : i32
        %296 = arith.muli %266, %c4_i32_176 : i32
        %c0_i32_177 = arith.constant 0 : i32
        %297 = arith.addi %296, %c0_i32_177 : i32
        %298 = arith.index_cast %297 : i32 to index
        %299 = memref.load %arg3[%298] : memref<48xi32, #tpu.memory_space<smem>>
        %c100_i32_178 = arith.constant 100 : i32
        %300 = arith.addi %c100_i32_178, %299 : i32
        %c4_i32_179 = arith.constant 4 : i32
        %c0_i32_180 = arith.constant 0 : i32
        %301 = tpu.memref_slice %arg4[%300, %c0_i32_180] : memref<256x128xf32, #tpu.memory_space<any>> -> memref<1x128xf32, #tpu.memory_space<any>>
        %302 = tpu.memref_squeeze %301 : memref<1x128xf32, #tpu.memory_space<any>> -> memref<128xf32, #tpu.memory_space<any>>
        %c0_i32_181 = arith.constant 0 : i32
        %303 = tpu.memref_slice %arg10[%262, %c0_i32_181] : memref<8x512xf32, #tpu.memory_space<vmem>> -> memref<1x128xf32, #tpu.memory_space<vmem>>
        %304 = tpu.memref_squeeze %303 : memref<1x128xf32, #tpu.memory_space<vmem>> -> memref<128xf32, #tpu.memory_space<vmem>>
        %305 = tpu.memref_slice %arg14[%263, %c4_i32_179] : memref<2x12x!tpu.dma_semaphore, #tpu.memory_space<semaphore_mem>> -> memref<1x1x!tpu.dma_semaphore, #tpu.memory_space<semaphore_mem>>
        %306 = tpu.memref_squeeze %305 : memref<1x1x!tpu.dma_semaphore, #tpu.memory_space<semaphore_mem>> -> memref<!tpu.dma_semaphore, #tpu.memory_space<semaphore_mem>>
        tpu.enqueue_dma source(%302 : memref<128xf32, #tpu.memory_space<any>>) target(%304 : memref<128xf32, #tpu.memory_space<vmem>>) target_semaphore(%306 : memref<!tpu.dma_semaphore, #tpu.memory_space<semaphore_mem>>)
        %c5_i32_182 = arith.constant 5 : i32
        %c0_i32_183 = arith.constant 0 : i32
        %307 = tpu.memref_slice %arg5[%300, %c0_i32_183] : memref<256x128xf32, #tpu.memory_space<any>> -> memref<1x128xf32, #tpu.memory_space<any>>
        %308 = tpu.memref_squeeze %307 : memref<1x128xf32, #tpu.memory_space<any>> -> memref<128xf32, #tpu.memory_space<any>>
        %c0_i32_184 = arith.constant 0 : i32
        %309 = tpu.memref_slice %arg13[%262, %c0_i32_184] : memref<8x512xf32, #tpu.memory_space<vmem>> -> memref<1x128xf32, #tpu.memory_space<vmem>>
        %310 = tpu.memref_squeeze %309 : memref<1x128xf32, #tpu.memory_space<vmem>> -> memref<128xf32, #tpu.memory_space<vmem>>
        %311 = tpu.memref_slice %arg14[%263, %c5_i32_182] : memref<2x12x!tpu.dma_semaphore, #tpu.memory_space<semaphore_mem>> -> memref<1x1x!tpu.dma_semaphore, #tpu.memory_space<semaphore_mem>>
        %312 = tpu.memref_squeeze %311 : memref<1x1x!tpu.dma_semaphore, #tpu.memory_space<semaphore_mem>> -> memref<!tpu.dma_semaphore, #tpu.memory_space<semaphore_mem>>
        tpu.enqueue_dma source(%308 : memref<128xf32, #tpu.memory_space<any>>) target(%310 : memref<128xf32, #tpu.memory_space<vmem>>) target_semaphore(%312 : memref<!tpu.dma_semaphore, #tpu.memory_space<semaphore_mem>>)
        %c4_i32_185 = arith.constant 4 : i32
        %313 = arith.muli %266, %c4_i32_185 : i32
        %c1_i32_186 = arith.constant 1 : i32
        %314 = arith.addi %313, %c1_i32_186 : i32
        %315 = arith.index_cast %314 : i32 to index
        %316 = memref.load %arg3[%315] : memref<48xi32, #tpu.memory_space<smem>>
        %c100_i32_187 = arith.constant 100 : i32
        %317 = arith.addi %c100_i32_187, %316 : i32
        %c6_i32_188 = arith.constant 6 : i32
        %c0_i32_189 = arith.constant 0 : i32
        %318 = tpu.memref_slice %arg4[%317, %c0_i32_189] : memref<256x128xf32, #tpu.memory_space<any>> -> memref<1x128xf32, #tpu.memory_space<any>>
        %319 = tpu.memref_squeeze %318 : memref<1x128xf32, #tpu.memory_space<any>> -> memref<128xf32, #tpu.memory_space<any>>
        %c128_i32_190 = arith.constant 128 : i32
        %320 = tpu.memref_slice %arg10[%262, %c128_i32_190] : memref<8x512xf32, #tpu.memory_space<vmem>> -> memref<1x128xf32, #tpu.memory_space<vmem>>
        %321 = tpu.memref_squeeze %320 : memref<1x128xf32, #tpu.memory_space<vmem>> -> memref<128xf32, #tpu.memory_space<vmem>>
        %322 = tpu.memref_slice %arg14[%263, %c6_i32_188] : memref<2x12x!tpu.dma_semaphore, #tpu.memory_space<semaphore_mem>> -> memref<1x1x!tpu.dma_semaphore, #tpu.memory_space<semaphore_mem>>
        %323 = tpu.memref_squeeze %322 : memref<1x1x!tpu.dma_semaphore, #tpu.memory_space<semaphore_mem>> -> memref<!tpu.dma_semaphore, #tpu.memory_space<semaphore_mem>>
        tpu.enqueue_dma source(%319 : memref<128xf32, #tpu.memory_space<any>>) target(%321 : memref<128xf32, #tpu.memory_space<vmem>>) target_semaphore(%323 : memref<!tpu.dma_semaphore, #tpu.memory_space<semaphore_mem>>)
        %c7_i32_191 = arith.constant 7 : i32
        %c0_i32_192 = arith.constant 0 : i32
        %324 = tpu.memref_slice %arg5[%317, %c0_i32_192] : memref<256x128xf32, #tpu.memory_space<any>> -> memref<1x128xf32, #tpu.memory_space<any>>
        %325 = tpu.memref_squeeze %324 : memref<1x128xf32, #tpu.memory_space<any>> -> memref<128xf32, #tpu.memory_space<any>>
        %c128_i32_193 = arith.constant 128 : i32
        %326 = tpu.memref_slice %arg13[%262, %c128_i32_193] : memref<8x512xf32, #tpu.memory_space<vmem>> -> memref<1x128xf32, #tpu.memory_space<vmem>>
        %327 = tpu.memref_squeeze %326 : memref<1x128xf32, #tpu.memory_space<vmem>> -> memref<128xf32, #tpu.memory_space<vmem>>
        %328 = tpu.memref_slice %arg14[%263, %c7_i32_191] : memref<2x12x!tpu.dma_semaphore, #tpu.memory_space<semaphore_mem>> -> memref<1x1x!tpu.dma_semaphore, #tpu.memory_space<semaphore_mem>>
        %329 = tpu.memref_squeeze %328 : memref<1x1x!tpu.dma_semaphore, #tpu.memory_space<semaphore_mem>> -> memref<!tpu.dma_semaphore, #tpu.memory_space<semaphore_mem>>
        tpu.enqueue_dma source(%325 : memref<128xf32, #tpu.memory_space<any>>) target(%327 : memref<128xf32, #tpu.memory_space<vmem>>) target_semaphore(%329 : memref<!tpu.dma_semaphore, #tpu.memory_space<semaphore_mem>>)
        %c4_i32_194 = arith.constant 4 : i32
        %330 = arith.muli %266, %c4_i32_194 : i32
        %c2_i32_195 = arith.constant 2 : i32
        %331 = arith.addi %330, %c2_i32_195 : i32
        %332 = arith.index_cast %331 : i32 to index
        %333 = memref.load %arg3[%332] : memref<48xi32, #tpu.memory_space<smem>>
        %c100_i32_196 = arith.constant 100 : i32
        %334 = arith.addi %c100_i32_196, %333 : i32
        %c8_i32_197 = arith.constant 8 : i32
        %c0_i32_198 = arith.constant 0 : i32
        %335 = tpu.memref_slice %arg4[%334, %c0_i32_198] : memref<256x128xf32, #tpu.memory_space<any>> -> memref<1x128xf32, #tpu.memory_space<any>>
        %336 = tpu.memref_squeeze %335 : memref<1x128xf32, #tpu.memory_space<any>> -> memref<128xf32, #tpu.memory_space<any>>
        %c256_i32_199 = arith.constant 256 : i32
        %337 = tpu.memref_slice %arg10[%262, %c256_i32_199] : memref<8x512xf32, #tpu.memory_space<vmem>> -> memref<1x128xf32, #tpu.memory_space<vmem>>
        %338 = tpu.memref_squeeze %337 : memref<1x128xf32, #tpu.memory_space<vmem>> -> memref<128xf32, #tpu.memory_space<vmem>>
        %339 = tpu.memref_slice %arg14[%263, %c8_i32_197] : memref<2x12x!tpu.dma_semaphore, #tpu.memory_space<semaphore_mem>> -> memref<1x1x!tpu.dma_semaphore, #tpu.memory_space<semaphore_mem>>
        %340 = tpu.memref_squeeze %339 : memref<1x1x!tpu.dma_semaphore, #tpu.memory_space<semaphore_mem>> -> memref<!tpu.dma_semaphore, #tpu.memory_space<semaphore_mem>>
        tpu.enqueue_dma source(%336 : memref<128xf32, #tpu.memory_space<any>>) target(%338 : memref<128xf32, #tpu.memory_space<vmem>>) target_semaphore(%340 : memref<!tpu.dma_semaphore, #tpu.memory_space<semaphore_mem>>)
        %c9_i32_200 = arith.constant 9 : i32
        %c0_i32_201 = arith.constant 0 : i32
        %341 = tpu.memref_slice %arg5[%334, %c0_i32_201] : memref<256x128xf32, #tpu.memory_space<any>> -> memref<1x128xf32, #tpu.memory_space<any>>
        %342 = tpu.memref_squeeze %341 : memref<1x128xf32, #tpu.memory_space<any>> -> memref<128xf32, #tpu.memory_space<any>>
        %c256_i32_202 = arith.constant 256 : i32
        %343 = tpu.memref_slice %arg13[%262, %c256_i32_202] : memref<8x512xf32, #tpu.memory_space<vmem>> -> memref<1x128xf32, #tpu.memory_space<vmem>>
        %344 = tpu.memref_squeeze %343 : memref<1x128xf32, #tpu.memory_space<vmem>> -> memref<128xf32, #tpu.memory_space<vmem>>
        %345 = tpu.memref_slice %arg14[%263, %c9_i32_200] : memref<2x12x!tpu.dma_semaphore, #tpu.memory_space<semaphore_mem>> -> memref<1x1x!tpu.dma_semaphore, #tpu.memory_space<semaphore_mem>>
        %346 = tpu.memref_squeeze %345 : memref<1x1x!tpu.dma_semaphore, #tpu.memory_space<semaphore_mem>> -> memref<!tpu.dma_semaphore, #tpu.memory_space<semaphore_mem>>
        tpu.enqueue_dma source(%342 : memref<128xf32, #tpu.memory_space<any>>) target(%344 : memref<128xf32, #tpu.memory_space<vmem>>) target_semaphore(%346 : memref<!tpu.dma_semaphore, #tpu.memory_space<semaphore_mem>>)
        %c4_i32_203 = arith.constant 4 : i32
        %347 = arith.muli %266, %c4_i32_203 : i32
        %c3_i32_204 = arith.constant 3 : i32
        %348 = arith.addi %347, %c3_i32_204 : i32
        %349 = arith.index_cast %348 : i32 to index
        %350 = memref.load %arg3[%349] : memref<48xi32, #tpu.memory_space<smem>>
        %c100_i32_205 = arith.constant 100 : i32
        %351 = arith.addi %c100_i32_205, %350 : i32
        %c10_i32_206 = arith.constant 10 : i32
        %c0_i32_207 = arith.constant 0 : i32
        %352 = tpu.memref_slice %arg4[%351, %c0_i32_207] : memref<256x128xf32, #tpu.memory_space<any>> -> memref<1x128xf32, #tpu.memory_space<any>>
        %353 = tpu.memref_squeeze %352 : memref<1x128xf32, #tpu.memory_space<any>> -> memref<128xf32, #tpu.memory_space<any>>
        %c384_i32_208 = arith.constant 384 : i32
        %354 = tpu.memref_slice %arg10[%262, %c384_i32_208] : memref<8x512xf32, #tpu.memory_space<vmem>> -> memref<1x128xf32, #tpu.memory_space<vmem>>
        %355 = tpu.memref_squeeze %354 : memref<1x128xf32, #tpu.memory_space<vmem>> -> memref<128xf32, #tpu.memory_space<vmem>>
        %356 = tpu.memref_slice %arg14[%263, %c10_i32_206] : memref<2x12x!tpu.dma_semaphore, #tpu.memory_space<semaphore_mem>> -> memref<1x1x!tpu.dma_semaphore, #tpu.memory_space<semaphore_mem>>
        %357 = tpu.memref_squeeze %356 : memref<1x1x!tpu.dma_semaphore, #tpu.memory_space<semaphore_mem>> -> memref<!tpu.dma_semaphore, #tpu.memory_space<semaphore_mem>>
        tpu.enqueue_dma source(%353 : memref<128xf32, #tpu.memory_space<any>>) target(%355 : memref<128xf32, #tpu.memory_space<vmem>>) target_semaphore(%357 : memref<!tpu.dma_semaphore, #tpu.memory_space<semaphore_mem>>)
        %c11_i32_209 = arith.constant 11 : i32
        %c0_i32_210 = arith.constant 0 : i32
        %358 = tpu.memref_slice %arg5[%351, %c0_i32_210] : memref<256x128xf32, #tpu.memory_space<any>> -> memref<1x128xf32, #tpu.memory_space<any>>
        %359 = tpu.memref_squeeze %358 : memref<1x128xf32, #tpu.memory_space<any>> -> memref<128xf32, #tpu.memory_space<any>>
        %c384_i32_211 = arith.constant 384 : i32
        %360 = tpu.memref_slice %arg13[%262, %c384_i32_211] : memref<8x512xf32, #tpu.memory_space<vmem>> -> memref<1x128xf32, #tpu.memory_space<vmem>>
        %361 = tpu.memref_squeeze %360 : memref<1x128xf32, #tpu.memory_space<vmem>> -> memref<128xf32, #tpu.memory_space<vmem>>
        %362 = tpu.memref_slice %arg14[%263, %c11_i32_209] : memref<2x12x!tpu.dma_semaphore, #tpu.memory_space<semaphore_mem>> -> memref<1x1x!tpu.dma_semaphore, #tpu.memory_space<semaphore_mem>>
        %363 = tpu.memref_squeeze %362 : memref<1x1x!tpu.dma_semaphore, #tpu.memory_space<semaphore_mem>> -> memref<!tpu.dma_semaphore, #tpu.memory_space<semaphore_mem>>
        tpu.enqueue_dma source(%359 : memref<128xf32, #tpu.memory_space<any>>) target(%361 : memref<128xf32, #tpu.memory_space<vmem>>) target_semaphore(%363 : memref<!tpu.dma_semaphore, #tpu.memory_space<semaphore_mem>>)
      } else {
      }
      %c0_i32_111 = arith.constant 0 : i32
      %c0_i32_112 = arith.constant 0 : i32
      %c0_i32_113 = arith.constant 0 : i32
      %190 = tpu.memref_slice %arg4[%c0_i32_111, %c0_i32_113] : memref<256x128xf32, #tpu.memory_space<any>> -> memref<1x128xf32, #tpu.memory_space<any>>
      %191 = tpu.memref_squeeze %190 : memref<1x128xf32, #tpu.memory_space<any>> -> memref<128xf32, #tpu.memory_space<any>>
      %c0_i32_114 = arith.constant 0 : i32
      %192 = tpu.memref_slice %arg8[%175, %c0_i32_114] : memref<8x128xf32, #tpu.memory_space<vmem>> -> memref<1x128xf32, #tpu.memory_space<vmem>>
      %193 = tpu.memref_squeeze %192 : memref<1x128xf32, #tpu.memory_space<vmem>> -> memref<128xf32, #tpu.memory_space<vmem>>
      %194 = tpu.memref_slice %arg14[%185, %c0_i32_112] : memref<2x12x!tpu.dma_semaphore, #tpu.memory_space<semaphore_mem>> -> memref<1x1x!tpu.dma_semaphore, #tpu.memory_space<semaphore_mem>>
      %195 = tpu.memref_squeeze %194 : memref<1x1x!tpu.dma_semaphore, #tpu.memory_space<semaphore_mem>> -> memref<!tpu.dma_semaphore, #tpu.memory_space<semaphore_mem>>
      tpu.wait_dma2 semaphore(%195 : memref<!tpu.dma_semaphore, #tpu.memory_space<semaphore_mem>>) src(%191 : memref<128xf32, #tpu.memory_space<any>>) dst(%193 : memref<128xf32, #tpu.memory_space<vmem>>)
      %c0_i32_115 = arith.constant 0 : i32
      %c1_i32_116 = arith.constant 1 : i32
      %c0_i32_117 = arith.constant 0 : i32
      %196 = tpu.memref_slice %arg4[%c0_i32_115, %c0_i32_117] : memref<256x128xf32, #tpu.memory_space<any>> -> memref<1x128xf32, #tpu.memory_space<any>>
      %197 = tpu.memref_squeeze %196 : memref<1x128xf32, #tpu.memory_space<any>> -> memref<128xf32, #tpu.memory_space<any>>
      %c0_i32_118 = arith.constant 0 : i32
      %198 = tpu.memref_slice %arg9[%175, %c0_i32_118] : memref<8x128xf32, #tpu.memory_space<vmem>> -> memref<1x128xf32, #tpu.memory_space<vmem>>
      %199 = tpu.memref_squeeze %198 : memref<1x128xf32, #tpu.memory_space<vmem>> -> memref<128xf32, #tpu.memory_space<vmem>>
      %200 = tpu.memref_slice %arg14[%185, %c1_i32_116] : memref<2x12x!tpu.dma_semaphore, #tpu.memory_space<semaphore_mem>> -> memref<1x1x!tpu.dma_semaphore, #tpu.memory_space<semaphore_mem>>
      %201 = tpu.memref_squeeze %200 : memref<1x1x!tpu.dma_semaphore, #tpu.memory_space<semaphore_mem>> -> memref<!tpu.dma_semaphore, #tpu.memory_space<semaphore_mem>>
      tpu.wait_dma2 semaphore(%201 : memref<!tpu.dma_semaphore, #tpu.memory_space<semaphore_mem>>) src(%197 : memref<128xf32, #tpu.memory_space<any>>) dst(%199 : memref<128xf32, #tpu.memory_space<vmem>>)
      %c0_i32_119 = arith.constant 0 : i32
      %c2_i32_120 = arith.constant 2 : i32
      %c0_i32_121 = arith.constant 0 : i32
      %202 = tpu.memref_slice %arg5[%c0_i32_119, %c0_i32_121] : memref<256x128xf32, #tpu.memory_space<any>> -> memref<1x128xf32, #tpu.memory_space<any>>
      %203 = tpu.memref_squeeze %202 : memref<1x128xf32, #tpu.memory_space<any>> -> memref<128xf32, #tpu.memory_space<any>>
      %c0_i32_122 = arith.constant 0 : i32
      %204 = tpu.memref_slice %arg11[%175, %c0_i32_122] : memref<8x128xf32, #tpu.memory_space<vmem>> -> memref<1x128xf32, #tpu.memory_space<vmem>>
      %205 = tpu.memref_squeeze %204 : memref<1x128xf32, #tpu.memory_space<vmem>> -> memref<128xf32, #tpu.memory_space<vmem>>
      %206 = tpu.memref_slice %arg14[%185, %c2_i32_120] : memref<2x12x!tpu.dma_semaphore, #tpu.memory_space<semaphore_mem>> -> memref<1x1x!tpu.dma_semaphore, #tpu.memory_space<semaphore_mem>>
      %207 = tpu.memref_squeeze %206 : memref<1x1x!tpu.dma_semaphore, #tpu.memory_space<semaphore_mem>> -> memref<!tpu.dma_semaphore, #tpu.memory_space<semaphore_mem>>
      tpu.wait_dma2 semaphore(%207 : memref<!tpu.dma_semaphore, #tpu.memory_space<semaphore_mem>>) src(%203 : memref<128xf32, #tpu.memory_space<any>>) dst(%205 : memref<128xf32, #tpu.memory_space<vmem>>)
      %c0_i32_123 = arith.constant 0 : i32
      %c3_i32_124 = arith.constant 3 : i32
      %c0_i32_125 = arith.constant 0 : i32
      %208 = tpu.memref_slice %arg5[%c0_i32_123, %c0_i32_125] : memref<256x128xf32, #tpu.memory_space<any>> -> memref<1x128xf32, #tpu.memory_space<any>>
      %209 = tpu.memref_squeeze %208 : memref<1x128xf32, #tpu.memory_space<any>> -> memref<128xf32, #tpu.memory_space<any>>
      %c0_i32_126 = arith.constant 0 : i32
      %210 = tpu.memref_slice %arg12[%175, %c0_i32_126] : memref<8x128xf32, #tpu.memory_space<vmem>> -> memref<1x128xf32, #tpu.memory_space<vmem>>
      %211 = tpu.memref_squeeze %210 : memref<1x128xf32, #tpu.memory_space<vmem>> -> memref<128xf32, #tpu.memory_space<vmem>>
      %212 = tpu.memref_slice %arg14[%185, %c3_i32_124] : memref<2x12x!tpu.dma_semaphore, #tpu.memory_space<semaphore_mem>> -> memref<1x1x!tpu.dma_semaphore, #tpu.memory_space<semaphore_mem>>
      %213 = tpu.memref_squeeze %212 : memref<1x1x!tpu.dma_semaphore, #tpu.memory_space<semaphore_mem>> -> memref<!tpu.dma_semaphore, #tpu.memory_space<semaphore_mem>>
      tpu.wait_dma2 semaphore(%213 : memref<!tpu.dma_semaphore, #tpu.memory_space<semaphore_mem>>) src(%209 : memref<128xf32, #tpu.memory_space<any>>) dst(%211 : memref<128xf32, #tpu.memory_space<vmem>>)
      %c0_i32_127 = arith.constant 0 : i32
      %c4_i32_128 = arith.constant 4 : i32
      %c0_i32_129 = arith.constant 0 : i32
      %214 = tpu.memref_slice %arg4[%c0_i32_127, %c0_i32_129] : memref<256x128xf32, #tpu.memory_space<any>> -> memref<1x128xf32, #tpu.memory_space<any>>
      %215 = tpu.memref_squeeze %214 : memref<1x128xf32, #tpu.memory_space<any>> -> memref<128xf32, #tpu.memory_space<any>>
      %c0_i32_130 = arith.constant 0 : i32
      %216 = tpu.memref_slice %arg10[%175, %c0_i32_130] : memref<8x512xf32, #tpu.memory_space<vmem>> -> memref<1x128xf32, #tpu.memory_space<vmem>>
      %217 = tpu.memref_squeeze %216 : memref<1x128xf32, #tpu.memory_space<vmem>> -> memref<128xf32, #tpu.memory_space<vmem>>
      %218 = tpu.memref_slice %arg14[%185, %c4_i32_128] : memref<2x12x!tpu.dma_semaphore, #tpu.memory_space<semaphore_mem>> -> memref<1x1x!tpu.dma_semaphore, #tpu.memory_space<semaphore_mem>>
      %219 = tpu.memref_squeeze %218 : memref<1x1x!tpu.dma_semaphore, #tpu.memory_space<semaphore_mem>> -> memref<!tpu.dma_semaphore, #tpu.memory_space<semaphore_mem>>
      tpu.wait_dma2 semaphore(%219 : memref<!tpu.dma_semaphore, #tpu.memory_space<semaphore_mem>>) src(%215 : memref<128xf32, #tpu.memory_space<any>>) dst(%217 : memref<128xf32, #tpu.memory_space<vmem>>)
      %c0_i32_131 = arith.constant 0 : i32
      %c5_i32_132 = arith.constant 5 : i32
      %c0_i32_133 = arith.constant 0 : i32
      %220 = tpu.memref_slice %arg5[%c0_i32_131, %c0_i32_133] : memref<256x128xf32, #tpu.memory_space<any>> -> memref<1x128xf32, #tpu.memory_space<any>>
      %221 = tpu.memref_squeeze %220 : memref<1x128xf32, #tpu.memory_space<any>> -> memref<128xf32, #tpu.memory_space<any>>
      %c0_i32_134 = arith.constant 0 : i32
      %222 = tpu.memref_slice %arg13[%175, %c0_i32_134] : memref<8x512xf32, #tpu.memory_space<vmem>> -> memref<1x128xf32, #tpu.memory_space<vmem>>
      %223 = tpu.memref_squeeze %222 : memref<1x128xf32, #tpu.memory_space<vmem>> -> memref<128xf32, #tpu.memory_space<vmem>>
      %224 = tpu.memref_slice %arg14[%185, %c5_i32_132] : memref<2x12x!tpu.dma_semaphore, #tpu.memory_space<semaphore_mem>> -> memref<1x1x!tpu.dma_semaphore, #tpu.memory_space<semaphore_mem>>
      %225 = tpu.memref_squeeze %224 : memref<1x1x!tpu.dma_semaphore, #tpu.memory_space<semaphore_mem>> -> memref<!tpu.dma_semaphore, #tpu.memory_space<semaphore_mem>>
      tpu.wait_dma2 semaphore(%225 : memref<!tpu.dma_semaphore, #tpu.memory_space<semaphore_mem>>) src(%221 : memref<128xf32, #tpu.memory_space<any>>) dst(%223 : memref<128xf32, #tpu.memory_space<vmem>>)
      %c0_i32_135 = arith.constant 0 : i32
      %c6_i32_136 = arith.constant 6 : i32
      %c0_i32_137 = arith.constant 0 : i32
      %226 = tpu.memref_slice %arg4[%c0_i32_135, %c0_i32_137] : memref<256x128xf32, #tpu.memory_space<any>> -> memref<1x128xf32, #tpu.memory_space<any>>
      %227 = tpu.memref_squeeze %226 : memref<1x128xf32, #tpu.memory_space<any>> -> memref<128xf32, #tpu.memory_space<any>>
      %c128_i32_138 = arith.constant 128 : i32
      %228 = tpu.memref_slice %arg10[%175, %c128_i32_138] : memref<8x512xf32, #tpu.memory_space<vmem>> -> memref<1x128xf32, #tpu.memory_space<vmem>>
      %229 = tpu.memref_squeeze %228 : memref<1x128xf32, #tpu.memory_space<vmem>> -> memref<128xf32, #tpu.memory_space<vmem>>
      %230 = tpu.memref_slice %arg14[%185, %c6_i32_136] : memref<2x12x!tpu.dma_semaphore, #tpu.memory_space<semaphore_mem>> -> memref<1x1x!tpu.dma_semaphore, #tpu.memory_space<semaphore_mem>>
      %231 = tpu.memref_squeeze %230 : memref<1x1x!tpu.dma_semaphore, #tpu.memory_space<semaphore_mem>> -> memref<!tpu.dma_semaphore, #tpu.memory_space<semaphore_mem>>
      tpu.wait_dma2 semaphore(%231 : memref<!tpu.dma_semaphore, #tpu.memory_space<semaphore_mem>>) src(%227 : memref<128xf32, #tpu.memory_space<any>>) dst(%229 : memref<128xf32, #tpu.memory_space<vmem>>)
      %c0_i32_139 = arith.constant 0 : i32
      %c7_i32_140 = arith.constant 7 : i32
      %c0_i32_141 = arith.constant 0 : i32
      %232 = tpu.memref_slice %arg5[%c0_i32_139, %c0_i32_141] : memref<256x128xf32, #tpu.memory_space<any>> -> memref<1x128xf32, #tpu.memory_space<any>>
      %233 = tpu.memref_squeeze %232 : memref<1x128xf32, #tpu.memory_space<any>> -> memref<128xf32, #tpu.memory_space<any>>
      %c128_i32_142 = arith.constant 128 : i32
      %234 = tpu.memref_slice %arg13[%175, %c128_i32_142] : memref<8x512xf32, #tpu.memory_space<vmem>> -> memref<1x128xf32, #tpu.memory_space<vmem>>
      %235 = tpu.memref_squeeze %234 : memref<1x128xf32, #tpu.memory_space<vmem>> -> memref<128xf32, #tpu.memory_space<vmem>>
      %236 = tpu.memref_slice %arg14[%185, %c7_i32_140] : memref<2x12x!tpu.dma_semaphore, #tpu.memory_space<semaphore_mem>> -> memref<1x1x!tpu.dma_semaphore, #tpu.memory_space<semaphore_mem>>
      %237 = tpu.memref_squeeze %236 : memref<1x1x!tpu.dma_semaphore, #tpu.memory_space<semaphore_mem>> -> memref<!tpu.dma_semaphore, #tpu.memory_space<semaphore_mem>>
      tpu.wait_dma2 semaphore(%237 : memref<!tpu.dma_semaphore, #tpu.memory_space<semaphore_mem>>) src(%233 : memref<128xf32, #tpu.memory_space<any>>) dst(%235 : memref<128xf32, #tpu.memory_space<vmem>>)
      %c0_i32_143 = arith.constant 0 : i32
      %c8_i32_144 = arith.constant 8 : i32
      %c0_i32_145 = arith.constant 0 : i32
      %238 = tpu.memref_slice %arg4[%c0_i32_143, %c0_i32_145] : memref<256x128xf32, #tpu.memory_space<any>> -> memref<1x128xf32, #tpu.memory_space<any>>
      %239 = tpu.memref_squeeze %238 : memref<1x128xf32, #tpu.memory_space<any>> -> memref<128xf32, #tpu.memory_space<any>>
      %c256_i32_146 = arith.constant 256 : i32
      %240 = tpu.memref_slice %arg10[%175, %c256_i32_146] : memref<8x512xf32, #tpu.memory_space<vmem>> -> memref<1x128xf32, #tpu.memory_space<vmem>>
      %241 = tpu.memref_squeeze %240 : memref<1x128xf32, #tpu.memory_space<vmem>> -> memref<128xf32, #tpu.memory_space<vmem>>
      %242 = tpu.memref_slice %arg14[%185, %c8_i32_144] : memref<2x12x!tpu.dma_semaphore, #tpu.memory_space<semaphore_mem>> -> memref<1x1x!tpu.dma_semaphore, #tpu.memory_space<semaphore_mem>>
      %243 = tpu.memref_squeeze %242 : memref<1x1x!tpu.dma_semaphore, #tpu.memory_space<semaphore_mem>> -> memref<!tpu.dma_semaphore, #tpu.memory_space<semaphore_mem>>
      tpu.wait_dma2 semaphore(%243 : memref<!tpu.dma_semaphore, #tpu.memory_space<semaphore_mem>>) src(%239 : memref<128xf32, #tpu.memory_space<any>>) dst(%241 : memref<128xf32, #tpu.memory_space<vmem>>)
      %c0_i32_147 = arith.constant 0 : i32
      %c9_i32_148 = arith.constant 9 : i32
      %c0_i32_149 = arith.constant 0 : i32
      %244 = tpu.memref_slice %arg5[%c0_i32_147, %c0_i32_149] : memref<256x128xf32, #tpu.memory_space<any>> -> memref<1x128xf32, #tpu.memory_space<any>>
      %245 = tpu.memref_squeeze %244 : memref<1x128xf32, #tpu.memory_space<any>> -> memref<128xf32, #tpu.memory_space<any>>
      %c256_i32_150 = arith.constant 256 : i32
      %246 = tpu.memref_slice %arg13[%175, %c256_i32_150] : memref<8x512xf32, #tpu.memory_space<vmem>> -> memref<1x128xf32, #tpu.memory_space<vmem>>
      %247 = tpu.memref_squeeze %246 : memref<1x128xf32, #tpu.memory_space<vmem>> -> memref<128xf32, #tpu.memory_space<vmem>>
      %248 = tpu.memref_slice %arg14[%185, %c9_i32_148] : memref<2x12x!tpu.dma_semaphore, #tpu.memory_space<semaphore_mem>> -> memref<1x1x!tpu.dma_semaphore, #tpu.memory_space<semaphore_mem>>
      %249 = tpu.memref_squeeze %248 : memref<1x1x!tpu.dma_semaphore, #tpu.memory_space<semaphore_mem>> -> memref<!tpu.dma_semaphore, #tpu.memory_space<semaphore_mem>>
      tpu.wait_dma2 semaphore(%249 : memref<!tpu.dma_semaphore, #tpu.memory_space<semaphore_mem>>) src(%245 : memref<128xf32, #tpu.memory_space<any>>) dst(%247 : memref<128xf32, #tpu.memory_space<vmem>>)
      %c0_i32_151 = arith.constant 0 : i32
      %c10_i32_152 = arith.constant 10 : i32
      %c0_i32_153 = arith.constant 0 : i32
      %250 = tpu.memref_slice %arg4[%c0_i32_151, %c0_i32_153] : memref<256x128xf32, #tpu.memory_space<any>> -> memref<1x128xf32, #tpu.memory_space<any>>
      %251 = tpu.memref_squeeze %250 : memref<1x128xf32, #tpu.memory_space<any>> -> memref<128xf32, #tpu.memory_space<any>>
      %c384_i32_154 = arith.constant 384 : i32
      %252 = tpu.memref_slice %arg10[%175, %c384_i32_154] : memref<8x512xf32, #tpu.memory_space<vmem>> -> memref<1x128xf32, #tpu.memory_space<vmem>>
      %253 = tpu.memref_squeeze %252 : memref<1x128xf32, #tpu.memory_space<vmem>> -> memref<128xf32, #tpu.memory_space<vmem>>
      %254 = tpu.memref_slice %arg14[%185, %c10_i32_152] : memref<2x12x!tpu.dma_semaphore, #tpu.memory_space<semaphore_mem>> -> memref<1x1x!tpu.dma_semaphore, #tpu.memory_space<semaphore_mem>>
      %255 = tpu.memref_squeeze %254 : memref<1x1x!tpu.dma_semaphore, #tpu.memory_space<semaphore_mem>> -> memref<!tpu.dma_semaphore, #tpu.memory_space<semaphore_mem>>
      tpu.wait_dma2 semaphore(%255 : memref<!tpu.dma_semaphore, #tpu.memory_space<semaphore_mem>>) src(%251 : memref<128xf32, #tpu.memory_space<any>>) dst(%253 : memref<128xf32, #tpu.memory_space<vmem>>)
      %c0_i32_155 = arith.constant 0 : i32
      %c11_i32_156 = arith.constant 11 : i32
      %c0_i32_157 = arith.constant 0 : i32
      %256 = tpu.memref_slice %arg5[%c0_i32_155, %c0_i32_157] : memref<256x128xf32, #tpu.memory_space<any>> -> memref<1x128xf32, #tpu.memory_space<any>>
      %257 = tpu.memref_squeeze %256 : memref<1x128xf32, #tpu.memory_space<any>> -> memref<128xf32, #tpu.memory_space<any>>
      %c384_i32_158 = arith.constant 384 : i32
      %258 = tpu.memref_slice %arg13[%175, %c384_i32_158] : memref<8x512xf32, #tpu.memory_space<vmem>> -> memref<1x128xf32, #tpu.memory_space<vmem>>
      %259 = tpu.memref_squeeze %258 : memref<1x128xf32, #tpu.memory_space<vmem>> -> memref<128xf32, #tpu.memory_space<vmem>>
      %260 = tpu.memref_slice %arg14[%185, %c11_i32_156] : memref<2x12x!tpu.dma_semaphore, #tpu.memory_space<semaphore_mem>> -> memref<1x1x!tpu.dma_semaphore, #tpu.memory_space<semaphore_mem>>
      %261 = tpu.memref_squeeze %260 : memref<1x1x!tpu.dma_semaphore, #tpu.memory_space<semaphore_mem>> -> memref<!tpu.dma_semaphore, #tpu.memory_space<semaphore_mem>>
      tpu.wait_dma2 semaphore(%261 : memref<!tpu.dma_semaphore, #tpu.memory_space<semaphore_mem>>) src(%257 : memref<128xf32, #tpu.memory_space<any>>) dst(%259 : memref<128xf32, #tpu.memory_space<vmem>>)
    }
    %c8_i32_65 = arith.constant 8 : i32
    %c0 = arith.constant 0 : index
    %c0_66 = arith.constant 0 : index
    %104 = vector.load %arg8[%c0, %c0_66] : memref<8x128xf32, #tpu.memory_space<vmem>>, vector<8x128xf32>
    %c0_67 = arith.constant 0 : index
    %c0_68 = arith.constant 0 : index
    %105 = vector.load %arg9[%c0_67, %c0_68] : memref<8x128xf32, #tpu.memory_space<vmem>>, vector<8x128xf32>
    %c0_69 = arith.constant 0 : index
    %c0_70 = arith.constant 0 : index
    %106 = vector.load %arg10[%c0_69, %c0_70] : memref<8x512xf32, #tpu.memory_space<vmem>>, vector<8x512xf32>
    %c0_71 = arith.constant 0 : index
    %c0_72 = arith.constant 0 : index
    %107 = vector.load %arg11[%c0_71, %c0_72] : memref<8x128xf32, #tpu.memory_space<vmem>>, vector<8x128xf32>
    %c0_73 = arith.constant 0 : index
    %c0_74 = arith.constant 0 : index
    %108 = vector.load %arg12[%c0_73, %c0_74] : memref<8x128xf32, #tpu.memory_space<vmem>>, vector<8x128xf32>
    %c0_75 = arith.constant 0 : index
    %c0_76 = arith.constant 0 : index
    %109 = vector.load %arg13[%c0_75, %c0_76] : memref<8x512xf32, #tpu.memory_space<vmem>>, vector<8x512xf32>
    %c8_i32_77 = arith.constant 8 : i32
    %110 = arith.muli %arg0, %c8_i32_77 : i32
    %111 = tpu.iota {dimensions = array<i32: 0>} : vector<8x1xi32>
    %112 = vector.broadcast %110 : i32 to vector<8x1xi32>
    %113 = arith.addi %112, %111 : vector<8x1xi32>
    %c12_i32 = arith.constant 12 : i32
    %114 = vector.broadcast %c12_i32 : i32 to vector<8x1xi32>
    %115 = arith.cmpi slt, %113, %114 : vector<8x1xi32>
    %116 = arith.extui %115 : vector<8x1xi1> to vector<8x1xi32>
    %117 = arith.sitofp %116 : vector<8x1xi32> to vector<8x1xf32>
    %118 = arith.mulf %104, %105 : vector<8x128xf32>
    %cst = arith.constant dense<0.000000e+00> : vector<8xf32>
    %119 = vector.multi_reduction <add>, %118, %cst [1] : vector<8x128xf32> to vector<8xf32>
    %120 = vector.shape_cast %119 : vector<8xf32> to vector<8x1xf32>
    %cst_78 = arith.constant 0.000000e+00 : f32
    %121 = vector.broadcast %cst_78 : f32 to vector<8x128xf32>
    %122 = vector.extract_strided_slice %106 {offsets = [0, 0], sizes = [8, 128], strides = [1, 1]} : vector<8x512xf32> to vector<8x128xf32>
    %123 = arith.addf %121, %122 : vector<8x128xf32>
    %124 = vector.extract_strided_slice %106 {offsets = [0, 128], sizes = [8, 128], strides = [1, 1]} : vector<8x512xf32> to vector<8x128xf32>
    %125 = arith.addf %123, %124 : vector<8x128xf32>
    %126 = vector.extract_strided_slice %106 {offsets = [0, 256], sizes = [8, 128], strides = [1, 1]} : vector<8x512xf32> to vector<8x128xf32>
    %127 = arith.addf %125, %126 : vector<8x128xf32>
    %128 = vector.extract_strided_slice %106 {offsets = [0, 384], sizes = [8, 128], strides = [1, 1]} : vector<8x512xf32> to vector<8x128xf32>
    %129 = arith.addf %127, %128 : vector<8x128xf32>
    %130 = arith.mulf %104, %129 : vector<8x128xf32>
    %cst_79 = arith.constant dense<0.000000e+00> : vector<8xf32>
    %131 = vector.multi_reduction <add>, %130, %cst_79 [1] : vector<8x128xf32> to vector<8xf32>
    %132 = vector.shape_cast %131 : vector<8xf32> to vector<8x1xf32>
    %cst_80 = arith.constant 2.500000e-01 : f32
    %133 = vector.broadcast %cst_80 : f32 to vector<8x1xf32>
    %134 = arith.mulf %132, %133 : vector<8x1xf32>
    %135 = arith.subf %120, %134 : vector<8x1xf32>
    %cst_81 = arith.constant 0.000000e+00 : f32
    %136 = vector.broadcast %cst_81 : f32 to vector<8x1xf32>
    %137 = arith.minimumf %135, %136 : vector<8x1xf32>
    %138 = math.absf %135 : vector<8x1xf32>
    %cst_82 = arith.constant 0.000000e+00 : f32
    %139 = vector.broadcast %cst_82 : f32 to vector<8x1xf32>
    %140 = arith.subf %139, %138 : vector<8x1xf32>
    %141 = math.exp %140 : vector<8x1xf32>
    %cst_83 = arith.constant 1.000000e+00 : f32
    %142 = vector.broadcast %cst_83 : f32 to vector<8x1xf32>
    %143 = arith.addf %142, %141 : vector<8x1xf32>
    %144 = math.log %143 : vector<8x1xf32>
    %145 = arith.subf %137, %144 : vector<8x1xf32>
    %c0_84 = arith.constant 0 : index
    %c0_85 = arith.constant 0 : index
    %146 = vector.load %arg6[%c0_84, %c0_85] : memref<1x1xf32, #tpu.memory_space<vmem>>, vector<1x1xf32>
    %147 = arith.mulf %145, %117 : vector<8x1xf32>
    %cst_86 = arith.constant dense<0.000000e+00> : vector<1xf32>
    %148 = vector.multi_reduction <add>, %147, %cst_86 [0] : vector<8x1xf32> to vector<1xf32>
    %149 = vector.shape_cast %148 : vector<1xf32> to vector<1x1xf32>
    %cst_87 = arith.constant 0.000000e+00 : f32
    %150 = vector.broadcast %cst_87 : f32 to vector<1x1xf32>
    %151 = arith.subf %150, %149 : vector<1x1xf32>
    %152 = arith.addf %146, %151 : vector<1x1xf32>
    %c0_88 = arith.constant 0 : index
    %c0_89 = arith.constant 0 : index
    %153 = vector.load %arg6[%c0_88, %c0_89] : memref<1x1xf32, #tpu.memory_space<vmem>>, vector<1x1xf32>
    tpu.vector_store %arg6[%c0_88, %c0_89], %152 {strides = array<i32>} : memref<1x1xf32, #tpu.memory_space<vmem>>, vector<1x1xf32>,
    %154 = arith.mulf %107, %107 : vector<8x128xf32>
    %cst_90 = arith.constant dense<0.000000e+00> : vector<8xf32>
    %155 = vector.multi_reduction <add>, %154, %cst_90 [1] : vector<8x128xf32> to vector<8xf32>
    %156 = vector.shape_cast %155 : vector<8xf32> to vector<8x1xf32>
    %157 = arith.mulf %108, %108 : vector<8x128xf32>
    %cst_91 = arith.constant dense<0.000000e+00> : vector<8xf32>
    %158 = vector.multi_reduction <add>, %157, %cst_91 [1] : vector<8x128xf32> to vector<8xf32>
    %159 = vector.shape_cast %158 : vector<8xf32> to vector<8x1xf32>
    %160 = arith.addf %156, %159 : vector<8x1xf32>
    %161 = arith.mulf %109, %109 : vector<8x512xf32>
    %cst_92 = arith.constant dense<0.000000e+00> : vector<8xf32>
    %162 = vector.multi_reduction <add>, %161, %cst_92 [1] : vector<8x512xf32> to vector<8xf32>
    %163 = vector.shape_cast %162 : vector<8xf32> to vector<8x1xf32>
    %164 = arith.addf %160, %163 : vector<8x1xf32>
    %c0_93 = arith.constant 0 : index
    %c0_94 = arith.constant 0 : index
    %165 = vector.load %arg7[%c0_93, %c0_94] : memref<1x1xf32, #tpu.memory_space<vmem>>, vector<1x1xf32>
    %166 = arith.mulf %164, %117 : vector<8x1xf32>
    %cst_95 = arith.constant dense<0.000000e+00> : vector<1xf32>
    %167 = vector.multi_reduction <add>, %166, %cst_95 [0] : vector<8x1xf32> to vector<1xf32>
    %168 = vector.shape_cast %167 : vector<1xf32> to vector<1x1xf32>
    %169 = arith.addf %165, %168 : vector<1x1xf32>
    %c0_96 = arith.constant 0 : index
    %c0_97 = arith.constant 0 : index
    %170 = vector.load %arg7[%c0_96, %c0_97] : memref<1x1xf32, #tpu.memory_space<vmem>>, vector<1x1xf32>
    tpu.vector_store %arg7[%c0_96, %c0_97], %169 {strides = array<i32>} : memref<1x1xf32, #tpu.memory_space<vmem>>, vector<1x1xf32>,
    %c1_i32_98 = arith.constant 1 : i32
    %171 = arith.cmpi eq, %arg0, %c1_i32_98 : i32
    %172 = arith.extui %171 : i1 to i32
    %c0_i32_99 = arith.constant 0 : i32
    %173 = arith.cmpi ne, %172, %c0_i32_99 : i32
    scf.if %173 {
      %c0_100 = arith.constant 0 : index
      %c0_101 = arith.constant 0 : index
      %174 = vector.load %arg6[%c0_100, %c0_101] : memref<1x1xf32, #tpu.memory_space<vmem>>, vector<1x1xf32>
      %cst_102 = arith.constant 0.0833333358 : f32
      %175 = vector.broadcast %cst_102 : f32 to vector<1x1xf32>
      %176 = arith.mulf %174, %175 : vector<1x1xf32>
      %c0_103 = arith.constant 0 : index
      %c0_104 = arith.constant 0 : index
      %177 = vector.load %arg6[%c0_103, %c0_104] : memref<1x1xf32, #tpu.memory_space<vmem>>, vector<1x1xf32>
      tpu.vector_store %arg6[%c0_103, %c0_104], %176 {strides = array<i32>} : memref<1x1xf32, #tpu.memory_space<vmem>>, vector<1x1xf32>,
      %c0_105 = arith.constant 0 : index
      %c0_106 = arith.constant 0 : index
      %178 = vector.load %arg7[%c0_105, %c0_106] : memref<1x1xf32, #tpu.memory_space<vmem>>, vector<1x1xf32>
      %cst_107 = arith.constant 4.16666671E-6 : f32
      %179 = vector.broadcast %cst_107 : f32 to vector<1x1xf32>
      %180 = arith.mulf %178, %179 : vector<1x1xf32>
      %c0_108 = arith.constant 0 : index
      %c0_109 = arith.constant 0 : index
      %181 = vector.load %arg7[%c0_108, %c0_109] : memref<1x1xf32, #tpu.memory_space<vmem>>, vector<1x1xf32>
      tpu.vector_store %arg7[%c0_108, %c0_109], %180 {strides = array<i32>} : memref<1x1xf32, #tpu.memory_space<vmem>>, vector<1x1xf32>,
    } else {
    }
    return
  }
  func.func @transform_2(%arg0: i32, %arg1: memref<12xi32, #tpu.memory_space<smem>>, %arg2: memref<12xi32, #tpu.memory_space<smem>>, %arg3: memref<48xi32, #tpu.memory_space<smem>>) -> (i32, i32) {
    %c0_i32 = arith.constant 0 : i32
    %c0_i32_0 = arith.constant 0 : i32
    %c0_i32_1 = arith.constant 0 : i32
    return %c0_i32, %c0_i32_0 : i32, i32
  }
  func.func @transform_3(%arg0: i32, %arg1: memref<12xi32, #tpu.memory_space<smem>>, %arg2: memref<12xi32, #tpu.memory_space<smem>>, %arg3: memref<48xi32, #tpu.memory_space<smem>>) -> (i32, i32) {
    %c0_i32 = arith.constant 0 : i32
    %c0_i32_0 = arith.constant 0 : i32
    %c0_i32_1 = arith.constant 0 : i32
    return %c0_i32, %c0_i32_0 : i32, i32
  }
}

</mosaic_0001>

<bundles_post_ra>
// kernel: recommender_forward.4
= control target key start
LH: loop header
LB: loop body
LE: loop exit
PB: predicated region body
PF: predicated region fallthrough
CT: control target
= control target key end

     0   :  { %s1645_s0 = inlined_call_operand.vmem [shape: bf16[256,256], index: 0, kind: input, shape index: {}]   ;;  %s1646_s1 = inlined_call_operand.vmem [shape: bf16[256,128], index: 1, kind: input, shape index: {}]   ;;  %s1647_s2 = inlined_call_operand.vmem [shape: f32[256,128], index: 2, kind: input, shape index: {}, may-alias: {2,4}]   ;;  %s1648_s3 = inlined_call_operand.hbm [shape: bf16[256,128], index: 3, kind: output, shape index: {0}]   ;;  %s1649_s4 = inlined_call_operand.vmem [shape: f32[256,128], index: 4, kind: output, shape index: {1}, may-alias: {2,4}]  }
   0x1   :  { %1652 = sst [smem:[#allocation9_spill]] %s1645_s0 }
   0x2   :  { %10 = vsyncpa [#allocation5], 0 }
   0x3   :  { %12 = vsyncpa [#allocation5 + $0x1], 0  ;;  %s1374_s15 = smov 0   ;;  %s1376_s16 = smov 0  }
   0x4   :  { %s1378_s17 = smov 0   ;;  %s1380_s18 = smov 0  }
   0x5   :  { %s1382_s19 = smov 0   ;;  %s1384_s20 = smov 0  }
   0x6   :  { %s1386_s21 = smov 0   ;;  %s1388_s22 = smov 0  }
   0x7   :  { %s1390_s23 = smov 0   ;;  %s1392_s24 = smov 0  }
   0x8 LB: > { %s942_s25 = sadd.s32 4294967295, %s1343_s24   ;;  %s943_s26 = sadd.s32 4294967294, %s1343_s24   ;;  %s1343_s24 = sphi %s1392_s24, %s18_s24   ;;  %s1339_s23 = sphi %s1390_s23, %s1669_s23   ;;  %s1335_s22 = sphi %s1388_s22, %s1668_s22   ;;  %s1331_s21 = sphi %s1386_s21, %s1667_s21   ;;  %s1327_s20 = sphi %s1384_s20, %s1666_s20   ;;  %s1323_s19 = sphi %s1382_s19, %s1665_s19   ;;  %s1319_s18 = sphi %s1380_s18, %s1664_s18   ;;  %s1315_s17 = sphi %s1378_s17, %s1663_s17   ;;  %s1311_s16 = sphi %s1376_s16, %s1662_s16   ;;  %s1307_s15 = sphi %s1374_s15, %s1661_s15  }
   0x9   : > { %s27_s27 = sadd.s32 1, %s1335_s22  ;;  %s30_s28 = sadd.s32 1, %s1339_s23 }
   0xa   : > { %p28_p0 = scmp.ge.s32.totalorder %s27_s27, 2  ;;  %s39_s29 = sadd.s32 1, %s1323_s19 }
   0xb   : > { %p46_p1 = scmp.ne.s32.totalorder %s1323_s19, %s1319_s18  ;;  %p47_p2 = scmp.eq.s32.totalorder %s1343_s24, 0 }
   0xc   : > { %s1671_s27 = smov (%p28_p0, %s27_s27), 0  ;;  %s1673_s28 = smov (!%p28_p0, %s30_s28), %s1339_s23 }
   0xd   : > { %1653 = sst [smem:[#allocation7_spill]] %s1671_s27  ;;  %s35_s30 = ssub.s32 %s1335_s22, %s1671_s27 }
   0xe   : > { %p1437_p3 = por %p47_p2, %p46_p1  ;;  %p32_p4 = scmp.ge.s32.totalorder %s1673_s28, 2 }
   0xf   : > { %s112_s6 = sadd.s32 1, %s1315_s17  ;;  %p122_p5 = scmp.ne.s32.totalorder %s1315_s17, %s1311_s16 }
  0x10   : > { %p123_p6 = scmp.eq.s32.totalorder %s942_s25, 3  ;;  %s1675_s28 = smov (%p32_p4, %s1673_s28), 0 }
  0x11   : > { %1655 = sst [smem:[#allocation8_spill]] %s1675_s28  ;;  %p128_p8 = scmp.ne.s32.totalorder %s1311_s16, %s1307_s15 }
  0x12   : > { %p1446_p7 = por %p123_p6, %p122_p5  ;;  %s34_s8 = ssub.s32 %s1339_s23, %s1675_s28 }
  0x13   : > { %p129_p9 = scmp.eq.s32.totalorder %s943_s26, 3  ;;  %s36_s9 = sor.u32 %s35_s30, %s34_s8 }
  0x14   : > { %p110_p10 = scmp.eq.s32.totalorder %s34_s8, 0  ;;  %p37_p11 = scmp.eq.s32.totalorder %s36_s9, 0 }
  0x15   : > { %p1454_p12 = por %p129_p9, %p128_p8  ;;  %p945_p13 = scmp.ge.s32.totalorder %s1343_s24, 4 }
  0x16   : > { %s1459_s11 = scalar_select %p110_p10, %s1315_s17, %s112_s6  }
  0x17   : > { %s1462_s12 = scalar_select %p37_p11, %s1323_s19, %s39_s29  }
  0x18   : > { %174 = sbr.rel (%p945_p13) target bundleno = 51 (0x33), region = 20 }
  0x1f   : > { %177 = sbr.rel (!%p1437_p3) target bundleno = 51 (0x33), region = 24  ;;  %s179_s13 = sand.u32 (%p1437_p3), 1, %s1323_s19  }
  0x20   : > { %s998_s14 = sshll.u32 (%p1437_p3), %s1339_s23, 5  ;;  %s946_s25 = sshll.u32 (%p1437_p3), %s179_s13, 6 }
  0x21   : > { %s184_s26 = sadd.s32 (%p1437_p3), %s1335_s22, %s998_s14  ;;  %s1658_s0 = sld [smem:[#allocation9_spill]] (%p1437_p3) }
  0x22   : > { %s949_s30 = sshll.u32 (%p1437_p3), %s184_s26, 2  ;;  %s181_s29 = scalar_lea.vmem (%p1437_p3), [#allocation3], %s946_s25 }
  0x27   : > { %s1473_s6 = scalar_lea.vmem %s1658_s0, %s949_s30 }
  0x28   : > { %v202_v0 = vld [vmem:[%s1473_s6] sm:$0xf]  ;;  %v204_v1 = vld [vmem:[%s1473_s6 + $0x8] sm:$0xf]  ;;  %v206_v2 = vld [vmem:[%s1473_s6 + $0x10] sm:$0xf] }
  0x29   : > { %203 = vst [vmem:[%s181_s29] sm:$0xf] %v202_v0  ;;  %205 = vst [vmem:[%s181_s29 + $0x4] sm:$0xf] %v204_v1  ;;  %v208_v3 = vld [vmem:[%s1473_s6 + $0x18] sm:$0xf] }
  0x2a   : > { %207 = vst [vmem:[%s181_s29 + $0x8] sm:$0xf] %v206_v2  ;;  %v210_v4 = vld [vmem:[%s1473_s6 + $0x20] sm:$0xf]  ;;  %v212_v5 = vld [vmem:[%s1473_s6 + $0x28] sm:$0xf] }
  0x2b   : > { %209 = vst [vmem:[%s181_s29 + $0xc] sm:$0xf] %v208_v3  ;;  %211 = vst [vmem:[%s181_s29 + $0x10] sm:$0xf] %v210_v4  ;;  %v214_v6 = vld [vmem:[%s1473_s6 + $0x30] sm:$0xf] }
  0x2c   : > { %213 = vst [vmem:[%s181_s29 + $0x14] sm:$0xf] %v212_v5  ;;  %v216_v7 = vld [vmem:[%s1473_s6 + $0x38] sm:$0xf]  ;;  %v218_v8 = vld [vmem:[%s1473_s6 + $0x40] sm:$0xf] }
  0x2d   : > { %215 = vst [vmem:[%s181_s29 + $0x18] sm:$0xf] %v214_v6  ;;  %217 = vst [vmem:[%s181_s29 + $0x1c] sm:$0xf] %v216_v7  ;;  %v220_v9 = vld [vmem:[%s1473_s6 + $0x48] sm:$0xf] }
  0x2e   : > { %219 = vst [vmem:[%s181_s29 + $0x20] sm:$0xf] %v218_v8  ;;  %v222_v10 = vld [vmem:[%s1473_s6 + $0x50] sm:$0xf]  ;;  %v224_v11 = vld [vmem:[%s1473_s6 + $0x58] sm:$0xf] }
  0x2f   : > { %221 = vst [vmem:[%s181_s29 + $0x24] sm:$0xf] %v220_v9  ;;  %223 = vst [vmem:[%s181_s29 + $0x28] sm:$0xf] %v222_v10  ;;  %v226_v12 = vld [vmem:[%s1473_s6 + $0x60] sm:$0xf] }
  0x30   : > { %225 = vst [vmem:[%s181_s29 + $0x2c] sm:$0xf] %v224_v11  ;;  %v228_v13 = vld [vmem:[%s1473_s6 + $0x68] sm:$0xf]  ;;  %v230_v14 = vld [vmem:[%s1473_s6 + $0x70] sm:$0xf] }
  0x31   : > { %227 = vst [vmem:[%s181_s29 + $0x30] sm:$0xf] %v226_v12  ;;  %229 = vst [vmem:[%s181_s29 + $0x34] sm:$0xf] %v228_v13  ;;  %v232_v15 = vld [vmem:[%s1473_s6 + $0x78] sm:$0xf] }
  0x32   : > { %231 = vst [vmem:[%s181_s29 + $0x38] sm:$0xf] %v230_v14  ;;  %233 = vst [vmem:[%s181_s29 + $0x3c] sm:$0xf] %v232_v15 }
  0x33 PF: > { %p950_p0 = scmp.ge.s32.totalorder %s1343_s24, 1  ;;  %p296_p1 = scmp.lt.s32.totalorder %s1343_s24, 5 }
  0x35   : > { %p297_p2 = pnand %p950_p0, %p296_p1 }
  0x36   : > { %s303_s5 = sand.u32 (!%p297_p2), 1, %s1319_s18   ;;  %s328_s13 = sand.u32 (!%p297_p2), 1, %s1311_s16  }
  0x37   : > { %300 = sbr.rel (%p297_p2) target bundleno = 373 (0x175), region = 69  ;;  %s951_s14 = sshll.u32 (!%p297_p2), %s303_s5, 6 }
  0x38   : > { %s952_s25 = sshll.u32 (!%p297_p2), %s328_s13, 6  ;;  %s953_s26 = sshll.u32 (!%p297_p2), %s1331_s21, 4 }
  0x39   : > { %p340_p3 = scmp.lt.s32.totalorder (!%p297_p2), %s953_s26, 31  ;;  %s1508_s27 = scalar_lea.vmem (!%p297_p2), [#allocation3], %s951_s14 }
  0x3a   : > { %s1510_s18 = scalar_lea.vmem (!%p297_p2), [#allocation4], %s952_s25  ;;  %p957_p4 = scmp.ne.s32.totalorder (!%p297_p2), %s1327_s20, 0 }
  0x3e   : > { %s1677_s26 = smov (!%p340_p3, %s953_s26), 31  ;;  %356 = sbr.rel (%p957_p4) target bundleno = 72 (0x48), region = 77 }
  0x3f   : > { %s954_s30 = sshll.u32 %s1677_s26, 3  ;;  %v1345_v16 = vmov (!%p957_p4), 0.0  }
  0x40   : > { %s1501_s6 = scalar_lea.vmem %s1647_s2, %s954_s30  ;;  %s1506_s28 = scalar_lea.vmem %s1649_s4, %s954_s30  ;;  %357 = vst [vmem:[#allocation2] sm:$0xff] (!%p957_p4), %v1345_v16  ;;  %358 = vst [vmem:[#allocation2 + $0x8] sm:$0xff] (!%p957_p4), %v1345_v16 }
  0x41   : > { %359 = vst [vmem:[#allocation2 + $0x10] sm:$0xff] (!%p957_p4), %v1345_v16  ;;  %360 = vst [vmem:[#allocation2 + $0x18] sm:$0xff] (!%p957_p4), %v1345_v16 }
  0x42   : > { %361 = vst [vmem:[#allocation2 + $0x20] sm:$0xff] (!%p957_p4), %v1345_v16  ;;  %362 = vst [vmem:[#allocation2 + $0x28] sm:$0xff] (!%p957_p4), %v1345_v16 }
  0x43   : > { %363 = vst [vmem:[#allocation2 + $0x30] sm:$0xff] (!%p957_p4), %v1345_v16  ;;  %364 = vst [vmem:[#allocation2 + $0x38] sm:$0xff] (!%p957_p4), %v1345_v16 }
  0x44   : > { %365 = vst [vmem:[#allocation2 + $0x40] sm:$0xff] (!%p957_p4), %v1345_v16  ;;  %366 = vst [vmem:[#allocation2 + $0x48] sm:$0xff] (!%p957_p4), %v1345_v16 }
  0x45   : > { %367 = vst [vmem:[#allocation2 + $0x50] sm:$0xff] %v1345_v16  ;;  %368 = vst [vmem:[#allocation2 + $0x58] sm:$0xff] %v1345_v16 }
  0x46   : > { %369 = vst [vmem:[#allocation2 + $0x60] sm:$0xff] %v1345_v16  ;;  %370 = vst [vmem:[#allocation2 + $0x68] sm:$0xff] %v1345_v16 }
  0x47   : > { %371 = vst [vmem:[#allocation2 + $0x70] sm:$0xff] %v1345_v16  ;;  %372 = vst [vmem:[#allocation2 + $0x78] sm:$0xff] %v1345_v16 }
  0x48 PF: > { %s958_s0 = sshll.u32 %s1327_s20, 7  ;;  %v1225_v17 = vld [vmem:[%s1508_s27] sm:$0xff]   ;;  %v1227_v27 = vld [vmem:[%s1508_s27 + $0x8] sm:$0xff]   ;;  %v1229_v29 = vld [vmem:[%s1508_s27 + $0x10] sm:$0xff]   ;;  %p976_p5 = scmp.ne.s32.totalorder %s1327_s20, 1 }
  0x49   : > { %s374_s5 = sshra.s32 %s958_s0, 3  ;;  %v1226_v18 = vld [vmem:[%s1508_s27 + $0x20] sm:$0xff]   ;;  %1095 = vmatprep.mubr.bf16.mxu0 %v1225_v17  ;;  %v1228_v28 = vld [vmem:[%s1508_s27 + $0x28] sm:$0xff]   ;;  %v1230_v30 = vld [vmem:[%s1508_s27 + $0x30] sm:$0xff]  }
  0x4a   : > { %s959_s14 = sshll.u32 %s374_s5, 2  ;;  %1103 = vmatprep.mubr.bf16.mxu1 %v1226_v18  ;;  %v1231_v31 = vld [vmem:[%s1508_s27 + $0x18] sm:$0xff]   ;;  %v394_v35 = vld [vmem:[#allocation2] sm:$0xff]  ;;  %v395_v45 = vld [vmem:[#allocation2 + $0x8] sm:$0xff] }
  0x4b   : > { %s1519_s30 = scalar_lea.vmem %s1646_s1, %s959_s14  ;;  %v1232_v32 = vld [vmem:[%s1508_s27 + $0x38] sm:$0xff]   ;;  %v396_v33 = vld [vmem:[#allocation2 + $0x10] sm:$0xff] }
  0x4c   : > { %v1217_v19 = vld [vmem:[%s1519_s30] sm:$0xff]   ;;  %v1218_v20 = vld [vmem:[%s1519_s30 + $0x8] sm:$0xff]   ;;  %v1219_v21 = vld [vmem:[%s1519_s30 + $0x10] sm:$0xff]  }
  0x4d   : > { %1079 = vmatprep.subr.bf16.mxu0 %v1217_v19  ;;  %1111 = vmatprep.subr.bf16.mxu1 %v1217_v19  ;;  %v1220_v22 = vld [vmem:[%s1519_s30 + $0x18] sm:$0xff]   ;;  %v1221_v23 = vld [vmem:[%s1519_s30 + $0x20] sm:$0xff]   ;;  %v1222_v24 = vld [vmem:[%s1519_s30 + $0x28] sm:$0xff]  }
  0x4e   : > { %1080 = vmatpush3.bf16.msra.mxu0 %v1217_v19  ;;  %1119 = vmatpush3.bf16.msra.mxu1 %v1217_v19  ;;  %v1223_v25 = vld [vmem:[%s1519_s30 + $0x30] sm:$0xff]   ;;  %v1224_v26 = vld [vmem:[%s1519_s30 + $0x38] sm:$0xff]   ;;  %v402_v36 = vld [vmem:[#allocation2 + $0x40] sm:$0xff] }
  0x4f   : > { %1081 = vmatprep.subr.bf16.mxu0 %v1218_v20  ;;  %1112 = vmatprep.subr.bf16.mxu1 %v1218_v20  ;;  %v404_v34 = vld [vmem:[#allocation2 + $0x50] sm:$0xff]  ;;  %v397_v39 = vld [vmem:[#allocation2 + $0x18] sm:$0xff]  ;;  %v403_v46 = vld [vmem:[#allocation2 + $0x48] sm:$0xff] }
  0x50   : > { %v405_v40 = vld [vmem:[#allocation2 + $0x58] sm:$0xff]  ;;  %v400_v57 = vld [vmem:[#allocation2 + $0x30] sm:$0xff]  ;;  %v398_v59 = vld [vmem:[#allocation2 + $0x20] sm:$0xff] }
  0x51   : > { %v408_v58 = vld [vmem:[#allocation2 + $0x70] sm:$0xff]  ;;  %v406_v60 = vld [vmem:[#allocation2 + $0x60] sm:$0xff]  ;;  %v401_v63 = vld [vmem:[#allocation2 + $0x38] sm:$0xff] }
  0x52   : > { %1082 = vmatpush3.bf16.msra.mxu0 %v1218_v20  ;;  %1120 = vmatpush3.bf16.msra.mxu1 %v1218_v20  ;;  %v409_v0 = vld [vmem:[#allocation2 + $0x78] sm:$0xff]  ;;  %v399_v5 = vld [vmem:[#allocation2 + $0x28] sm:$0xff]  ;;  %v751_v19 = vld [vmem:[%s1501_s6] sm:$0xff] (!%p976_p5) }
  0x53   : > { %1083 = vmatprep.subr.bf16.mxu0 %v1219_v21  ;;  %1113 = vmatprep.subr.bf16.mxu1 %v1219_v21  ;;  %v407_v6 = vld [vmem:[#allocation2 + $0x68] sm:$0xff] }
  0x56   : > { %1084 = vmatpush3.bf16.msra.mxu0 %v1219_v21  ;;  %1121 = vmatpush3.bf16.msra.mxu1 %v1219_v21  ;;  %v752_v21 = vld [vmem:[%s1501_s6 + $0x8] sm:$0xff] (!%p976_p5) }
  0x57   : > { %1085 = vmatprep.subr.bf16.mxu0 %v1220_v22  ;;  %1114 = vmatprep.subr.bf16.mxu1 %v1220_v22 }
  0x5a   : > { %1086 = vmatpush3.bf16.msra.mxu0 %v1220_v22  ;;  %1122 = vmatpush3.bf16.msra.mxu1 %v1220_v22 }
  0x5b   : > { %1087 = vmatprep.subr.bf16.mxu0 %v1221_v23  ;;  %1115 = vmatprep.subr.bf16.mxu1 %v1221_v23 }
  0x5e   : > { %1088 = vmatpush3.bf16.msra.mxu0 %v1221_v23  ;;  %1123 = vmatpush3.bf16.msra.mxu1 %v1221_v23 }
  0x5f   : > { %1089 = vmatprep.subr.bf16.mxu0 %v1222_v24  ;;  %1116 = vmatprep.subr.bf16.mxu1 %v1222_v24 }
  0x62   : > { %1090 = vmatpush3.bf16.msra.mxu0 %v1222_v24  ;;  %1124 = vmatpush3.bf16.msra.mxu1 %v1222_v24 }
  0x63   : > { %1091 = vmatprep.subr.bf16.mxu0 %v1223_v25  ;;  %1117 = vmatprep.subr.bf16.mxu1 %v1223_v25 }
  0x66   : > { %1092 = vmatpush3.bf16.msra.mxu0 %v1223_v25  ;;  %1125 = vmatpush3.bf16.msra.mxu1 %v1223_v25  ;;  %v753_v25 = vld [vmem:[%s1501_s6 + $0x10] sm:$0xff] (!%p976_p5) }
  0x67   : > { %1093 = vmatprep.subr.bf16.mxu0 %v1224_v26  ;;  %1118 = vmatprep.subr.bf16.mxu1 %v1224_v26 }
  0x6a   : > { %1094 = vmatpush3.bf16.msra.mxu0 %v1224_v26  ;;  %1126 = vmatpush3.bf16.msra.mxu1 %v1224_v26  ;;  %v754_v26 = vld [vmem:[%s1501_s6 + $0x18] sm:$0xff] (!%p976_p5) }
  0x6d   : > { %1096 = vmatmul.mubr.bf16.vlgmr.msra.gmra.mrb[0].mxu0 %v1227_v27  ;;  %1104 = vmatmul.mubr.bf16.vlgmr.msra.gmra.mrb[0].mxu1 %v1228_v28 }
  0x6e   : > { %1099 = vmatprep.mubr.bf16.mxu0 %v1229_v29  ;;  %1107 = vmatprep.mubr.bf16.mxu1 %v1230_v30  ;;  %v755_v29 = vld [vmem:[%s1501_s6 + $0x20] sm:$0xff] (!%p976_p5)  ;;  %v756_v30 = vld [vmem:[%s1501_s6 + $0x28] sm:$0xff] (!%p976_p5) }
  0x75   : > { %1100 = vmatmul.mubr.bf16.gmra.mrb[4].mxu0 %v1231_v31  ;;  %1108 = vmatmul.mubr.bf16.gmra.mrb[4].mxu1 %v1232_v32 }
 0x140   : > { %v1097_v37 = vpop.f32.mrb[0].mxu0  ;;  %v1105_v38 = vpop.f32.mrb[0].mxu1 }
 0x141   : > { %v621_v41 = vadd.f32 %v1097_v37, %v396_v33  ;;  %v629_v42 = vadd.f32 %v1105_v38, %v404_v34  ;;  %v556_v43 = vpop.f32.mrb[1].mxu0  ;;  %v588_v44 = vpop.f32.mrb[1].mxu1  ;;  %v757_v34 = vld [vmem:[%s1501_s6 + $0x30] sm:$0xff] (!%p976_p5) }
 0x142   : > { %v619_v47 = vadd.f32 %v556_v43, %v394_v35  ;;  %v627_v48 = vadd.f32 %v588_v44, %v402_v36  ;;  %v1098_v49 = vpop.f32.mrb[2].mxu0  ;;  %v1106_v50 = vpop.f32.mrb[2].mxu1 }
 0x143   : > { %637 = vst [vmem:[#allocation2 + $0x10] sm:$0xff] %v621_v41  ;;  %645 = vst [vmem:[#allocation2 + $0x50] sm:$0xff] %v629_v42  ;;  %v622_v51 = vadd.f32 %v1098_v49, %v397_v39  ;;  %v630_v52 = vadd.f32 %v1106_v50, %v405_v40  ;;  %v559_v53 = vpop.f32.mrb[3].mxu0  ;;  %v591_v54 = vpop.f32.mrb[3].mxu1  ;;  %v758_v39 = vld [vmem:[%s1501_s6 + $0x38] sm:$0xff] (!%p976_p5) }
 0x144   : > { %635 = vst [vmem:[#allocation2] sm:$0xff] %v619_v47  ;;  %643 = vst [vmem:[#allocation2 + $0x40] sm:$0xff] %v627_v48  ;;  %v620_v55 = vadd.f32 %v559_v53, %v395_v45  ;;  %v628_v56 = vadd.f32 %v591_v54, %v403_v46  ;;  %v759_v46 = vld [vmem:[%s1501_s6 + $0x40] sm:$0xff] (!%p976_p5)  ;;  %v760_v47 = vld [vmem:[%s1501_s6 + $0x48] sm:$0xff] (!%p976_p5) }
 0x145   : > { %638 = vst [vmem:[#allocation2 + $0x18] sm:$0xff] %v622_v51  ;;  %646 = vst [vmem:[#allocation2 + $0x58] sm:$0xff] %v630_v52  ;;  %v761_v54 = vld [vmem:[%s1501_s6 + $0x50] sm:$0xff] (!%p976_p5) }
 0x146   : > { %636 = vst [vmem:[#allocation2 + $0x8] sm:$0xff] %v620_v55  ;;  %644 = vst [vmem:[#allocation2 + $0x48] sm:$0xff] %v628_v56  ;;  %v762_v55 = vld [vmem:[%s1501_s6 + $0x58] sm:$0xff] (!%p976_p5) }
 0x148   : > { %v1101_v61 = vpop.f32.mrb[4].mxu0  ;;  %v1109_v62 = vpop.f32.mrb[4].mxu1  ;;  %654 = sbr.rel (%p976_p5) target bundleno = 348 (0x15c), region = 81 }
 0x149   : > { %v625_v1 = vadd.f32 %v1101_v61, %v400_v57  ;;  %v633_v2 = vadd.f32 %v1109_v62, %v408_v58  ;;  %v572_v3 = vpop.f32.mrb[5].mxu0  ;;  %v604_v4 = vpop.f32.mrb[5].mxu1  ;;  %v763_v61 = vld [vmem:[%s1501_s6 + $0x60] sm:$0xff] (!%p976_p5) }
 0x14a   : > { %v623_v7 = vadd.f32 %v572_v3, %v398_v59  ;;  %v631_v8 = vadd.f32 %v604_v4, %v406_v60  ;;  %v1102_v9 = vpop.f32.mrb[6].mxu0  ;;  %v1110_v10 = vpop.f32.mrb[6].mxu1  ;;  %v657_v22 = vld [vmem:[#allocation2 + $0x10] sm:$0xff] (!%p976_p5) }
 0x14b   : > { %641 = vst [vmem:[#allocation2 + $0x30] sm:$0xff] %v625_v1  ;;  %649 = vst [vmem:[#allocation2 + $0x70] sm:$0xff] %v633_v2  ;;  %v626_v11 = vadd.f32 %v1102_v9, %v401_v63  ;;  %v634_v12 = vadd.f32 %v1110_v10, %v409_v0  ;;  %v575_v13 = vpop.f32.mrb[7].mxu0  ;;  %v607_v14 = vpop.f32.mrb[7].mxu1  ;;  %v655_v17 = vld [vmem:[#allocation2] sm:$0xff] (!%p976_p5)  ;;  %v769_v37 = vadd.f32 (!%p976_p5), %v753_v25, %v657_v22  ;;  %v665_v48 = vld [vmem:[#allocation2 + $0x50] sm:$0xff] (!%p976_p5) }
 0x14c   : > { %639 = vst [vmem:[#allocation2 + $0x20] sm:$0xff] %v623_v7  ;;  %647 = vst [vmem:[#allocation2 + $0x60] sm:$0xff] %v631_v8  ;;  %v624_v15 = vadd.f32 %v575_v13, %v399_v5  ;;  %v632_v16 = vadd.f32 %v607_v14, %v407_v6  ;;  %v658_v23 = vld [vmem:[#allocation2 + $0x18] sm:$0xff] (!%p976_p5)  ;;  %v767_v35 = vadd.f32 (!%p976_p5), %v751_v19, %v655_v17  ;;  %v663_v40 = vld [vmem:[#allocation2 + $0x40] sm:$0xff] (!%p976_p5) }
 0x14d   : > { %642 = vst [vmem:[#allocation2 + $0x38] sm:$0xff] %v626_v11  ;;  %650 = vst [vmem:[#allocation2 + $0x78] sm:$0xff] %v634_v12  ;;  %v656_v18 = vld [vmem:[#allocation2 + $0x8] sm:$0xff] (!%p976_p5)  ;;  %v1024_v24 = vpack.c.bf16 (!%p976_p5), %v658_v23, %v657_v22  ;;  %v770_v42 = vadd.f32 (!%p976_p5), %v754_v26, %v658_v23  ;;  %v775_v51 = vadd.f32 (!%p976_p5), %v759_v46, %v663_v40  ;;  %v666_v53 = vld [vmem:[#allocation2 + $0x58] sm:$0xff] (!%p976_p5) }
 0x14e   : > { %640 = vst [vmem:[#allocation2 + $0x28] sm:$0xff] %v624_v15  ;;  %648 = vst [vmem:[#allocation2 + $0x68] sm:$0xff] %v632_v16  ;;  %v1019_v20 = vpack.c.bf16 (!%p976_p5), %v656_v18, %v655_v17  ;;  %v768_v36 = vadd.f32 (!%p976_p5), %v752_v21, %v656_v18  ;;  %v664_v41 = vld [vmem:[#allocation2 + $0x48] sm:$0xff] (!%p976_p5)  ;;  %v1044_v56 = vpack.c.bf16 (!%p976_p5), %v666_v53, %v665_v48  ;;  %v765_v5 = vld [vmem:[%s1501_s6 + $0x70] sm:$0xff] (!%p976_p5) }
 0x14f   : > { %1056 = vst [vmem:[%s1510_s18 + $0x8] sm:$0xff] %v1024_v24   ;;  %v1039_v45 = vpack.c.bf16 %v664_v41, %v663_v40  ;;  %v776_v52 = vadd.f32 %v760_v47, %v664_v41  ;;  %v777_v57 = vadd.f32 %v761_v54, %v665_v48  ;;  %v778_v58 = vadd.f32 %v762_v55, %v666_v53  ;;  %v764_v63 = vld [vmem:[%s1501_s6 + $0x68] sm:$0xff]  ;;  %v766_v6 = vld [vmem:[%s1501_s6 + $0x78] sm:$0xff] }
 0x150   : > { %1020 = vst [vmem:[%s1510_s18] sm:$0xff] %v1019_v20   ;;  %1060 = vst [vmem:[%s1510_s18 + $0x28] sm:$0xff] %v1044_v56  }
 0x151   : > { %1059 = vst [vmem:[%s1510_s18 + $0x20] sm:$0xff] %v1039_v45   ;;  %783 = vst [vmem:[%s1506_s28] sm:$0xff] %v767_v35 }
 0x152   : > { %v661_v32 = vld [vmem:[#allocation2 + $0x30] sm:$0xff]  ;;  %784 = vst [vmem:[%s1506_s28 + $0x8] sm:$0xff] %v768_v36  ;;  %785 = vst [vmem:[%s1506_s28 + $0x10] sm:$0xff] %v769_v37 }
 0x153   : > { %v659_v27 = vld [vmem:[#allocation2 + $0x20] sm:$0xff]  ;;  %v773_v49 = vadd.f32 %v757_v34, %v661_v32  ;;  %v669_v1 = vld [vmem:[#allocation2 + $0x70] sm:$0xff]  ;;  %786 = vst [vmem:[%s1506_s28 + $0x18] sm:$0xff] %v770_v42  ;;  %791 = vst [vmem:[%s1506_s28 + $0x40] sm:$0xff] %v775_v51 }
 0x154   : > { %v662_v33 = vld [vmem:[#allocation2 + $0x38] sm:$0xff]  ;;  %v771_v43 = vadd.f32 %v755_v29, %v659_v27  ;;  %v667_v59 = vld [vmem:[#allocation2 + $0x60] sm:$0xff]  ;;  %v781_v7 = vadd.f32 %v765_v5, %v669_v1  ;;  %792 = vst [vmem:[%s1506_s28 + $0x48] sm:$0xff] %v776_v52  ;;  %793 = vst [vmem:[%s1506_s28 + $0x50] sm:$0xff] %v777_v57 }
 0x155   : > { %v660_v28 = vld [vmem:[#allocation2 + $0x28] sm:$0xff]  ;;  %v1034_v38 = vpack.c.bf16 %v662_v33, %v661_v32  ;;  %v774_v50 = vadd.f32 %v758_v39, %v662_v33  ;;  %v779_v0 = vadd.f32 %v763_v61, %v667_v59  ;;  %v670_v2 = vld [vmem:[#allocation2 + $0x78] sm:$0xff]  ;;  %789 = vst [vmem:[%s1506_s28 + $0x30] sm:$0xff] %v773_v49  ;;  %794 = vst [vmem:[%s1506_s28 + $0x58] sm:$0xff] %v778_v58 }
 0x156   : > { %v1029_v31 = vpack.c.bf16 %v660_v28, %v659_v27  ;;  %v772_v44 = vadd.f32 %v756_v30, %v660_v28  ;;  %v668_v60 = vld [vmem:[#allocation2 + $0x68] sm:$0xff]  ;;  %v1054_v4 = vpack.c.bf16 %v670_v2, %v669_v1  ;;  %v782_v8 = vadd.f32 %v766_v6, %v670_v2  ;;  %787 = vst [vmem:[%s1506_s28 + $0x20] sm:$0xff] %v771_v43 }
 0x157   : > { %1058 = vst [vmem:[%s1510_s18 + $0x18] sm:$0xff] %v1034_v38   ;;  %v1049_v62 = vpack.c.bf16 %v668_v60, %v667_v59  ;;  %v780_v3 = vadd.f32 %v764_v63, %v668_v60  ;;  %790 = vst [vmem:[%s1506_s28 + $0x38] sm:$0xff] %v774_v50 }
 0x158   : > { %1057 = vst [vmem:[%s1510_s18 + $0x10] sm:$0xff] %v1029_v31   ;;  %788 = vst [vmem:[%s1506_s28 + $0x28] sm:$0xff] %v772_v44 }
 0x159   : > { %1061 = vst [vmem:[%s1510_s18 + $0x30] sm:$0xff] %v1049_v62   ;;  %795 = vst [vmem:[%s1506_s28 + $0x60] sm:$0xff] %v779_v0 }
 0x15a   : > { %1062 = vst [vmem:[%s1510_s18 + $0x38] sm:$0xff] %v1054_v4   ;;  %796 = vst [vmem:[%s1506_s28 + $0x68] sm:$0xff] %v780_v3 }
 0x15b   : > { %797 = vst [vmem:[%s1506_s28 + $0x70] sm:$0xff] %v781_v7  ;;  %798 = vst [vmem:[%s1506_s28 + $0x78] sm:$0xff] %v782_v8 }
 0x15c PF: > { %s1015_s20 = sshll.u32 %s1331_s21, 10  ;;  %s818_s6 = sshll.u32 %s1510_s18, 4  ;;  %s1583_s6 = int_to_ptr.vmem [resolvable:$true] %s818_s6 }
 0x15d   : > { %s1580_s9 = scalar_lea.hbm %s1648_s3, %s1015_s20  ;;  %s1587_s29 = scalar_lea.sflag [#allocation5], %s328_s13 }
 0x15e   : > { %s1233_s28 = scalar_lea.vmem %s1583_s6, 1024  ;;  %s1346_s21 = smov [#allocation4]  }
 0x15f   : > { %p1234_p6 = scmp.ne.s32.totalorder %s1583_s6, %s1233_s28  ;;  %s1237_s0 = sshll.u32 %s1346_s21, 4  ;;  %s1238_s0 = int_to_ptr.vmem [resolvable:$false] %s1237_s0 }
 0x160   : > { %s1239_s5 = scalar_lea.vmem %s1238_s0, 2048  ;;  %p1240_p10 = scmp.lt.s32.totalorder %s1583_s6, %s1238_s0 }
 0x161   : > { %p1235_p8 = pnand %p1234_p6, %p1446_p7  ;;  %p1241_p11 = scmp.lt.s32.totalorder %s1239_s5, %s1233_s28 }
 0x163   : > { %p1236_p9 = pneg %p1235_p8  ;;  %p1242_p13 = por %p1241_p11, %p1240_p10 }
 0x165   : > { %p1243_p0 = pnand %p1242_p13, %p1236_p9 }
 0x167   : > { %1246 = shalt.err (!%p1243_p0)
}
 0x168   : > { %s1247_s13 = scalar_lea.hbm %s1580_s9, 1024  ;;  %s1251_s25 = scalar_lea.hbm %s1648_s3, 2048 }
 0x169   : > { %p1248_p1 = scmp.ne.s32.totalorder %s1580_s9, %s1247_s13  ;;  %p1252_p4 = scmp.lt.u32.totalorder %s1580_s9, %s1648_s3 }
 0x16a   : > { %p1253_p5 = scmp.lt.u32.totalorder %s1251_s25, %s1247_s13  ;;  %p1255_p8 = scmp.lt.u32.totalorder %s1247_s13, %s1580_s9 }
 0x16b   : > { %p1249_p2 = pnand %p1248_p1, %p1446_p7 }
 0x16c   : > { %p1254_p6 = por %p1253_p5, %p1252_p4 }
 0x16d   : > { %p1250_p3 = pneg %p1249_p2 }
 0x16e   : > { %p1256_p9 = por %p1255_p8, %p1254_p6 }
 0x170   : > { %p1257_p10 = pnand %p1256_p9, %p1250_p3 }
 0x172   : > { %1260 = shalt.err (!%p1257_p10)
}
 0x173   : > { %s1347_s20 = smov 64   ;;  %s1348_s27 = smov 4  }
 0x174   : > { %1127 = dma.vmem_to_hbm [thread:$0]  (%p1446_p7), %s1583_s6, 1024, %s1580_s9, %s1587_s29, %s1347_s20, %s1347_s20, %s1348_s27  }
 0x175 PF: > { %p1133_p11 = scmp.ge.s32.totalorder %s1343_s24, 2  ;;  %s837_s8 = sand.u32 1, %s1307_s15  }
 0x176   : > { %s838_s28 = scalar_lea.sflag [#allocation5], %s837_s8 }
 0x177   : > { %p1130_p13 = pnand %p1133_p11, %p1454_p12 }
 0x179   : > { %1302 = dma.done.wait (!%p1130_p13), %s838_s28, 1024  }
 0x17a   : > { %1304 = vsyncadd (!%p1130_p13), %s838_s28, 4294966272  ;;  %s18_s24 = sadd.s32 1, %s1343_s24   ;;  %s1659_s7 = sld [smem:[#allocation7_spill]] }
 0x17b   : > { %p15_p0 = scmp.ge.s32.totalorder %s18_s24, 6   ;;  %s1660_s9 = sld [smem:[#allocation8_spill]] }
 0x17c   : > { %s1661_s15 = smov %s1311_s16  ;;  %s1662_s16 = smov %s1315_s17 }
 0x17d   : > { %s1663_s17 = smov %s1459_s11  ;;  %s1664_s18 = smov %s1323_s19 }
 0x17e   : > { %s1665_s19 = smov %s1462_s12  ;;  %s1666_s20 = smov %s1335_s22 }
 0x17f   : > { %s1667_s21 = smov %s1339_s23  ;;  %17 = sbr.rel (!%p15_p0) target bundleno = 8 (0x8), region = 137 }
 0x180   : > { %s1668_s22 = smov %s1659_s7 }
 0x181   : > { %s1669_s23 = smov %s1660_s9 }
 0x186   :  { %851 = vsyncpa [#allocation5], 1 }
 0x187   :  { %853 = vsyncpa [#allocation5 + $0x1], 1 }

// kernel: recommender_forward.3
= control target key start
LH: loop header
LB: loop body
LE: loop exit
PB: predicated region body
PF: predicated region fallthrough
CT: control target
= control target key end

     0   :  { %s1262_s15 = smov 0   ;;  %s1264_s16 = smov 0   ;;  %s1446_s0 = inlined_call_operand.vmem [shape: bf16[256,256], index: 0, kind: input, shape index: {}]   ;;  %s1447_s1 = inlined_call_operand.vmem [shape: bf16[256,128], index: 1, kind: input, shape index: {}]   ;;  %s1448_s2 = inlined_call_operand.vmem [shape: f32[256,128], index: 2, kind: input, shape index: {}, may-alias: {2,4}]   ;;  %s1449_s3 = inlined_call_operand.vmem [shape: bf16[256,128], index: 3, kind: output, shape index: {0}]   ;;  %s1450_s4 = inlined_call_operand.vmem [shape: f32[256,128], index: 4, kind: output, shape index: {1}, may-alias: {2,4}]  }
   0x1   :  { %s1266_s17 = smov 0   ;;  %s1268_s18 = smov 0  }
   0x2   :  { %s1270_s19 = smov 0   ;;  %s1272_s20 = smov 0  }
   0x3   :  { %s1274_s21 = smov 0  }
   0x4 LB: > { %s24_s22 = sadd.s32 1, %s1226_s19  ;;  %s27_s23 = sadd.s32 1, %s1230_s20  ;;  %s1234_s21 = sphi %s1274_s21, %s15_s21   ;;  %s1230_s20 = sphi %s1272_s20, %s1456_s20   ;;  %s1226_s19 = sphi %s1270_s19, %s1455_s19   ;;  %s1222_s18 = sphi %s1268_s18, %s1454_s18   ;;  %s1218_s17 = sphi %s1266_s17, %s1453_s17   ;;  %s1214_s16 = sphi %s1264_s16, %s1452_s16   ;;  %s1210_s15 = sphi %s1262_s15, %s1451_s15  }
   0x5   : > { %p25_p0 = scmp.ge.s32.totalorder %s24_s22, 2  ;;  %p43_p1 = scmp.ne.s32.totalorder %s1214_s16, %s1210_s15 }
   0x6   : > { %p44_p2 = scmp.eq.s32.totalorder %s1234_s21, 0  ;;  %s36_s27 = sadd.s32 1, %s1214_s16 }
   0x7   : > { %s1458_s22 = smov (%p25_p0, %s24_s22), 0  ;;  %s1460_s23 = smov (!%p25_p0, %s27_s23), %s1230_s20 }
   0x8   : > { %p45_p3 = por %p44_p2, %p43_p1  ;;  %p29_p4 = scmp.ge.s32.totalorder %s1460_s23, 2 }
   0x9   : > { %s32_s24 = ssub.s32 %s1226_s19, %s1458_s22  ;;  %p928_p6 = scmp.ge.s32.totalorder %s1234_s21, 4 }
   0xa   : > { %s1462_s23 = smov (%p29_p4, %s1460_s23), 0 }
   0xb   : > { %s31_s25 = ssub.s32 %s1230_s20, %s1462_s23  ;;  %171 = sbr.rel (%p928_p6) target bundleno = 34 (0x22), region = 20 }
   0xc   : > { %s33_s26 = sor.u32 %s32_s24, %s31_s25 }
   0xd   : > { %p34_p5 = scmp.eq.s32.totalorder %s33_s26, 0 }
   0xf   : > { %s1313_s28 = scalar_select %p34_p5, %s1214_s16, %s36_s27  }
  0x12   : > { %174 = sbr.rel (!%p45_p3) target bundleno = 34 (0x22), region = 24  ;;  %s176_s29 = sand.u32 (%p45_p3), 1, %s1214_s16  }
  0x13   : > { %s979_s30 = sshll.u32 (%p45_p3), %s1230_s20, 5  ;;  %s929_s5 = sshll.u32 (%p45_p3), %s176_s29, 6 }
  0x14   : > { %s181_s6 = sadd.s32 (%p45_p3), %s1226_s19, %s979_s30  ;;  %s178_s11 = scalar_lea.vmem (%p45_p3), [#allocation3], %s929_s5 }
  0x15   : > { %s932_s7 = sshll.u32 (%p45_p3), %s181_s6, 2 }
  0x16   : > { %s1322_s10 = scalar_lea.vmem (%p45_p3), %s1446_s0, %s932_s7 }
  0x17   : > { %v199_v0 = vld [vmem:[%s1322_s10] sm:$0xf] (%p45_p3)  ;;  %v201_v1 = vld [vmem:[%s1322_s10 + $0x8] sm:$0xf] (%p45_p3)  ;;  %v203_v2 = vld [vmem:[%s1322_s10 + $0x10] sm:$0xf] (%p45_p3) }
  0x18   : > { %200 = vst [vmem:[%s178_s11] sm:$0xf] (%p45_p3), %v199_v0  ;;  %202 = vst [vmem:[%s178_s11 + $0x4] sm:$0xf] (%p45_p3), %v201_v1  ;;  %v205_v3 = vld [vmem:[%s1322_s10 + $0x18] sm:$0xf] (%p45_p3) }
  0x19   : > { %204 = vst [vmem:[%s178_s11 + $0x8] sm:$0xf] %v203_v2  ;;  %v207_v4 = vld [vmem:[%s1322_s10 + $0x20] sm:$0xf]  ;;  %v209_v5 = vld [vmem:[%s1322_s10 + $0x28] sm:$0xf] }
  0x1a   : > { %206 = vst [vmem:[%s178_s11 + $0xc] sm:$0xf] %v205_v3  ;;  %208 = vst [vmem:[%s178_s11 + $0x10] sm:$0xf] %v207_v4  ;;  %v211_v6 = vld [vmem:[%s1322_s10 + $0x30] sm:$0xf] }
  0x1b   : > { %210 = vst [vmem:[%s178_s11 + $0x14] sm:$0xf] %v209_v5  ;;  %v213_v7 = vld [vmem:[%s1322_s10 + $0x38] sm:$0xf]  ;;  %v215_v8 = vld [vmem:[%s1322_s10 + $0x40] sm:$0xf] }
  0x1c   : > { %212 = vst [vmem:[%s178_s11 + $0x18] sm:$0xf] %v211_v6  ;;  %214 = vst [vmem:[%s178_s11 + $0x1c] sm:$0xf] %v213_v7  ;;  %v217_v9 = vld [vmem:[%s1322_s10 + $0x48] sm:$0xf] }
  0x1d   : > { %216 = vst [vmem:[%s178_s11 + $0x20] sm:$0xf] %v215_v8  ;;  %v219_v10 = vld [vmem:[%s1322_s10 + $0x50] sm:$0xf]  ;;  %v221_v11 = vld [vmem:[%s1322_s10 + $0x58] sm:$0xf] }
  0x1e   : > { %218 = vst [vmem:[%s178_s11 + $0x24] sm:$0xf] %v217_v9  ;;  %220 = vst [vmem:[%s178_s11 + $0x28] sm:$0xf] %v219_v10  ;;  %v223_v12 = vld [vmem:[%s1322_s10 + $0x60] sm:$0xf] }
  0x1f   : > { %222 = vst [vmem:[%s178_s11 + $0x2c] sm:$0xf] %v221_v11  ;;  %v225_v13 = vld [vmem:[%s1322_s10 + $0x68] sm:$0xf]  ;;  %v227_v14 = vld [vmem:[%s1322_s10 + $0x70] sm:$0xf] }
  0x20   : > { %224 = vst [vmem:[%s178_s11 + $0x30] sm:$0xf] %v223_v12  ;;  %226 = vst [vmem:[%s178_s11 + $0x34] sm:$0xf] %v225_v13  ;;  %v229_v15 = vld [vmem:[%s1322_s10 + $0x78] sm:$0xf] }
  0x21   : > { %228 = vst [vmem:[%s178_s11 + $0x38] sm:$0xf] %v227_v14  ;;  %230 = vst [vmem:[%s178_s11 + $0x3c] sm:$0xf] %v229_v15 }
  0x22 PF: > { %p933_p7 = scmp.ge.s32.totalorder %s1234_s21, 1  ;;  %p293_p8 = scmp.lt.s32.totalorder %s1234_s21, 5 }
  0x24   : > { %p294_p9 = pnand %p933_p7, %p293_p8 }
  0x25   : > { %s300_s12 = sand.u32 (!%p294_p9), 1, %s1210_s15   ;;  %s935_s13 = sshll.u32 (!%p294_p9), %s1222_s18, 4 }
  0x26   : > { %297 = sbr.rel (%p294_p9) target bundleno = 331 (0x14b), region = 69  ;;  %s934_s14 = sshll.u32 (!%p294_p9), %s300_s12, 6 }
  0x27   : > { %p337_p10 = scmp.lt.s32.totalorder (!%p294_p9), %s935_s13, 31  ;;  %s1359_s18 = scalar_lea.vmem (!%p294_p9), [#allocation3], %s934_s14 }
  0x28   : > { %p941_p11 = scmp.ne.s32.totalorder (!%p294_p9), %s1218_s17, 0 }
  0x2d   : > { %s1464_s13 = smov (!%p337_p10, %s935_s13), 31  ;;  %358 = sbr.rel (%p941_p11) target bundleno = 55 (0x37), region = 77 }
  0x2e   : > { %s936_s24 = sshll.u32 %s1464_s13, 3  ;;  %s938_s25 = sshll.u32 %s1464_s13, 2  ;;  %v1236_v16 = vmov (!%p941_p11), 0.0  }
  0x2f   : > { %s1347_s29 = scalar_lea.vmem %s1448_s2, %s936_s24  ;;  %s1352_s6 = scalar_lea.vmem %s1449_s3, %s938_s25  ;;  %359 = vst [vmem:[#allocation2] sm:$0xff] (!%p941_p11), %v1236_v16  ;;  %360 = vst [vmem:[#allocation2 + $0x8] sm:$0xff] (!%p941_p11), %v1236_v16 }
  0x30   : > { %s1357_s15 = scalar_lea.vmem %s1450_s4, %s936_s24  ;;  %361 = vst [vmem:[#allocation2 + $0x10] sm:$0xff] (!%p941_p11), %v1236_v16  ;;  %362 = vst [vmem:[#allocation2 + $0x18] sm:$0xff] (!%p941_p11), %v1236_v16 }
  0x31   : > { %363 = vst [vmem:[#allocation2 + $0x20] sm:$0xff] (!%p941_p11), %v1236_v16  ;;  %364 = vst [vmem:[#allocation2 + $0x28] sm:$0xff] (!%p941_p11), %v1236_v16 }
  0x32   : > { %365 = vst [vmem:[#allocation2 + $0x30] sm:$0xff] (!%p941_p11), %v1236_v16  ;;  %366 = vst [vmem:[#allocation2 + $0x38] sm:$0xff] (!%p941_p11), %v1236_v16 }
  0x33   : > { %367 = vst [vmem:[#allocation2 + $0x40] sm:$0xff] (!%p941_p11), %v1236_v16  ;;  %368 = vst [vmem:[#allocation2 + $0x48] sm:$0xff] (!%p941_p11), %v1236_v16 }
  0x34   : > { %369 = vst [vmem:[#allocation2 + $0x50] sm:$0xff] %v1236_v16  ;;  %370 = vst [vmem:[#allocation2 + $0x58] sm:$0xff] %v1236_v16 }
  0x35   : > { %371 = vst [vmem:[#allocation2 + $0x60] sm:$0xff] %v1236_v16  ;;  %372 = vst [vmem:[#allocation2 + $0x68] sm:$0xff] %v1236_v16 }
  0x36   : > { %373 = vst [vmem:[#allocation2 + $0x70] sm:$0xff] %v1236_v16  ;;  %374 = vst [vmem:[#allocation2 + $0x78] sm:$0xff] %v1236_v16 }
  0x37 PF: > { %s942_s9 = sshll.u32 %s1218_s17, 7  ;;  %v1172_v17 = vld [vmem:[%s1359_s18] sm:$0xff]   ;;  %v1174_v27 = vld [vmem:[%s1359_s18 + $0x8] sm:$0xff]   ;;  %v1176_v29 = vld [vmem:[%s1359_s18 + $0x10] sm:$0xff]   ;;  %p960_p12 = scmp.ne.s32.totalorder %s1218_s17, 1 }
  0x38   : > { %s376_s10 = sshra.s32 %s942_s9, 3  ;;  %v1173_v18 = vld [vmem:[%s1359_s18 + $0x20] sm:$0xff]   ;;  %1075 = vmatprep.mubr.bf16.mxu0 %v1172_v17  ;;  %v1175_v28 = vld [vmem:[%s1359_s18 + $0x28] sm:$0xff]   ;;  %v1177_v30 = vld [vmem:[%s1359_s18 + $0x30] sm:$0xff]  }
  0x39   : > { %s943_s11 = sshll.u32 %s376_s10, 2  ;;  %1083 = vmatprep.mubr.bf16.mxu1 %v1173_v18  ;;  %v1178_v31 = vld [vmem:[%s1359_s18 + $0x18] sm:$0xff]   ;;  %v396_v35 = vld [vmem:[#allocation2] sm:$0xff]  ;;  %v397_v45 = vld [vmem:[#allocation2 + $0x8] sm:$0xff] }
  0x3a   : > { %s1368_s14 = scalar_lea.vmem %s1447_s1, %s943_s11  ;;  %v1179_v32 = vld [vmem:[%s1359_s18 + $0x38] sm:$0xff]   ;;  %v398_v33 = vld [vmem:[#allocation2 + $0x10] sm:$0xff] }
  0x3b   : > { %v1164_v19 = vld [vmem:[%s1368_s14] sm:$0xff]   ;;  %v1165_v20 = vld [vmem:[%s1368_s14 + $0x8] sm:$0xff]   ;;  %v1166_v21 = vld [vmem:[%s1368_s14 + $0x10] sm:$0xff]  }
  0x3c   : > { %1059 = vmatprep.subr.bf16.mxu0 %v1164_v19  ;;  %1091 = vmatprep.subr.bf16.mxu1 %v1164_v19  ;;  %v1167_v22 = vld [vmem:[%s1368_s14 + $0x18] sm:$0xff]   ;;  %v1168_v23 = vld [vmem:[%s1368_s14 + $0x20] sm:$0xff]   ;;  %v1169_v24 = vld [vmem:[%s1368_s14 + $0x28] sm:$0xff]  }
  0x3d   : > { %1060 = vmatpush3.bf16.msra.mxu0 %v1164_v19  ;;  %1099 = vmatpush3.bf16.msra.mxu1 %v1164_v19  ;;  %v1170_v25 = vld [vmem:[%s1368_s14 + $0x30] sm:$0xff]   ;;  %v1171_v26 = vld [vmem:[%s1368_s14 + $0x38] sm:$0xff]   ;;  %v404_v36 = vld [vmem:[#allocation2 + $0x40] sm:$0xff] }
  0x3e   : > { %1061 = vmatprep.subr.bf16.mxu0 %v1165_v20  ;;  %1092 = vmatprep.subr.bf16.mxu1 %v1165_v20  ;;  %v406_v34 = vld [vmem:[#allocation2 + $0x50] sm:$0xff]  ;;  %v399_v39 = vld [vmem:[#allocation2 + $0x18] sm:$0xff]  ;;  %v405_v46 = vld [vmem:[#allocation2 + $0x48] sm:$0xff] }
  0x3f   : > { %v407_v40 = vld [vmem:[#allocation2 + $0x58] sm:$0xff]  ;;  %v402_v57 = vld [vmem:[#allocation2 + $0x30] sm:$0xff]  ;;  %v400_v59 = vld [vmem:[#allocation2 + $0x20] sm:$0xff] }
  0x40   : > { %v410_v58 = vld [vmem:[#allocation2 + $0x70] sm:$0xff]  ;;  %v408_v60 = vld [vmem:[#allocation2 + $0x60] sm:$0xff]  ;;  %v403_v63 = vld [vmem:[#allocation2 + $0x38] sm:$0xff] }
  0x41   : > { %1062 = vmatpush3.bf16.msra.mxu0 %v1165_v20  ;;  %1100 = vmatpush3.bf16.msra.mxu1 %v1165_v20  ;;  %v411_v0 = vld [vmem:[#allocation2 + $0x78] sm:$0xff]  ;;  %v401_v5 = vld [vmem:[#allocation2 + $0x28] sm:$0xff]  ;;  %v753_v19 = vld [vmem:[%s1347_s29] sm:$0xff] (!%p960_p12) }
  0x42   : > { %1063 = vmatprep.subr.bf16.mxu0 %v1166_v21  ;;  %1093 = vmatprep.subr.bf16.mxu1 %v1166_v21  ;;  %v409_v6 = vld [vmem:[#allocation2 + $0x68] sm:$0xff] }
  0x45   : > { %1064 = vmatpush3.bf16.msra.mxu0 %v1166_v21  ;;  %1101 = vmatpush3.bf16.msra.mxu1 %v1166_v21  ;;  %v754_v21 = vld [vmem:[%s1347_s29 + $0x8] sm:$0xff] (!%p960_p12) }
  0x46   : > { %1065 = vmatprep.subr.bf16.mxu0 %v1167_v22  ;;  %1094 = vmatprep.subr.bf16.mxu1 %v1167_v22 }
  0x49   : > { %1066 = vmatpush3.bf16.msra.mxu0 %v1167_v22  ;;  %1102 = vmatpush3.bf16.msra.mxu1 %v1167_v22 }
  0x4a   : > { %1067 = vmatprep.subr.bf16.mxu0 %v1168_v23  ;;  %1095 = vmatprep.subr.bf16.mxu1 %v1168_v23 }
  0x4d   : > { %1068 = vmatpush3.bf16.msra.mxu0 %v1168_v23  ;;  %1103 = vmatpush3.bf16.msra.mxu1 %v1168_v23 }
  0x4e   : > { %1069 = vmatprep.subr.bf16.mxu0 %v1169_v24  ;;  %1096 = vmatprep.subr.bf16.mxu1 %v1169_v24 }
  0x51   : > { %1070 = vmatpush3.bf16.msra.mxu0 %v1169_v24  ;;  %1104 = vmatpush3.bf16.msra.mxu1 %v1169_v24 }
  0x52   : > { %1071 = vmatprep.subr.bf16.mxu0 %v1170_v25  ;;  %1097 = vmatprep.subr.bf16.mxu1 %v1170_v25 }
  0x55   : > { %1072 = vmatpush3.bf16.msra.mxu0 %v1170_v25  ;;  %1105 = vmatpush3.bf16.msra.mxu1 %v1170_v25  ;;  %v755_v25 = vld [vmem:[%s1347_s29 + $0x10] sm:$0xff] (!%p960_p12) }
  0x56   : > { %1073 = vmatprep.subr.bf16.mxu0 %v1171_v26  ;;  %1098 = vmatprep.subr.bf16.mxu1 %v1171_v26 }
  0x59   : > { %1074 = vmatpush3.bf16.msra.mxu0 %v1171_v26  ;;  %1106 = vmatpush3.bf16.msra.mxu1 %v1171_v26  ;;  %v756_v26 = vld [vmem:[%s1347_s29 + $0x18] sm:$0xff] (!%p960_p12) }
  0x5c   : > { %1076 = vmatmul.mubr.bf16.vlgmr.msra.gmra.mrb[0].mxu0 %v1174_v27  ;;  %1084 = vmatmul.mubr.bf16.vlgmr.msra.gmra.mrb[0].mxu1 %v1175_v28 }
  0x5d   : > { %1079 = vmatprep.mubr.bf16.mxu0 %v1176_v29  ;;  %1087 = vmatprep.mubr.bf16.mxu1 %v1177_v30  ;;  %v757_v29 = vld [vmem:[%s1347_s29 + $0x20] sm:$0xff] (!%p960_p12)  ;;  %v758_v30 = vld [vmem:[%s1347_s29 + $0x28] sm:$0xff] (!%p960_p12) }
  0x64   : > { %1080 = vmatmul.mubr.bf16.gmra.mrb[4].mxu0 %v1178_v31  ;;  %1088 = vmatmul.mubr.bf16.gmra.mrb[4].mxu1 %v1179_v32 }
 0x12f   : > { %v1077_v37 = vpop.f32.mrb[0].mxu0  ;;  %v1085_v38 = vpop.f32.mrb[0].mxu1 }
 0x130   : > { %v623_v41 = vadd.f32 %v1077_v37, %v398_v33  ;;  %v631_v42 = vadd.f32 %v1085_v38, %v406_v34  ;;  %v558_v43 = vpop.f32.mrb[1].mxu0  ;;  %v590_v44 = vpop.f32.mrb[1].mxu1  ;;  %v759_v34 = vld [vmem:[%s1347_s29 + $0x30] sm:$0xff] (!%p960_p12) }
 0x131   : > { %v621_v47 = vadd.f32 %v558_v43, %v396_v35  ;;  %v629_v48 = vadd.f32 %v590_v44, %v404_v36  ;;  %v1078_v49 = vpop.f32.mrb[2].mxu0  ;;  %v1086_v50 = vpop.f32.mrb[2].mxu1 }
 0x132   : > { %639 = vst [vmem:[#allocation2 + $0x10] sm:$0xff] %v623_v41  ;;  %647 = vst [vmem:[#allocation2 + $0x50] sm:$0xff] %v631_v42  ;;  %v624_v51 = vadd.f32 %v1078_v49, %v399_v39  ;;  %v632_v52 = vadd.f32 %v1086_v50, %v407_v40  ;;  %v561_v53 = vpop.f32.mrb[3].mxu0  ;;  %v593_v54 = vpop.f32.mrb[3].mxu1  ;;  %v760_v39 = vld [vmem:[%s1347_s29 + $0x38] sm:$0xff] (!%p960_p12) }
 0x133   : > { %637 = vst [vmem:[#allocation2] sm:$0xff] %v621_v47  ;;  %645 = vst [vmem:[#allocation2 + $0x40] sm:$0xff] %v629_v48  ;;  %v622_v55 = vadd.f32 %v561_v53, %v397_v45  ;;  %v630_v56 = vadd.f32 %v593_v54, %v405_v46  ;;  %v761_v46 = vld [vmem:[%s1347_s29 + $0x40] sm:$0xff] (!%p960_p12)  ;;  %v762_v47 = vld [vmem:[%s1347_s29 + $0x48] sm:$0xff] (!%p960_p12) }
 0x134   : > { %640 = vst [vmem:[#allocation2 + $0x18] sm:$0xff] %v624_v51  ;;  %648 = vst [vmem:[#allocation2 + $0x58] sm:$0xff] %v632_v52  ;;  %v763_v54 = vld [vmem:[%s1347_s29 + $0x50] sm:$0xff] (!%p960_p12) }
 0x135   : > { %638 = vst [vmem:[#allocation2 + $0x8] sm:$0xff] %v622_v55  ;;  %646 = vst [vmem:[#allocation2 + $0x48] sm:$0xff] %v630_v56  ;;  %v764_v55 = vld [vmem:[%s1347_s29 + $0x58] sm:$0xff] (!%p960_p12) }
 0x137   : > { %v1081_v61 = vpop.f32.mrb[4].mxu0  ;;  %v1089_v62 = vpop.f32.mrb[4].mxu1  ;;  %656 = sbr.rel (%p960_p12) target bundleno = 331 (0x14b), region = 81 }
 0x138   : > { %v627_v1 = vadd.f32 %v1081_v61, %v402_v57  ;;  %v635_v2 = vadd.f32 %v1089_v62, %v410_v58  ;;  %v574_v3 = vpop.f32.mrb[5].mxu0  ;;  %v606_v4 = vpop.f32.mrb[5].mxu1  ;;  %v765_v61 = vld [vmem:[%s1347_s29 + $0x60] sm:$0xff] (!%p960_p12) }
 0x139   : > { %v625_v7 = vadd.f32 %v574_v3, %v400_v59  ;;  %v633_v8 = vadd.f32 %v606_v4, %v408_v60  ;;  %v1082_v9 = vpop.f32.mrb[6].mxu0  ;;  %v1090_v10 = vpop.f32.mrb[6].mxu1  ;;  %v659_v22 = vld [vmem:[#allocation2 + $0x10] sm:$0xff] (!%p960_p12) }
 0x13a   : > { %643 = vst [vmem:[#allocation2 + $0x30] sm:$0xff] %v627_v1  ;;  %651 = vst [vmem:[#allocation2 + $0x70] sm:$0xff] %v635_v2  ;;  %v628_v11 = vadd.f32 %v1082_v9, %v403_v63  ;;  %v636_v12 = vadd.f32 %v1090_v10, %v411_v0  ;;  %v577_v13 = vpop.f32.mrb[7].mxu0  ;;  %v609_v14 = vpop.f32.mrb[7].mxu1  ;;  %v657_v17 = vld [vmem:[#allocation2] sm:$0xff] (!%p960_p12)  ;;  %v771_v37 = vadd.f32 (!%p960_p12), %v755_v25, %v659_v22  ;;  %v667_v48 = vld [vmem:[#allocation2 + $0x50] sm:$0xff] (!%p960_p12) }
 0x13b   : > { %641 = vst [vmem:[#allocation2 + $0x20] sm:$0xff] %v625_v7  ;;  %649 = vst [vmem:[#allocation2 + $0x60] sm:$0xff] %v633_v8  ;;  %v626_v15 = vadd.f32 %v577_v13, %v401_v5  ;;  %v634_v16 = vadd.f32 %v609_v14, %v409_v6  ;;  %v660_v23 = vld [vmem:[#allocation2 + $0x18] sm:$0xff] (!%p960_p12)  ;;  %v769_v35 = vadd.f32 (!%p960_p12), %v753_v19, %v657_v17  ;;  %v665_v40 = vld [vmem:[#allocation2 + $0x40] sm:$0xff] (!%p960_p12) }
 0x13c   : > { %644 = vst [vmem:[#allocation2 + $0x38] sm:$0xff] %v628_v11  ;;  %652 = vst [vmem:[#allocation2 + $0x78] sm:$0xff] %v636_v12  ;;  %v658_v18 = vld [vmem:[#allocation2 + $0x8] sm:$0xff] (!%p960_p12)  ;;  %v1004_v24 = vpack.c.bf16 (!%p960_p12), %v660_v23, %v659_v22  ;;  %v772_v42 = vadd.f32 (!%p960_p12), %v756_v26, %v660_v23  ;;  %v777_v51 = vadd.f32 (!%p960_p12), %v761_v46, %v665_v40  ;;  %v668_v53 = vld [vmem:[#allocation2 + $0x58] sm:$0xff] (!%p960_p12) }
 0x13d   : > { %642 = vst [vmem:[#allocation2 + $0x28] sm:$0xff] %v626_v15  ;;  %650 = vst [vmem:[#allocation2 + $0x68] sm:$0xff] %v634_v16  ;;  %v999_v20 = vpack.c.bf16 (!%p960_p12), %v658_v18, %v657_v17  ;;  %v770_v36 = vadd.f32 (!%p960_p12), %v754_v21, %v658_v18  ;;  %v666_v41 = vld [vmem:[#allocation2 + $0x48] sm:$0xff] (!%p960_p12)  ;;  %v1024_v56 = vpack.c.bf16 (!%p960_p12), %v668_v53, %v667_v48  ;;  %v767_v5 = vld [vmem:[%s1347_s29 + $0x70] sm:$0xff] (!%p960_p12) }
 0x13e   : > { %1036 = vst [vmem:[%s1352_s6 + $0x8] sm:$0xff] %v1004_v24   ;;  %v1019_v45 = vpack.c.bf16 %v666_v41, %v665_v40  ;;  %v778_v52 = vadd.f32 %v762_v47, %v666_v41  ;;  %v779_v57 = vadd.f32 %v763_v54, %v667_v48  ;;  %v780_v58 = vadd.f32 %v764_v55, %v668_v53  ;;  %v766_v63 = vld [vmem:[%s1347_s29 + $0x68] sm:$0xff]  ;;  %v768_v6 = vld [vmem:[%s1347_s29 + $0x78] sm:$0xff] }
 0x13f   : > { %1000 = vst [vmem:[%s1352_s6] sm:$0xff] %v999_v20   ;;  %1040 = vst [vmem:[%s1352_s6 + $0x28] sm:$0xff] %v1024_v56  }
 0x140   : > { %1039 = vst [vmem:[%s1352_s6 + $0x20] sm:$0xff] %v1019_v45   ;;  %785 = vst [vmem:[%s1357_s15] sm:$0xff] %v769_v35 }
 0x141   : > { %v663_v32 = vld [vmem:[#allocation2 + $0x30] sm:$0xff]  ;;  %786 = vst [vmem:[%s1357_s15 + $0x8] sm:$0xff] %v770_v36  ;;  %787 = vst [vmem:[%s1357_s15 + $0x10] sm:$0xff] %v771_v37 }
 0x142   : > { %v661_v27 = vld [vmem:[#allocation2 + $0x20] sm:$0xff]  ;;  %v775_v49 = vadd.f32 %v759_v34, %v663_v32  ;;  %v671_v1 = vld [vmem:[#allocation2 + $0x70] sm:$0xff]  ;;  %788 = vst [vmem:[%s1357_s15 + $0x18] sm:$0xff] %v772_v42  ;;  %793 = vst [vmem:[%s1357_s15 + $0x40] sm:$0xff] %v777_v51 }
 0x143   : > { %v664_v33 = vld [vmem:[#allocation2 + $0x38] sm:$0xff]  ;;  %v773_v43 = vadd.f32 %v757_v29, %v661_v27  ;;  %v669_v59 = vld [vmem:[#allocation2 + $0x60] sm:$0xff]  ;;  %v783_v7 = vadd.f32 %v767_v5, %v671_v1  ;;  %794 = vst [vmem:[%s1357_s15 + $0x48] sm:$0xff] %v778_v52  ;;  %795 = vst [vmem:[%s1357_s15 + $0x50] sm:$0xff] %v779_v57 }
 0x144   : > { %v662_v28 = vld [vmem:[#allocation2 + $0x28] sm:$0xff]  ;;  %v1014_v38 = vpack.c.bf16 %v664_v33, %v663_v32  ;;  %v776_v50 = vadd.f32 %v760_v39, %v664_v33  ;;  %v781_v0 = vadd.f32 %v765_v61, %v669_v59  ;;  %v672_v2 = vld [vmem:[#allocation2 + $0x78] sm:$0xff]  ;;  %791 = vst [vmem:[%s1357_s15 + $0x30] sm:$0xff] %v775_v49  ;;  %796 = vst [vmem:[%s1357_s15 + $0x58] sm:$0xff] %v780_v58 }
 0x145   : > { %v1009_v31 = vpack.c.bf16 %v662_v28, %v661_v27  ;;  %v774_v44 = vadd.f32 %v758_v30, %v662_v28  ;;  %v670_v60 = vld [vmem:[#allocation2 + $0x68] sm:$0xff]  ;;  %v1034_v4 = vpack.c.bf16 %v672_v2, %v671_v1  ;;  %v784_v8 = vadd.f32 %v768_v6, %v672_v2  ;;  %789 = vst [vmem:[%s1357_s15 + $0x20] sm:$0xff] %v773_v43 }
 0x146   : > { %1038 = vst [vmem:[%s1352_s6 + $0x18] sm:$0xff] %v1014_v38   ;;  %v1029_v62 = vpack.c.bf16 %v670_v60, %v669_v59  ;;  %v782_v3 = vadd.f32 %v766_v63, %v670_v60  ;;  %792 = vst [vmem:[%s1357_s15 + $0x38] sm:$0xff] %v776_v50 }
 0x147   : > { %1037 = vst [vmem:[%s1352_s6 + $0x10] sm:$0xff] %v1009_v31   ;;  %790 = vst [vmem:[%s1357_s15 + $0x28] sm:$0xff] %v774_v44 }
 0x148   : > { %1041 = vst [vmem:[%s1352_s6 + $0x30] sm:$0xff] %v1029_v62   ;;  %797 = vst [vmem:[%s1357_s15 + $0x60] sm:$0xff] %v781_v0 }
 0x149   : > { %1042 = vst [vmem:[%s1352_s6 + $0x38] sm:$0xff] %v1034_v4   ;;  %798 = vst [vmem:[%s1357_s15 + $0x68] sm:$0xff] %v782_v3 }
 0x14a   : > { %799 = vst [vmem:[%s1357_s15 + $0x70] sm:$0xff] %v783_v7  ;;  %800 = vst [vmem:[%s1357_s15 + $0x78] sm:$0xff] %v784_v8 }
 0x14b PF: > { %s15_s21 = sadd.s32 1, %s1234_s21   ;;  %s1451_s15 = smov %s1214_s16 }
 0x14c   : > { %p12_p13 = scmp.ge.s32.totalorder %s15_s21, 6   ;;  %s1452_s16 = smov %s1313_s28 }
 0x14d   : > { %s1453_s17 = smov %s1226_s19  ;;  %s1454_s18 = smov %s1230_s20 }
 0x14e   : > { %s1455_s19 = smov %s1458_s22  ;;  %s1456_s20 = smov %s1462_s23 }
 0x14f   :  { %14 = sbr.rel (!%p12_p13) target bundleno = 4 (0x4), region = 132 }

// kernel: recommender_forward.5
= control target key start
LH: loop header
LB: loop body
LE: loop exit
PB: predicated region body
PF: predicated region fallthrough
CT: control target
= control target key end

     0   :  { %s2618_s0 = inlined_call_operand.vmem [shape: s32[12], index: 0, kind: input, shape index: {}]   ;;  %s2619_s3 = inlined_call_operand.vmem [shape: f32[256,128], index: 3, kind: input, shape index: {}]   ;;  %s2620_s4 = inlined_call_operand.vmem [shape: f32[256,128], index: 4, kind: input, shape index: {}]   ;;  %s2621_s5 = inlined_call_operand.hbm [shape: f32[1,1], index: 5, kind: output, shape index: {0}]   ;;  %s2622_s6 = inlined_call_operand.hbm [shape: f32[1,1], index: 6, kind: output, shape index: {1}]   ;;  %s2623_s1 = inlined_call_operand.vmem [shape: s32[12], index: 1, kind: input, shape index: {}]   ;;  %s2624_s2 = inlined_call_operand.vmem [shape: s32[48], index: 2, kind: input, shape index: {}]  }
   0x1   :  { %s12_s23 = sshll.u32 %s2618_s0, 4  ;;  %s16_s26 = sshll.u32 %s2623_s1, 4  ;;  %s13_s23 = int_to_ptr.vmem [resolvable:$true] %s12_s23  ;;  %s17_s26 = int_to_ptr.vmem [resolvable:$true] %s16_s26 }
   0x2   :  { %s2207_s27 = scalar_lea.vmem %s13_s23, 16  ;;  %p2212_p1 = scmp.lt.s32.totalorder %s13_s23, %s13_s23 }
   0x3   :  { %p2208_p0 = scmp.ne.s32.totalorder %s13_s23, %s2207_s27  ;;  %p2213_p2 = scmp.lt.s32.totalorder %s2207_s27, %s2207_s27 }
   0x5   :  { %p2214_p3 = por %p2213_p2, %p2212_p1 }
   0x7   :  { %p2215_p4 = pnand %p2214_p3, %p2208_p0 }
   0x9   :  { %2218 = shalt.err (!%p2215_p4)  }
   0xa   :  { %s2345_s28 = smov [#allocation10]   ;;  %s2219_s29 = scalar_lea.vmem %s17_s26, 16 }
   0xb   :  { %15 = dma.vmem_to_smem %s13_s23, 16, %s2345_s28, [#allocation9] }
   0xc   :  { %p2220_p5 = scmp.ne.s32.totalorder %s17_s26, %s2219_s29  ;;  %p2224_p6 = scmp.lt.s32.totalorder %s17_s26, %s17_s26 }
   0xd   :  { %p2225_p7 = scmp.lt.s32.totalorder %s2219_s29, %s2219_s29 }
   0xf   :  { %p2226_p8 = por %p2225_p7, %p2224_p6 }
  0x11   :  { %p2227_p9 = pnand %p2226_p8, %p2220_p5 }
  0x13   :  { %2230 = shalt.err (!%p2227_p9)  }
  0x14   :  { %s2346_s0 = smov [#allocation11]   ;;  %s20_s7 = sshll.u32 %s2624_s2, 4  ;;  %s21_s7 = int_to_ptr.vmem [resolvable:$true] %s20_s7 }
  0x15   :  { %19 = dma.vmem_to_smem %s17_s26, 16, %s2346_s0, [#allocation9] }
  0x16   :  { %s2231_s8 = scalar_lea.vmem %s21_s7, 16  ;;  %p2236_p11 = scmp.lt.s32.totalorder %s21_s7, %s21_s7 }
  0x17   :  { %p2232_p10 = scmp.ne.s32.totalorder %s21_s7, %s2231_s8  ;;  %p2237_p12 = scmp.lt.s32.totalorder %s2231_s8, %s2231_s8 }
  0x19   :  { %p2238_p13 = por %p2237_p12, %p2236_p11 }
  0x1b   :  { %p2239_p0 = pnand %p2238_p13, %p2232_p10 }
  0x1d   :  { %2242 = shalt.err (!%p2239_p0)  }
  0x1e   :  { %s2347_s9 = smov [#allocation12]  }
  0x1f   :  { %23 = dma.vmem_to_smem %s21_s7, 16, %s2347_s9, [#allocation9] }
  0x20   :  { %2303 = dma.done.wait [#allocation9], 48 }
  0x21   :  { %2304 = vsyncadd [#allocation9], 4294967248 }
  0x22   :  { %25 = sfence }
  0x23   :  { %26 = vsyncpa [#allocation14], 0 }
  0x24   :  { %27 = vsyncpa [#allocation16], 0  ;;  %s2396_s10 = smov 0  }
  0x25 LB: > { %p2060_p1 = scmp.ge.s32.totalorder %s2339_s10, 2  ;;  %s2339_s10 = sphi %s2396_s10, %s33_s10  }
  0x26   : > { %p2061_p2 = scmp.ne.s32.totalorder (!%p2060_p1), %s2339_s10, 0 }
  0x27   : > { %67 = sbr.rel (%p2060_p1) target bundleno = 506 (0x1fa), region = 12 }
  0x2e   : > { %75 = sbr.rel (%p2061_p2) target bundleno = 53 (0x35), region = 16  ;;  %vm76_vm0 = vcmask (!%p2061_p2), 0   ;;  %v2348_v0 = vmov (!%p2061_p2), 0.0  }
  0x2f   : > { %77 = vst.msk [vmem:[#allocation13] sm:$0x1] (!%p2061_p2), %vm76_vm0, %v2348_v0  ;;  %78 = vst.msk [vmem:[#allocation15] sm:$0x1] (!%p2061_p2), %vm76_vm0, %v2348_v0 }
  0x35 PF: > { %s2404_s2 = sshll.u32 %s2339_s10, 3 }
  0x36   : > { %p80_p3 = scmp.lt.s32.totalorder %s2404_s2, 11 }
  0x38   : > { %s81_s11 = scalar_select %p80_p3, %s2404_s2, 11 }
  0x3a   : > { %s82_s12 = sld [smem:[#allocation10 + %s81_s11]] }
  0x3b   : > { %s83_s13 = sld [smem:[#allocation11 + %s81_s11]] }
  0x40   : > { %s85_s16 = scalar_lea.vmem %s2619_s3, %s82_s12 }
  0x41   : > { %v103_v1 = vld [vmem:[%s85_s16] sm:$0x1] }
  0x42   : > { %104 = vst [vmem:[#allocation2] sm:$0x1] %v103_v1 }
  0x43   : > { %129 = vsyncadd [#allocation8], 16  ;;  %s1625_s19 = scalar_lea.vmem %s2619_s3, %s83_s13 }
  0x44   : > { %v2064_v2 = vld [vmem:[%s1625_s19 + $0x64] sm:$0x1] }
  0x45   : > { %150 = vst [vmem:[#allocation3] sm:$0x1] %v2064_v2 }
  0x46   : > { %175 = vsyncadd [#allocation8 + $0x1], 16  ;;  %s176_s22 = scalar_lea.vmem %s2620_s4, %s82_s12 }
  0x47   : > { %v195_v3 = vld [vmem:[%s176_s22] sm:$0x1] }
  0x48   : > { %196 = vst [vmem:[#allocation5] sm:$0x1] %v195_v3 }
  0x49   : > { %221 = vsyncadd [#allocation8 + $0x2], 16  ;;  %s1633_s25 = scalar_lea.vmem %s2620_s4, %s83_s13 }
  0x4a   : > { %v2066_v4 = vld [vmem:[%s1633_s25 + $0x64] sm:$0x1] }
  0x4b   : > { %242 = vst [vmem:[#allocation6] sm:$0x1] %v2066_v4 }
  0x4c   : > { %267 = vsyncadd [#allocation8 + $0x3], 16  ;;  %s2420_s26 = sshll.u32 %s81_s11, 2 }
  0x4d   : > { %s269_s27 = sld [smem:[#allocation12 + %s2420_s26]] }
  0x53   : > { %s1638_s0 = scalar_lea.vmem %s2619_s3, %s269_s27 }
  0x54   : > { %v2069_v5 = vld [vmem:[%s1638_s0 + $0x64] sm:$0x1] }
  0x55   : > { %291 = vst [vmem:[#allocation4] sm:$0x1] %v2069_v5 }
  0x56   : > { %316 = vsyncadd [#allocation8 + $0x4], 16  ;;  %s1643_s7 = scalar_lea.vmem %s2620_s4, %s269_s27 }
  0x57   : > { %v2071_v6 = vld [vmem:[%s1643_s7 + $0x64] sm:$0x1] }
  0x58   : > { %337 = vst [vmem:[#allocation7] sm:$0x1] %v2071_v6 }
  0x59   : > { %362 = vsyncadd [#allocation8 + $0x5], 16  ;;  %s363_s8 = sadd.s32 1, %s2420_s26 }
  0x5a   : > { %s364_s9 = sld [smem:[#allocation12 + %s363_s8]] }
  0x60   : > { %s1648_s13 = scalar_lea.vmem %s2619_s3, %s364_s9 }
  0x61   : > { %v2073_v7 = vld [vmem:[%s1648_s13 + $0x64] sm:$0x1] }
  0x62   : > { %387 = vst [vmem:[#allocation4 + $0x8] sm:$0x1] %v2073_v7 }
  0x63   : > { %412 = vsyncadd [#allocation8 + $0x6], 16  ;;  %s1654_s16 = scalar_lea.vmem %s2620_s4, %s364_s9 }
  0x64   : > { %v2075_v8 = vld [vmem:[%s1654_s16 + $0x64] sm:$0x1] }
  0x65   : > { %434 = vst [vmem:[#allocation7 + $0x8] sm:$0x1] %v2075_v8 }
  0x66   : > { %459 = vsyncadd [#allocation8 + $0x7], 16  ;;  %s460_s17 = sadd.s32 2, %s2420_s26 }
  0x67   : > { %s461_s18 = sld [smem:[#allocation12 + %s460_s17]] }
  0x6d   : > { %s1660_s21 = scalar_lea.vmem %s2619_s3, %s461_s18 }
  0x6e   : > { %v2077_v9 = vld [vmem:[%s1660_s21 + $0x64] sm:$0x1] }
  0x6f   : > { %484 = vst [vmem:[#allocation4 + $0x10] sm:$0x1] %v2077_v9 }
  0x70   : > { %509 = vsyncadd [#allocation8 + $0x8], 16  ;;  %s1666_s24 = scalar_lea.vmem %s2620_s4, %s461_s18 }
  0x71   : > { %v2079_v10 = vld [vmem:[%s1666_s24 + $0x64] sm:$0x1] }
  0x72   : > { %531 = vst [vmem:[#allocation7 + $0x10] sm:$0x1] %v2079_v10 }
  0x73   : > { %556 = vsyncadd [#allocation8 + $0x9], 16  ;;  %s557_s25 = sadd.s32 3, %s2420_s26 }
  0x74   : > { %s558_s27 = sld [smem:[#allocation12 + %s557_s25]] }
  0x7a   : > { %s1672_s0 = scalar_lea.vmem %s2619_s3, %s558_s27 }
  0x7b   : > { %v2081_v11 = vld [vmem:[%s1672_s0 + $0x64] sm:$0x1] }
  0x7c   : > { %581 = vst [vmem:[#allocation4 + $0x18] sm:$0x1] %v2081_v11 }
  0x7d   : > { %606 = vsyncadd [#allocation8 + $0xa], 16  ;;  %s1678_s7 = scalar_lea.vmem %s2620_s4, %s558_s27 }
  0x7e   : > { %v2083_v12 = vld [vmem:[%s1678_s7 + $0x64] sm:$0x1] }
  0x7f   : > { %628 = vst [vmem:[#allocation7 + $0x18] sm:$0x1] %v2083_v12 }
  0x80   : > { %653 = vsyncadd [#allocation8 + $0xb], 16  ;;  %s2450_s8 = smov 0  }
  0x81 LB: >> { %p660_p4 = scmp.lt.s32.totalorder %s2343_s8, 0  ;;  %s661_s26 = ssub.s32 0, %s2343_s8  ;;  %s2343_s8 = sphi %s2450_s8, %s2625_s8  }
  0x82   : >> { %s2084_s9 = smin.u32 %s2343_s8, %s661_s26  ;;  %s2459_s11 = sadd.s32 1, %s2343_s8  }
  0x83   : >> { %s663_s12 = sand.u32 1, %s2084_s9   ;;  %p2087_p6 = scmp.ge.s32.totalorder %s2459_s11, 8 }
  0x84   : >> { %s664_s13 = ssub.s32 0, %s663_s12  ;;  %s678_s16 = sadd.s32 (!%p2087_p6), %s2404_s2, %s2459_s11 }
  0x85   : >> { %s2627_s13 = smov (!%p660_p4, %s664_s13), %s663_s12  ;;  %676 = sbr.rel (%p2087_p6) target bundleno = 212 (0xd4), region = 387 }
  0x86   : >> { %p2086_p5 = scmp.lt.s32.totalorder %s2627_s13, 0  ;;  %s670_s14 = sadd.s32 2, %s2627_s13 }
  0x87   : >> { %p679_p7 = scmp.lt.s32.totalorder (!%p2087_p6), %s678_s16, 11  ;;  %s1685_s23 = scalar_lea.vmem (!%p2087_p6), [#allocation2], %s2343_s8 }
  0x88   : >> { %s2629_s14 = smov (!%p2086_p5, %s670_s14), %s2627_s13 }
  0x89   : >> { %s677_s15 = ssub.s32 (!%p2087_p6), 1, %s2629_s14 }
  0x8a   : >> { %s686_s17 = smul.u32 (!%p2087_p6), 12, %s677_s15 }
  0x8c   : >> { %s2631_s16 = smov (!%p679_p7, %s678_s16), 11  ;;  %s2473_s24 = scalar_lea.sflag [#allocation8], %s686_s17 }
  0x8d   : >> { %s681_s18 = sld [smem:[#allocation10 + %s2631_s16]] }
  0x8e   : >> { %s682_s19 = sld [smem:[#allocation11 + %s2631_s16]] }
  0x93   : >> { %s684_s22 = scalar_lea.vmem %s2619_s3, %s681_s18 }
  0x94   : >> { %v705_v13 = vld [vmem:[%s684_s22] sm:$0x1] }
  0x95   : >> { %2089 = vst [vmem:[%s1685_s23 + $0x1] sm:$0x1] %v705_v13 }
  0x96   : >> { %731 = vsyncadd %s2473_s24, 16  ;;  %s1692_s28 = scalar_lea.vmem %s2619_s3, %s682_s19  ;;  %s1698_s29 = scalar_lea.sflag %s2473_s24, 1 [#allocation8] }
  0x97   : >> { %v2092_v14 = vld [vmem:[%s1692_s28 + $0x64] sm:$0x1]  ;;  %s1694_s0 = scalar_lea.vmem [#allocation3], %s2343_s8 }
  0x98   : >> { %2093 = vst [vmem:[%s1694_s0 + $0x1] sm:$0x1] %v2092_v14 }
  0x99   : >> { %779 = vsyncadd %s1698_s29, 16  ;;  %s780_s7 = scalar_lea.vmem %s2620_s4, %s681_s18  ;;  %s1708_s26 = scalar_lea.sflag %s2473_s24, 2 [#allocation8] }
  0x9a   : >> { %v801_v15 = vld [vmem:[%s780_s7] sm:$0x1]  ;;  %s1704_s9 = scalar_lea.vmem [#allocation5], %s2343_s8 }
  0x9b   : >> { %2095 = vst [vmem:[%s1704_s9 + $0x1] sm:$0x1] %v801_v15 }
  0x9c   : >> { %827 = vsyncadd %s1708_s26, 16  ;;  %s1712_s15 = scalar_lea.vmem %s2620_s4, %s682_s19  ;;  %s1718_s17 = scalar_lea.sflag %s2473_s24, 3 [#allocation8] }
  0x9d   : >> { %v2098_v16 = vld [vmem:[%s1712_s15 + $0x64] sm:$0x1]  ;;  %s1714_s20 = scalar_lea.vmem [#allocation6], %s2343_s8 }
  0x9e   : >> { %2099 = vst [vmem:[%s1714_s20 + $0x1] sm:$0x1] %v2098_v16 }
  0x9f   : >> { %875 = vsyncadd %s1718_s17, 16  ;;  %s2491_s18 = sshll.u32 %s2631_s16, 2  ;;  %s880_s21 = sshrl.u32 %s2459_s11, 3 }
  0xa0   : >> { %s877_s22 = sld [smem:[#allocation12 + %s2491_s18]]  ;;  %s881_s23 = sand.u32 7, %s2459_s11  }
  0xa1   : >> { %s2101_s25 = sshll.u32 %s880_s21, 5  ;;  %s1730_s27 = scalar_lea.sflag %s2473_s24, 4 [#allocation8] }
  0xa2   : >> { %s883_s28 = sadd.s32 %s2101_s25, %s881_s23 }
  0xa3   : >> { %s2500_s8 = scalar_lea.vmem [#allocation4], %s883_s28 }
  0xa6   : >> { %s1723_s19 = scalar_lea.vmem %s2619_s3, %s877_s22 }
  0xa7   : >> { %v2103_v17 = vld [vmem:[%s1723_s19 + $0x64] sm:$0x1] }
  0xa8   : >> { %905 = vst [vmem:[%s2500_s8] sm:$0x1] %v2103_v17 }
  0xa9   : >> { %930 = vsyncadd %s1730_s27, 16  ;;  %s1734_s30 = scalar_lea.vmem %s2620_s4, %s877_s22  ;;  %s1741_s7 = scalar_lea.sflag %s2473_s24, 5 [#allocation8] }
  0xaa   : >> { %v2105_v18 = vld [vmem:[%s1734_s30 + $0x64] sm:$0x1]  ;;  %s2507_s26 = scalar_lea.vmem [#allocation7], %s883_s28 }
  0xab   : >> { %953 = vst [vmem:[%s2507_s26] sm:$0x1] %v2105_v18 }
  0xac   : >> { %978 = vsyncadd %s1741_s7, 16  ;;  %s979_s9 = sadd.s32 1, %s2491_s18  ;;  %s1753_s12 = scalar_lea.sflag %s2473_s24, 6 [#allocation8] }
  0xad   : >> { %s980_s13 = sld [smem:[#allocation12 + %s979_s9]] }
  0xb3   : >> { %s1745_s20 = scalar_lea.vmem %s2619_s3, %s980_s13 }
  0xb4   : >> { %v2109_v19 = vld [vmem:[%s1745_s20 + $0x64] sm:$0x1] }
  0xb5   : >> { %2110 = vst [vmem:[%s2500_s8 + $0x8] sm:$0x1] %v2109_v19 }
  0xb6   : >> { %1030 = vsyncadd %s1753_s12, 16  ;;  %s1758_s23 = scalar_lea.vmem %s2620_s4, %s980_s13  ;;  %s1766_s25 = scalar_lea.sflag %s2473_s24, 7 [#allocation8] }
  0xb7   : >> { %v2114_v20 = vld [vmem:[%s1758_s23 + $0x64] sm:$0x1] }
  0xb8   : >> { %2115 = vst [vmem:[%s2507_s26 + $0x8] sm:$0x1] %v2114_v20 }
  0xb9   : >> { %1078 = vsyncadd %s1766_s25, 16  ;;  %s1079_s27 = sadd.s32 2, %s2491_s18  ;;  %s1779_s28 = scalar_lea.sflag %s2473_s24, 8 [#allocation8] }
  0xba   : >> { %s1080_s29 = sld [smem:[#allocation12 + %s1079_s27]] }
  0xc0   : >> { %s1771_s1 = scalar_lea.vmem %s2619_s3, %s1080_s29 }
  0xc1   : >> { %v2119_v21 = vld [vmem:[%s1771_s1 + $0x64] sm:$0x1] }
  0xc2   : >> { %2120 = vst [vmem:[%s2500_s8 + $0x10] sm:$0x1] %v2119_v21 }
  0xc3   : >> { %1130 = vsyncadd %s1779_s28, 16  ;;  %s1784_s7 = scalar_lea.vmem %s2620_s4, %s1080_s29  ;;  %s1792_s9 = scalar_lea.sflag %s2473_s24, 9 [#allocation8] }
  0xc4   : >> { %v2124_v22 = vld [vmem:[%s1784_s7 + $0x64] sm:$0x1] }
  0xc5   : >> { %2125 = vst [vmem:[%s2507_s26 + $0x10] sm:$0x1] %v2124_v22 }
  0xc6   : >> { %1178 = vsyncadd %s1792_s9, 16  ;;  %s1179_s12 = sadd.s32 3, %s2491_s18  ;;  %s1805_s13 = scalar_lea.sflag %s2473_s24, 10 [#allocation8] }
  0xc7   : >> { %s1180_s15 = sld [smem:[#allocation12 + %s1179_s12]] }
  0xcd   : >> { %s1797_s21 = scalar_lea.vmem %s2619_s3, %s1180_s15 }
  0xce   : >> { %v2129_v23 = vld [vmem:[%s1797_s21 + $0x64] sm:$0x1] }
  0xcf   : >> { %2130 = vst [vmem:[%s2500_s8 + $0x18] sm:$0x1] %v2129_v23 }
  0xd0   : >> { %1230 = vsyncadd %s1805_s13, 16  ;;  %s1810_s25 = scalar_lea.vmem %s2620_s4, %s1180_s15  ;;  %s1818_s27 = scalar_lea.sflag %s2473_s24, 11 [#allocation8] }
  0xd1   : >> { %v2134_v24 = vld [vmem:[%s1810_s25 + $0x64] sm:$0x1] }
  0xd2   : >> { %2135 = vst [vmem:[%s2507_s26 + $0x18] sm:$0x1] %v2134_v24 }
  0xd3   : >> { %1278 = vsyncadd %s1818_s27, 16 }
  0xd4 PF: >> { %s1279_s18 = smul.u32 12, %s2629_s14 }
  0xd6   : >> { %s2544_s28 = scalar_lea.sflag [#allocation8], %s1279_s18 }
  0xd7   : >> { %2305 = dma.done.wait %s2544_s28, 16 }
  0xd8   : >> { %2306 = vsyncadd %s2544_s28, 4294967280  ;;  %s1827_s8 = scalar_lea.sflag %s2544_s28, 1 [#allocation8] }
  0xd9   : >> { %2307 = dma.done.wait %s1827_s8, 16 }
  0xda   : >> { %2308 = vsyncadd %s1827_s8, 4294967280  ;;  %s1830_s29 = scalar_lea.sflag %s2544_s28, 2 [#allocation8] }
  0xdb   : >> { %2309 = dma.done.wait %s1830_s29, 16 }
  0xdc   : >> { %2310 = vsyncadd %s1830_s29, 4294967280  ;;  %s1833_s24 = scalar_lea.sflag %s2544_s28, 3 [#allocation8] }
  0xdd   : >> { %2311 = dma.done.wait %s1833_s24, 16 }
  0xde   : >> { %2312 = vsyncadd %s1833_s24, 4294967280  ;;  %s1836_s14 = scalar_lea.sflag %s2544_s28, 4 [#allocation8] }
  0xdf   : >> { %2313 = dma.done.wait %s1836_s14, 16 }
  0xe0   : >> { %2314 = vsyncadd %s1836_s14, 4294967280  ;;  %s1839_s26 = scalar_lea.sflag %s2544_s28, 5 [#allocation8] }
  0xe1   : >> { %2315 = dma.done.wait %s1839_s26, 16 }
  0xe2   : >> { %2316 = vsyncadd %s1839_s26, 4294967280  ;;  %s1842_s0 = scalar_lea.sflag %s2544_s28, 6 [#allocation8] }
  0xe3   : >> { %2317 = dma.done.wait %s1842_s0, 16 }
  0xe4   : >> { %2318 = vsyncadd %s1842_s0, 4294967280  ;;  %s1845_s19 = scalar_lea.sflag %s2544_s28, 7 [#allocation8] }
  0xe5   : >> { %2319 = dma.done.wait %s1845_s19, 16 }
  0xe6   : >> { %2320 = vsyncadd %s1845_s19, 4294967280  ;;  %s1848_s1 = scalar_lea.sflag %s2544_s28, 8 [#allocation8] }
  0xe7   : >> { %2321 = dma.done.wait %s1848_s1, 16 }
  0xe8   : >> { %2322 = vsyncadd %s1848_s1, 4294967280  ;;  %s1851_s16 = scalar_lea.sflag %s2544_s28, 9 [#allocation8] }
  0xe9   : >> { %2323 = dma.done.wait %s1851_s16, 16 }
  0xea   : >> { %2324 = vsyncadd %s1851_s16, 4294967280  ;;  %s1854_s30 = scalar_lea.sflag %s2544_s28, 10 [#allocation8] }
  0xeb   : >> { %2325 = dma.done.wait %s1854_s30, 16 }
  0xec   : >> { %2326 = vsyncadd %s1854_s30, 4294967280  ;;  %s1857_s7 = scalar_lea.sflag %s2544_s28, 11 [#allocation8] }
  0xed   : >> { %2327 = dma.done.wait %s1857_s7, 16 }
  0xee   : >> { %2328 = vsyncadd %s1857_s7, 4294967280  ;;  %s2625_s8 = smov %s2459_s11  ;;  %658 = sbr.rel (!%p2087_p6) target bundleno = 129 (0x81), region = 1123  ;;  %v1329_v25 = vld [vmem:[#allocation4] sm:$0xff] (%p2087_p6)  ;;  %v1330_v26 = vld [vmem:[#allocation4 + $0x8] sm:$0xff] (%p2087_p6)  ;;  %v1339_v51 = vlaneseq (%p2087_p6)  ;;  %v1341_v54 = vstv (%p2087_p6), %s2404_s2  ;;  %v2349_v63 = vmov (%p2087_p6), 0.0   ;;  %vm1377_vm2 = vcmask (%p2087_p6), 0  }
  0xef   : > { %v1331_v27 = vld [vmem:[#allocation4 + $0x10] sm:$0xff] (%p2087_p6)  ;;  %v1332_v28 = vld [vmem:[#allocation4 + $0x18] sm:$0xff] (%p2087_p6)  ;;  %v1350_v29 = vadd.f32 (%p2087_p6), %v1330_v26, %v1329_v25  ;;  %v1333_v30 = vld [vmem:[#allocation5] sm:$0xff] (%p2087_p6)  ;;  %p2137_p8 = scmp.ne.s32.totalorder (%p2087_p6), %s2339_s10, 1 }
  0xf0   : > { %v1334_v31 = vld [vmem:[#allocation6] sm:$0xff] (%p2087_p6)  ;;  %v1335_v32 = vld [vmem:[#allocation7] sm:$0xff] (%p2087_p6)  ;;  %v1379_v34 = vmul.f32 (%p2087_p6), %v1333_v30, %v1333_v30  ;;  %v1336_v35 = vld [vmem:[#allocation7 + $0x8] sm:$0xff] (%p2087_p6)  ;;  %v1340_v53 = vshrl.u32 (%p2087_p6), %v1339_v51, 7 }
  0xf1   : > { %v1351_v33 = vadd.f32 (%p2087_p6), %v1350_v29, %v1331_v27  ;;  %v1337_v36 = vld [vmem:[#allocation7 + $0x10] sm:$0xff] (%p2087_p6)  ;;  %v1386_v37 = vmul.f32 (%p2087_p6), %v1335_v32, %v1335_v32  ;;  %v1327_v38 = vld [vmem:[#allocation2] sm:$0xff] (%p2087_p6)  ;;  %v1387_v39 = vmul.f32 (%p2087_p6), %v1336_v35, %v1336_v35  ;;  %v1382_v41 = vmul.f32 (%p2087_p6), %v1334_v31, %v1334_v31  ;;  %v1328_v43 = vld [vmem:[#allocation3] sm:$0xff] (%p2087_p6) }
  0xf2   : > { %1380 = vadd.xlane.f32.xlu1 (%p2087_p6), %v1379_v34  ;;  %v1388_v42 = vmul.f32 (%p2087_p6), %v1337_v36, %v1337_v36  ;;  %v1338_v44 = vld [vmem:[#allocation7 + $0x18] sm:$0xff] (%p2087_p6)  ;;  %v1346_v47 = vmul.f32 (%p2087_p6), %v1328_v43, %v1327_v38  ;;  %v1342_v56 = vadd.s32 (%p2087_p6), %v1341_v54, %v1340_v53  ;;  %v1396_v11 = vld [vmem:[#allocation15] sm:$0x1] (%p2087_p6)  ;;  %v1367_v27 = vld [vmem:[#allocation13] sm:$0x1] (%p2087_p6) }
  0xf3   : > { %v1352_v40 = vadd.f32 (%p2087_p6), %v1351_v33, %v1332_v28  ;;  %v1390_v45 = vadd.f32 (%p2087_p6), %v1387_v39, %v1386_v37  ;;  %v1389_v48 = vmul.f32 (%p2087_p6), %v1338_v44, %v1338_v44 }
  0xf4   : > { %vm1343_vm1 = vcmp.lt.s32.totalorder (%p2087_p6), %v1342_v56, 12 }
  0xf5   : > { %v1353_v46 = vmul.f32 %v1352_v40, %v1327_v38  ;;  %v1391_v49 = vadd.f32 %v1390_v45, %v1388_v42  ;;  %v2136_v0 = vsel %vm1343_vm1, 1.0, %v2349_v63 }
  0xf6   : > { %1383 = vadd.xlane.f32.xlu1 %v1382_v41 }
  0xf7   : > { %1354 = vadd.xlane.f32.xlu0 %v1353_v46  ;;  %v1392_v50 = vadd.f32 %v1391_v49, %v1389_v48 }
  0xfb   : > { %1347 = vadd.xlane.f32.xlu0 %v1346_v47 }
  0xff   : > { %1393 = vadd.xlane.f32.xlu0 %v1392_v50 }
 0x17f   : > { %v1381_v52 = vpop.xlane.xlu1 %1380 }
 0x183   : > { %v1384_v57 = vpop.xlane.xlu1 %1383 }
 0x184   : > { %v1355_v55 = vpop.xlane.xlu0 %1354  ;;  %v1385_v61 = vadd.f32 %v1384_v57, %v1381_v52 }
 0x185   : > { %v1356_v58 = vmul.f32 0.25, %v1355_v55 }
 0x188   : > { %v1348_v59 = vpop.xlane.xlu0 %1347 }
 0x189   : > { %v1357_v60 = vsub.f32 %v1348_v59, %v1356_v58 }
 0x18b   : > { %v1359_v62 = vand.u32 2147483647, %v1357_v60  ;;  %v1358_v17 = vmin.f32 %v1357_v60, 0.0 }
 0x18c   : > { %v1394_v1 = vpop.xlane.xlu0 %1393 }
 0x18d   : > { %v1360_v2 = vsub.f32 0.0, %v1359_v62  ;;  %v1395_v3 = vadd.f32 %v1394_v1, %v1385_v61 }
 0x18f   : > { %v1361_v4 = vmul.f32 1.442695, %v1360_v2  ;;  %v1397_v5 = vmul.f32 %v2136_v0, %v1395_v3 }
 0x191   : > { %2203 = vpow2.f32 %v1361_v4  ;;  %v1398_v6 = vrot.slane %v1397_v5, 4 }
 0x193   : > { %v1399_v7 = vadd.f32 %v1398_v6, %v1397_v5 }
 0x195   : > { %v1400_v8 = vrot.slane %v1399_v7, 2 }
 0x197   : > { %v1401_v9 = vadd.f32 %v1400_v8, %v1399_v7 }
 0x199   : > { %v1402_v10 = vrot.slane %v1401_v9, 1 }
 0x19b   : > { %v2204_v12 = vpop.eup %2203  ;;  %v1403_v13 = vadd.f32 %v1402_v10, %v1401_v9 }
 0x19c   : > { %v1363_v14 = vadd.f32 1.0, %v2204_v12 }
 0x19d   : > { %v1404_v15 = vadd.f32 %v1403_v13, %v1396_v11 }
 0x19e   : > { %2205 = vlog2.f32 %v1363_v14 }
 0x19f   : > { %1405 = vst.msk [vmem:[#allocation15] sm:$0x1] %vm1377_vm2, %v1404_v15 }
 0x1a6   : > { %v1413_v31 = vld [vmem:[#allocation15] sm:$0x1] (!%p2137_p8) }
 0x1a7   : > { %v1414_v33 = vmul.f32 (!%p2137_p8), 4.1666667e-06, %v1413_v31 }
 0x1a8   : > { %v2206_v16 = vpop.eup %2205 }
 0x1a9   : > { %v1365_v18 = vmul.f32 0.6931472, %v2206_v16  ;;  %1415 = vst.msk [vmem:[#allocation15] sm:$0x1] (!%p2137_p8), %vm1377_vm2, %v1414_v33 }
 0x1ab   : > { %v1366_v19 = vsub.f32 %v1358_v17, %v1365_v18 }
 0x1ad   : > { %v1368_v20 = vmul.f32 %v2136_v0, %v1366_v19 }
 0x1af   : > { %v1369_v21 = vrot.slane %v1368_v20, 4 }
 0x1b1   : > { %v1370_v22 = vadd.f32 %v1369_v21, %v1368_v20 }
 0x1b3   : > { %v1371_v23 = vrot.slane %v1370_v22, 2 }
 0x1b5   : > { %v1372_v24 = vadd.f32 %v1371_v23, %v1370_v22 }
 0x1b7   : > { %v1373_v25 = vrot.slane %v1372_v24, 1 }
 0x1b9   : > { %v1374_v26 = vadd.f32 %v1373_v25, %v1372_v24  ;;  %1409 = sbr.rel (%p2137_p8) target bundleno = 458 (0x1ca), region = 751 }
 0x1bb   : > { %v1375_v28 = vsub.f32 0.0, %v1374_v26 }
 0x1bd   : > { %v1376_v29 = vadd.f32 %v1375_v28, %v1367_v27 }
 0x1bf   : > { %1378 = vst.msk [vmem:[#allocation13] sm:$0x1] %vm1377_vm2, %v1376_v29 }
 0x1c6   : > { %v1410_v30 = vld [vmem:[#allocation13] sm:$0x1] }
 0x1c7   : > { %v1411_v32 = vmul.f32 0.083333336, %v1410_v30 }
 0x1c9   : > { %1412 = vst.msk [vmem:[#allocation13] sm:$0x1] %vm1377_vm2, %v1411_v32 }
 0x1ca PF: > { %p2176_p9 = scmp.eq.s32.totalorder %s2339_s10, 1  ;;  %s2350_s2 = smov [#allocation13]  }
 0x1cb   : > { %s1423_s11 = sshll.u32 %s2350_s2, 4  ;;  %s2351_s9 = smov [#allocation15]   ;;  %s1424_s11 = int_to_ptr.vmem [resolvable:$true] %s1423_s11 }
 0x1cc   : > { %s1434_s12 = sshll.u32 %s2351_s9, 4  ;;  %s2243_s13 = scalar_lea.vmem %s1424_s11, 16  ;;  %s1435_s12 = int_to_ptr.vmem [resolvable:$true] %s1434_s12 }
 0x1cd   : > { %p2244_p10 = scmp.ne.s32.totalorder %s1424_s11, %s2243_s13  ;;  %s2249_s15 = scalar_lea.vmem %s1424_s11, 32 }
 0x1ce   : > { %p2250_p13 = scmp.lt.s32.totalorder %s1424_s11, %s1424_s11  ;;  %p2251_p0 = scmp.lt.s32.totalorder %s2249_s15, %s2243_s13 }
 0x1cf   : > { %p2245_p11 = pnand %p2244_p10, %p2176_p9 }
 0x1d0   : > { %p2252_p1 = por %p2251_p0, %p2250_p13 }
 0x1d1   : > { %p2246_p12 = pneg %p2245_p11 }
 0x1d3   : > { %p2253_p2 = pnand %p2252_p1, %p2246_p12 }
 0x1d5   : > { %2256 = shalt.err (!%p2253_p2)
}
 0x1d6   : > { %s2257_s21 = scalar_lea.hbm %s2621_s5, 16 }
 0x1d7   : > { %p2258_p3 = scmp.ne.s32.totalorder %s2621_s5, %s2257_s21  ;;  %p2263_p6 = scmp.lt.u32.totalorder %s2257_s21, %s2621_s5 }
 0x1d9   : > { %p2259_p4 = pnand %p2258_p3, %p2176_p9 }
 0x1db   : > { %p2260_p5 = pneg %p2259_p4 }
 0x1dd   : > { %p2265_p7 = pnand %p2263_p6, %p2260_p5 }
 0x1df   : > { %2268 = shalt.err (!%p2265_p7)
}
 0x1e0   : > { %2169 = dma.vmem_to_hbm [thread:$0]  (%p2176_p9), %s1424_s11, 16, %s2621_s5, [#allocation14]  }
 0x1e1   : > { %s2269_s8 = scalar_lea.vmem %s1435_s12, 16  ;;  %s2275_s29 = scalar_lea.vmem %s1435_s12, 32 }
 0x1e2   : > { %p2270_p8 = scmp.ne.s32.totalorder %s1435_s12, %s2269_s8  ;;  %p2276_p12 = scmp.lt.s32.totalorder %s1435_s12, %s1435_s12 }
 0x1e3   : > { %p2277_p13 = scmp.lt.s32.totalorder %s2275_s29, %s2269_s8 }
 0x1e4   : > { %p2271_p10 = pnand %p2270_p8, %p2176_p9 }
 0x1e5   : > { %p2278_p0 = por %p2277_p13, %p2276_p12 }
 0x1e6   : > { %p2272_p11 = pneg %p2271_p10 }
 0x1e8   : > { %p2279_p1 = pnand %p2278_p0, %p2272_p11 }
 0x1ea   : > { %2282 = shalt.err (!%p2279_p1)
}
 0x1eb   : > { %s2283_s26 = scalar_lea.hbm %s2622_s6, 16 }
 0x1ec   : > { %p2284_p2 = scmp.ne.s32.totalorder %s2622_s6, %s2283_s26  ;;  %p2289_p5 = scmp.lt.u32.totalorder %s2283_s26, %s2622_s6 }
 0x1ee   : > { %p2285_p3 = pnand %p2284_p2, %p2176_p9 }
 0x1f0   : > { %p2286_p4 = pneg %p2285_p3 }
 0x1f2   : > { %p2291_p6 = pnand %p2289_p5, %p2286_p4 }
 0x1f4   : > { %2294 = shalt.err (!%p2291_p6)
}
 0x1f5   : > { %2171 = dma.vmem_to_hbm [thread:$0]  (%p2176_p9), %s1435_s12, 16, %s2622_s6, [#allocation16]  }
 0x1f6   : > { %2330 = dma.done.wait (%p2176_p9), [#allocation14], 16  }
 0x1f7   : > { %2332 = vsyncadd (%p2176_p9), [#allocation14], 4294967280 }
 0x1f8   : > { %2334 = dma.done.wait (%p2176_p9), [#allocation16], 16  }
 0x1f9   : > { %2336 = vsyncadd (%p2176_p9), [#allocation16], 4294967280 }
 0x1fa PF: > { %s33_s10 = sadd.s32 1, %s2339_s10  }
 0x1fb   : > { %p30_p7 = scmp.ge.s32.totalorder %s33_s10, 3  }
 0x1fd   :  { %32 = sbr.rel (!%p30_p7) target bundleno = 37 (0x25), region = 1134 }
 0x204   :  { %1451 = vsyncpa [#allocation14], 1 }
 0x205   :  { %1453 = vsyncpa [#allocation14 + $0x1], 1 }
 0x206   :  { %1454 = vsyncpa [#allocation16], 1 }
 0x207   :  { %1455 = vsyncmov [#allocation8] }
 0x20a   :  { %s1456_s2 = vpop.sfrf %1455 }
 0x20b   :  { %p2144_p8 = scmp.ne.s32.totalorder %s1456_s2, 0 }
 0x20d   :  { %1460 = shalt.err (%p2144_p8)  }
 0x20e   :  { %1462 = vsyncmov [#allocation8 + $0x1] }
 0x211   :  { %s1463_s11 = vpop.sfrf %1462 }
 0x212   :  { %p2145_p10 = scmp.ne.s32.totalorder %s1463_s11, 0 }
 0x214   :  { %1467 = shalt.err (%p2145_p10)  }
 0x215   :  { %1469 = vsyncmov [#allocation8 + $0x2] }
 0x218   :  { %s1470_s9 = vpop.sfrf %1469 }
 0x219   :  { %p2146_p9 = scmp.ne.s32.totalorder %s1470_s9, 0 }
 0x21b   :  { %1474 = shalt.err (%p2146_p9)  }
 0x21c   :  { %1476 = vsyncmov [#allocation8 + $0x3] }
 0x21f   :  { %s1477_s12 = vpop.sfrf %1476 }
 0x220   :  { %p2147_p11 = scmp.ne.s32.totalorder %s1477_s12, 0 }
 0x222   :  { %1481 = shalt.err (%p2147_p11)  }
 0x223   :  { %1483 = vsyncmov [#allocation8 + $0x4] }
 0x226   :  { %s1484_s3 = vpop.sfrf %1483 }
 0x227   :  { %p2148_p12 = scmp.ne.s32.totalorder %s1484_s3, 0 }
 0x229   :  { %1488 = shalt.err (%p2148_p12)  }
 0x22a   :  { %1490 = vsyncmov [#allocation8 + $0x5] }
 0x22d   :  { %s1491_s4 = vpop.sfrf %1490 }
 0x22e   :  { %p2149_p13 = scmp.ne.s32.totalorder %s1491_s4, 0 }
 0x230   :  { %1495 = shalt.err (%p2149_p13)  }
 0x231   :  { %1497 = vsyncmov [#allocation8 + $0x6] }
 0x234   :  { %s1498_s5 = vpop.sfrf %1497 }
 0x235   :  { %p2150_p0 = scmp.ne.s32.totalorder %s1498_s5, 0 }
 0x237   :  { %1502 = shalt.err (%p2150_p0)  }
 0x238   :  { %1504 = vsyncmov [#allocation8 + $0x7] }
 0x23b   :  { %s1505_s6 = vpop.sfrf %1504 }
 0x23c   :  { %p2151_p1 = scmp.ne.s32.totalorder %s1505_s6, 0 }
 0x23e   :  { %1509 = shalt.err (%p2151_p1)  }
 0x23f   :  { %1511 = vsyncmov [#allocation8 + $0x8] }
 0x242   :  { %s1512_s10 = vpop.sfrf %1511 }
 0x243   :  { %p2152_p2 = scmp.ne.s32.totalorder %s1512_s10, 0 }
 0x245   :  { %1516 = shalt.err (%p2152_p2)  }
 0x246   :  { %1518 = vsyncmov [#allocation8 + $0x9] }
 0x249   :  { %s1519_s13 = vpop.sfrf %1518 }
 0x24a   :  { %p2153_p3 = scmp.ne.s32.totalorder %s1519_s13, 0 }
 0x24c   :  { %1523 = shalt.err (%p2153_p3)  }
 0x24d   :  { %1525 = vsyncmov [#allocation8 + $0xa] }
 0x250   :  { %s1526_s15 = vpop.sfrf %1525 }
 0x251   :  { %p2154_p4 = scmp.ne.s32.totalorder %s1526_s15, 0 }
 0x253   :  { %1530 = shalt.err (%p2154_p4)  }
 0x254   :  { %1532 = vsyncmov [#allocation8 + $0xb] }
 0x257   :  { %s1533_s17 = vpop.sfrf %1532 }
 0x258   :  { %p2155_p5 = scmp.ne.s32.totalorder %s1533_s17, 0 }
 0x25a   :  { %1537 = shalt.err (%p2155_p5)  }
 0x25b   :  { %1539 = vsyncmov [#allocation8 + $0xc] }
 0x25e   :  { %s1540_s20 = vpop.sfrf %1539 }
 0x25f   :  { %p2156_p6 = scmp.ne.s32.totalorder %s1540_s20, 0 }
 0x261   :  { %1544 = shalt.err (%p2156_p6)  }
 0x262   :  { %1546 = vsyncmov [#allocation8 + $0xd] }
 0x265   :  { %s1547_s21 = vpop.sfrf %1546 }
 0x266   :  { %p2157_p7 = scmp.ne.s32.totalorder %s1547_s21, 0 }
 0x268   :  { %1551 = shalt.err (%p2157_p7)  }
 0x269   :  { %1553 = vsyncmov [#allocation8 + $0xe] }
 0x26c   :  { %s1554_s22 = vpop.sfrf %1553 }
 0x26d   :  { %p2158_p8 = scmp.ne.s32.totalorder %s1554_s22, 0 }
 0x26f   :  { %1558 = shalt.err (%p2158_p8)  }
 0x270   :  { %1560 = vsyncmov [#allocation8 + $0xf] }
 0x273   :  { %s1561_s23 = vpop.sfrf %1560 }
 0x274   :  { %p2159_p10 = scmp.ne.s32.totalorder %s1561_s23, 0 }
 0x276   :  { %1565 = shalt.err (%p2159_p10)  }
 0x277   :  { %1567 = vsyncmov [#allocation8 + $0x10] }
 0x27a   :  { %s1568_s25 = vpop.sfrf %1567 }
 0x27b   :  { %p2160_p9 = scmp.ne.s32.totalorder %s1568_s25, 0 }
 0x27d   :  { %1572 = shalt.err (%p2160_p9)  }
 0x27e   :  { %1574 = vsyncmov [#allocation8 + $0x11] }
 0x281   :  { %s1575_s27 = vpop.sfrf %1574 }
 0x282   :  { %p2161_p11 = scmp.ne.s32.totalorder %s1575_s27, 0 }
 0x284   :  { %1579 = shalt.err (%p2161_p11)  }
 0x285   :  { %1581 = vsyncmov [#allocation8 + $0x12] }
 0x288   :  { %s1582_s18 = vpop.sfrf %1581 }
 0x289   :  { %p2162_p12 = scmp.ne.s32.totalorder %s1582_s18, 0 }
 0x28b   :  { %1586 = shalt.err (%p2162_p12)  }
 0x28c   :  { %1588 = vsyncmov [#allocation8 + $0x13] }
 0x28f   :  { %s1589_s28 = vpop.sfrf %1588 }
 0x290   :  { %p2163_p13 = scmp.ne.s32.totalorder %s1589_s28, 0 }
 0x292   :  { %1593 = shalt.err (%p2163_p13)  }
 0x293   :  { %1595 = vsyncmov [#allocation8 + $0x14] }
 0x296   :  { %s1596_s8 = vpop.sfrf %1595 }
 0x297   :  { %p2164_p0 = scmp.ne.s32.totalorder %s1596_s8, 0 }
 0x299   :  { %1600 = shalt.err (%p2164_p0)  }
 0x29a   :  { %1602 = vsyncmov [#allocation8 + $0x15] }
 0x29d   :  { %s1603_s29 = vpop.sfrf %1602 }
 0x29e   :  { %p2165_p1 = scmp.ne.s32.totalorder %s1603_s29, 0 }
 0x2a0   :  { %1607 = shalt.err (%p2165_p1)  }
 0x2a1   :  { %1609 = vsyncmov [#allocation8 + $0x16] }
 0x2a4   :  { %s1610_s24 = vpop.sfrf %1609 }
 0x2a5   :  { %p2166_p2 = scmp.ne.s32.totalorder %s1610_s24, 0 }
 0x2a7   :  { %1614 = shalt.err (%p2166_p2)  }
 0x2a8   :  { %1616 = vsyncmov [#allocation8 + $0x17] }
 0x2ab   :  { %s1617_s14 = vpop.sfrf %1616 }
 0x2ac   :  { %p2167_p3 = scmp.ne.s32.totalorder %s1617_s14, 0 }
 0x2ae   :  { %1621 = shalt.err (%p2167_p3)  }

</bundles_post_ra>
